<compile_context>
chip_gen: v7x
topology: tpu7x:2x2x1
jax: 0.10.0
libtpu: 0.0.40
codegen_flags: <defaults>
</compile_context>

<pallas_src>
import functools

import jax
import jax.numpy as jnp
from jax.experimental import pallas as pl
from jax.experimental.pallas import tpu as pltpu

LN_EPS = 1e-5
_INV_SQRT2 = 0.7071067811865476
_BF16 = jnp.bfloat16
_F32 = jnp.float32


def _gelu(x):
    # exact (erf) GELU, matching torch.nn.GELU(approximate='none')
    return 0.5 * x * (1.0 + jax.lax.erf(x * _INV_SQRT2))


def _round_up(n, m):
    return ((n + m - 1) // m) * m


@functools.lru_cache(maxsize=1)
def _vmem_limit():
    # Per-generation VMEM budget: physical capacity minus headroom for Mosaic internal
    # scratch / semaphores / double-buffering (~48 MiB on v7x, larger on v5e/v6e).
    try:
        cap = int(pltpu.get_tpu_info().vmem_capacity_bytes)
    except Exception:
        return 48 * 1024 * 1024  # safe fallback on every generation
    return int(max(32 * 1024 * 1024, min(cap - 16 * 1024 * 1024, 112 * 1024 * 1024)))


def _row_tile(n):
    # Prefer 256-row tiles (full MXU M dimension) but shrink so the software pipeline and
    # megacore sharding get >= ~8 grid steps when N is small.
    t = 256
    while t > 64 and pl.cdiv(n, t) < 8:
        t //= 2
    return min(t, max(8, _round_up(n, 8)))


def _hw_tile(hw, bsz):
    # Divisor of HW giving decent pipeline depth without whole-image VMEM blocks.
    for cand in (512, 256, 128, 64, 32, 16, 8):
        if hw % cand == 0 and bsz * (hw // cand) >= 8:
            return cand
    for cand in (512, 256, 128, 64, 32, 16, 8):
        if hw % cand == 0:
            return cand
    return hw


def _pad_rows(x, t):
    pad = _round_up(x.shape[0], t) - x.shape[0]
    if pad:
        x = jnp.pad(x, ((0, pad), (0, 0)))
    return x


# ----------------------------------------------------------------------------
# Pallas kernels
# ----------------------------------------------------------------------------
def _ln1_c_kernel(x_ref, g_ref, b_ref, wc_ref, xn_ref, c_ref):
    x = x_ref[...].astype(_F32)
    mu = jnp.mean(x, axis=-1, keepdims=True)
    var = jnp.mean(jnp.square(x - mu), axis=-1, keepdims=True)
    xn = (x - mu) * jax.lax.rsqrt(var + LN_EPS) * g_ref[...] + b_ref[...]
    xnb = xn.astype(_BF16)
    xn_ref[...] = xnb
    c_ref[...] = jnp.dot(xnb, wc_ref[...],
                         preferred_element_type=_F32).astype(c_ref.dtype)


def _hw_matmul_kernel(hi_ref, wi_ref, wh_ref, ww_ref, ho_ref, wo_ref):
    # Fused h-branch and w-branch matmuls: one grid, two MXU dots per step.
    ho_ref[...] = jnp.dot(hi_ref[...], wh_ref[...],
                          preferred_element_type=_F32).astype(ho_ref.dtype)
    wo_ref[...] = jnp.dot(wi_ref[...], ww_ref[...],
                          preferred_element_type=_F32).astype(wo_ref.dtype)


def _pool_reweight_kernel(h_ref, w_ref, c_ref, rw1_ref, rb1_ref, rw2_ref, rb2_ref,
                          a_ref, sum_scr, *, inv_hw):
    k = pl.program_id(1)

    @pl.when(k == 0)
    def _():
        sum_scr[...] = jnp.zeros_like(sum_scr)

    s = (h_ref[0].astype(_F32) + w_ref[0].astype(_F32) + c_ref[0].astype(_F32))
    sum_scr[...] += jnp.sum(s, axis=0, keepdims=True)

    @pl.when(k == pl.num_programs(1) - 1)
    def _():
        cdim = a_ref.shape[-1]
        m = sum_scr[...] * inv_hw                                     # (1, C) pooled mean
        z = _gelu(jnp.dot(m.astype(_BF16), rw1_ref[...],
                          preferred_element_type=_F32) + rb1_ref[...])
        # single fc2 dot against branch-major (Cq, 3C) weight, lane-aligned slices after.
        logits = jnp.dot(z.astype(_BF16), rw2_ref[...],
                         preferred_element_type=_F32) + rb2_ref[...]   # (1, 3C)
        a0 = logits[:, 0:cdim]
        a1 = logits[:, cdim:2 * cdim]
        a2 = logits[:, 2 * cdim:3 * cdim]
        mx = jnp.maximum(jnp.maximum(a0, a1), a2)
        e0 = jnp.exp(a0 - mx)
        e1 = jnp.exp(a1 - mx)
        e2 = jnp.exp(a2 - mx)
        inv = 1.0 / (e0 + e1 + e2)
        a_ref[0] = jnp.concatenate([e0 * inv, e1 * inv, e2 * inv], axis=0)   # (3, C)


def _combine_proj_residual_kernel(h_ref, w_ref, c_ref, x_ref, a_ref, wp_ref, bp_ref,
                                  o_ref, *, inv_skip_lam):
    a = a_ref[0]                                                       # (3, C) f32
    comb = (h_ref[0].astype(_F32) * a[0:1, :]
            + w_ref[0].astype(_F32) * a[1:2, :]
            + c_ref[0].astype(_F32) * a[2:3, :])                       # (thw, C) f32
    y = jnp.dot(comb.astype(_BF16), wp_ref[...],
                preferred_element_type=_F32) + bp_ref[...]
    o_ref[0] = (x_ref[0].astype(_F32) + y * inv_skip_lam).astype(o_ref.dtype)


def _ln2_mlp_residual_kernel(x_ref, g_ref, b_ref, w1_ref, b1_ref, w2_ref, b2_ref,
                             o_ref, xn_scr, acc_scr, *, inv_skip_lam):
    k = pl.program_id(1)

    @pl.when(k == 0)
    def _():
        x = x_ref[...].astype(_F32)
        mu = jnp.mean(x, axis=-1, keepdims=True)
        var = jnp.mean(jnp.square(x - mu), axis=-1, keepdims=True)
        xn = (x - mu) * jax.lax.rsqrt(var + LN_EPS) * g_ref[...] + b_ref[...]
        xn_scr[...] = xn.astype(_BF16)
        acc_scr[...] = jnp.zeros_like(acc_scr)

    hid = _gelu(jnp.dot(xn_scr[...], w1_ref[...],
                        preferred_element_type=_F32) + b1_ref[...])
    acc_scr[...] += jnp.dot(hid.astype(_BF16), w2_ref[...],
                            preferred_element_type=_F32)

    @pl.when(k == pl.num_programs(1) - 1)
    def _():
        y = acc_scr[...] + b2_ref[...]
        o_ref[...] = (x_ref[...].astype(_F32) + y * inv_skip_lam).astype(o_ref.dtype)


# ----------------------------------------------------------------------------
# pallas_call wrappers
# ----------------------------------------------------------------------------
def _ln1_c(x, g, b, wc):
    n, cdim = x.shape
    t = _row_tile(n)
    xp = _pad_rows(x, t)
    npad = xp.shape[0]
    xn, c = pl.pallas_call(
        _ln1_c_kernel,
        out_shape=(jax.ShapeDtypeStruct((npad, cdim), _BF16),
                   jax.ShapeDtypeStruct((npad, cdim), _BF16)),
        grid=(npad // t,),
        in_specs=[pl.BlockSpec((t, cdim), lambda i: (i, 0)),
                  pl.BlockSpec((1, cdim), lambda i: (0, 0)),
                  pl.BlockSpec((1, cdim), lambda i: (0, 0)),
                  pl.BlockSpec((cdim, cdim), lambda i: (0, 0))],
        out_specs=(pl.BlockSpec((t, cdim), lambda i: (i, 0)),
                   pl.BlockSpec((t, cdim), lambda i: (i, 0))),
        compiler_params=pltpu.CompilerParams(
            dimension_semantics=("parallel",), vmem_limit_bytes=_vmem_limit()),
    )(xp, g, b, wc)
    return xn[:n], c[:n]


def _hw_matmul(h_in, w_in, wh, ww):
    n, cdim = h_in.shape
    t = _row_tile(n)
    hp = _pad_rows(h_in, t)
    wp_ = _pad_rows(w_in, t)
    npad = hp.shape[0]
    h_out, w_out = pl.pallas_call(
        _hw_matmul_kernel,
        out_shape=(jax.ShapeDtypeStruct((npad, cdim), _BF16),
                   jax.ShapeDtypeStruct((npad, cdim), _BF16)),
        grid=(npad // t,),
        in_specs=[pl.BlockSpec((t, cdim), lambda i: (i, 0)),
                  pl.BlockSpec((t, cdim), lambda i: (i, 0)),
                  pl.BlockSpec((cdim, cdim), lambda i: (0, 0)),
                  pl.BlockSpec((cdim, cdim), lambda i: (0, 0))],
        out_specs=(pl.BlockSpec((t, cdim), lambda i: (i, 0)),
                   pl.BlockSpec((t, cdim), lambda i: (i, 0))),
        compiler_params=pltpu.CompilerParams(
            dimension_semantics=("parallel",), vmem_limit_bytes=_vmem_limit()),
    )(hp, wp_, wh, ww)
    return h_out[:n], w_out[:n]


def _pool_reweight(h, w, c, rw1, rb1, rw2_cat, rb2_cat, thw):
    bsz, hw, cdim = h.shape
    cq = rw1.shape[1]
    kern = functools.partial(_pool_reweight_kernel, inv_hw=1.0 / hw)
    return pl.pallas_call(
        kern,
        out_shape=jax.ShapeDtypeStruct((bsz, 3, cdim), _F32),
        grid=(bsz, hw // thw),
        in_specs=[pl.BlockSpec((1, thw, cdim), lambda b, k: (b, k, 0)),
                  pl.BlockSpec((1, thw, cdim), lambda b, k: (b, k, 0)),
                  pl.BlockSpec((1, thw, cdim), lambda b, k: (b, k, 0)),
                  pl.BlockSpec((cdim, cq), lambda b, k: (0, 0)),
                  pl.BlockSpec((1, cq), lambda b, k: (0, 0)),
                  pl.BlockSpec((cq, 3 * cdim), lambda b, k: (0, 0)),
                  pl.BlockSpec((1, 3 * cdim), lambda b, k: (0, 0))],
        out_specs=pl.BlockSpec((1, 3, cdim), lambda b, k: (b, 0, 0)),
        scratch_shapes=[pltpu.VMEM((1, cdim), _F32)],
        compiler_params=pltpu.CompilerParams(
            dimension_semantics=("parallel", "arbitrary"),
            vmem_limit_bytes=_vmem_limit()),
    )(h, w, c, rw1, rb1, rw2_cat, rb2_cat)


def _combine_proj_residual(h, w, c, x, a, wp, bp, skip_lam, thw):
    bsz, hw, cdim = h.shape
    kern = functools.partial(_combine_proj_residual_kernel,
                             inv_skip_lam=1.0 / skip_lam)
    return pl.pallas_call(
        kern,
        out_shape=jax.ShapeDtypeStruct((bsz, hw, cdim), x.dtype),
        grid=(bsz, hw // thw),
        in_specs=[pl.BlockSpec((1, thw, cdim), lambda b, k: (b, k, 0)),
                  pl.BlockSpec((1, thw, cdim), lambda b, k: (b, k, 0)),
                  pl.BlockSpec((1, thw, cdim), lambda b, k: (b, k, 0)),
                  pl.BlockSpec((1, thw, cdim), lambda b, k: (b, k, 0)),
                  pl.BlockSpec((1, 3, cdim), lambda b, k: (b, 0, 0)),
                  pl.BlockSpec((cdim, cdim), lambda b, k: (0, 0)),
                  pl.BlockSpec((1, cdim), lambda b, k: (0, 0))],
        out_specs=pl.BlockSpec((1, thw, cdim), lambda b, k: (b, k, 0)),
        compiler_params=pltpu.CompilerParams(
            dimension_semantics=("parallel", "parallel"),
            vmem_limit_bytes=_vmem_limit()),
    )(h, w, c, x, a, wp, bp)


def _ln2_mlp_residual(x, g, b, w1, b1, w2, b2, skip_lam):
    n, cdim = x.shape
    hidden = w1.shape[1]
    t = _row_tile(n)
    xp = _pad_rows(x, t)
    npad = xp.shape[0]
    kc = hidden
    for cand in (512, 256, 128):
        if hidden % cand == 0:
            kc = cand
            break
    kern = functools.partial(_ln2_mlp_residual_kernel, inv_skip_lam=1.0 / skip_lam)
    out = pl.pallas_call(
        kern,
        out_shape=jax.ShapeDtypeStruct((npad, cdim), x.dtype),
        grid=(npad // t, hidden // kc),
        in_specs=[pl.BlockSpec((t, cdim), lambda i, k: (i, 0)),
                  pl.BlockSpec((1, cdim), lambda i, k: (0, 0)),
                  pl.BlockSpec((1, cdim), lambda i, k: (0, 0)),
                  pl.BlockSpec((cdim, kc), lambda i, k: (0, k)),
                  pl.BlockSpec((1, kc), lambda i, k: (0, k)),
                  pl.BlockSpec((kc, cdim), lambda i, k: (k, 0)),
                  pl.BlockSpec((1, cdim), lambda i, k: (0, 0))],
        out_specs=pl.BlockSpec((t, cdim), lambda i, k: (i, 0)),
        scratch_shapes=[pltpu.VMEM((t, cdim), _BF16),
                        pltpu.VMEM((t, cdim), _F32)],
        compiler_params=pltpu.CompilerParams(
            dimension_semantics=("parallel", "arbitrary"),
            vmem_limit_bytes=_vmem_limit()),
    )(xp, g, b, w1, b1, w2, b2)
    return out[:n]


# ----------------------------------------------------------------------------
# PermutatorBlock forward (Pallas version)
# ----------------------------------------------------------------------------
def permutator_block(x, p, segment_dim, skip_lam=1.0):
    B, H, W, C = x.shape
    S = C // segment_dim
    assert segment_dim * S == C and H * S == C and W * S == C, \
        "WeightedPermuteMLP requires H == W == segment_dim (H*S == C)"
    N = B * H * W
    HW = H * W

    # ---- attn branch: x + WeightedPermuteMLP(LN(x)) / skip_lam ----
    xn, c = _ln1_c(x.reshape(N, C), p["ln1_g"], p["ln1_b"], p["Wc"])   # xn, c in bf16
    xr = xn.reshape(B, H, W, segment_dim, S)

    # TODO(synk): permutes stay in XLA (pure layout); in-kernel S=8 lane-splitting reshape
    # is a Mosaic lowering risk.  h/w matmuls are fused into a single pallas_call.
    h_in = jnp.transpose(xr, (0, 3, 2, 1, 4)).reshape(N, C)
    w_in = jnp.transpose(xr, (0, 1, 3, 2, 4)).reshape(N, C)
    h_p, w_p = _hw_matmul(h_in, w_in, p["Wh"], p["Ww"])
    h = jnp.transpose(h_p.reshape(B, segment_dim, W, H, S),
                      (0, 3, 2, 1, 4)).reshape(B, HW, C)
    w = jnp.transpose(w_p.reshape(B, H, segment_dim, W, S),
                      (0, 1, 3, 2, 4)).reshape(B, HW, C)
    c3 = c.reshape(B, HW, C)

    # pooled mean + reweight MLP + softmax (HW-tiled accumulation), then the HW-tiled
    # combine + proj + residual — blocks stay small enough for v7x's 64 MiB VMEM.
    thw = _hw_tile(HW, B)
    a = _pool_reweight(h, w, c3, p["rw1"], p["rb1"], p["rw2_cat"], p["rb2_cat"], thw)
    x1 = _combine_proj_residual(h, w, c3, x.reshape(B, HW, C), a,
                                p["Wp"], p["bp"], skip_lam, thw)

    # ---- mlp branch: x + Mlp(LN(x)) / skip_lam (fused, hidden-dim tiled) ----
    x2 = _ln2_mlp_residual(x1.reshape(N, C), p["ln2_g"], p["ln2_b"],
                           p["Wf1"], p["bf1"], p["Wf2"], p["bf2"], skip_lam)
    return x2.reshape(B, H, W, C)


# ----------------------------------------------------------------------------
# Pure-JAX reference (same bf16 cast points as the kernels) for the sanity check
# ----------------------------------------------------------------------------
def reference_forward(x, p, segment_dim, skip_lam=1.0):
    def ln(v, g, b):
        mu = v.mean(-1, keepdims=True)
        var = ((v - mu) ** 2).mean(-1, keepdims=True)
        return (v - mu) * jax.lax.rsqrt(var + LN_EPS) * g[0] + b[0]

    def bdot(a, w):
        return jnp.dot(a.astype(_BF16), w.astype(_BF16), preferred_element_type=_F32)

    B, H, W, C = x.shape
    S = C // segment_dim
    x32 = x.astype(_F32)

    xn = ln(x32, p["ln1_g"], p["ln1_b"]).astype(_BF16)
    c = bdot(xn, p["Wc"]).astype(_BF16).astype(_F32)

    xr = xn.reshape(B, H, W, segment_dim, S)
    h = bdot(jnp.transpose(xr, (0, 3, 2, 1, 4)).reshape(B, segment_dim, W, H * S),
             p["Wh"]).astype(_BF16)
    h = jnp.transpose(h.reshape(B, segment_dim, W, H, S),
                      (0, 3, 2, 1, 4)).reshape(B, H, W, C).astype(_F32)
    w = bdot(jnp.transpose(xr, (0, 1, 3, 2, 4)).reshape(B, H, segment_dim, W * S),
             p["Ww"]).astype(_BF16)
    w = jnp.transpose(w.reshape(B, H, segment_dim, W, S),
                      (0, 1, 3, 2, 4)).reshape(B, H, W, C).astype(_F32)

    a = (h + w + c).mean(axis=(1, 2))                                # (B, C)
    a = _gelu(bdot(a, p["rw1"]) + p["rb1"])
    a = bdot(a, p["rw2_full"]) + p["rb2_full"]
    a = jax.nn.softmax(a.reshape(B, C, 3), axis=-1)
    attn = (h * a[..., 0][:, None, None, :] + w * a[..., 1][:, None, None, :]
            + c * a[..., 2][:, None, None, :])
    attn = bdot(attn, p["Wp"]) + p["bp"][0]
    x1 = x32 + attn / skip_lam

    y = ln(x1, p["ln2_g"], p["ln2_b"])
    hid = _gelu(bdot(y, p["Wf1"]) + p["bf1"][0]).astype(_BF16)
    y = jnp.dot(hid, p["Wf2"].astype(_BF16), preferred_element_type=_F32) + p["bf2"][0]
    return x1 + y / skip_lam


# ----------------------------------------------------------------------------
# Deterministic parameter init (matmul weights stored in bf16 once, biases/LN in f32)
# ----------------------------------------------------------------------------
def init_params(key, dim, mlp_ratio=4):
    C, Cq, Hd = dim, dim // 4, dim * mlp_ratio
    ks = jax.random.split(key, 13)
    std = 0.02

    def w(k, shape):
        return (std * jax.random.normal(k, shape)).astype(_F32)

    rw2 = w(ks[11], (Cq, 3 * C))
    rb2 = w(ks[12], (3 * C,))
    # PyTorch column j of reweight.fc2 feeds (channel j//3, branch j%3); re-pack branch-major
    # so the kernel does one (Cq, 3C) dot and takes lane-aligned C-wide slices.
    rw2_cat = jnp.concatenate([rw2[:, k::3] for k in range(3)], axis=1)       # (Cq, 3C)
    rb2_cat = jnp.concatenate([rb2[k::3] for k in range(3)], axis=0)[None, :]  # (1, 3C)

    p = {
        "ln1_g": jnp.ones((1, C), _F32), "ln1_b": jnp.zeros((1, C), _F32),
        "Wh": w(ks[0], (C, C)).astype(_BF16),
        "Ww": w(ks[1], (C, C)).astype(_BF16),
        "Wc": w(ks[2], (C, C)).astype(_BF16),
        "rw1": w(ks[3], (C, Cq)).astype(_BF16), "rb1": w(ks[4], (1, Cq)),
        "Wp": w(ks[5], (C, C)).astype(_BF16), "bp": w(ks[6], (1, C)),
        "ln2_g": jnp.ones((1, C), _F32), "ln2_b": jnp.zeros((1, C), _F32),
        "Wf1": w(ks[7], (C, Hd)).astype(_BF16), "bf1": w(ks[8], (1, Hd)),
        "Wf2": w(ks[9], (Hd, C)).astype(_BF16), "bf2": w(ks[10], (1, C)),
        "rw2_full": rw2, "rb2_full": rb2,
        "rw2_cat": rw2_cat.astype(_BF16), "rb2_cat": rb2_cat,
    }
    return p


if __name__ == "__main__":
    # Lane-dense channels (C multiple of 128); H == W == segment_dim as the module requires.
    B, HW, SEG, C = 2, 16, 16, 128          # S = C // SEG = 8, H*S == C
    key = jax.random.PRNGKey(0)
    kx, kp = jax.random.split(key)
    x = jax.random.normal(kx, (B, HW, HW, C), dtype=_F32)
    params = init_params(kp, C, mlp_ratio=4)

    fwd = jax.jit(functools.partial(permutator_block, segment_dim=SEG, skip_lam=1.0))
    out = jax.block_until_ready(fwd(x, params))

    ref = jax.block_until_ready(
        reference_forward(x, params, segment_dim=SEG, skip_lam=1.0))

    assert out.shape == x.shape and out.dtype == x.dtype
    assert bool(jnp.all(jnp.isfinite(out)))
    max_err = float(jnp.max(jnp.abs(out - ref)))
    assert bool(jnp.allclose(out, ref, atol=2e-3, rtol=2e-3)), max_err
    print("KERNEL_OK")
</pallas_src>

<mosaic_0001>
module attributes {stable_mosaic.version = 11 : i64} {
  func.func @_ln1_c_kernel(%arg0: i32, %arg1: memref<64x128xf32, #tpu.memory_space<vmem>>, %arg2: memref<1x128xf32, #tpu.memory_space<vmem>>, %arg3: memref<1x128xf32, #tpu.memory_space<vmem>>, %arg4: memref<128x128xbf16, #tpu.memory_space<vmem>>, %arg5: memref<64x128xbf16, #tpu.memory_space<vmem>>, %arg6: memref<64x128xbf16, #tpu.memory_space<vmem>>) attributes {dimension_semantics = [#tpu.dimension_semantics<parallel>], iteration_bounds = array<i64: 8>, scalar_prefetch = 0 : i64, scratch_operands = 0 : i64, tpu.core_type = #tpu.core_type<tc>, window_params = [{transform_indices = @transform_0, window_bounds = array<i64: 64, 128>}, {pipeline_mode = #tpu.pipeline_mode<synchronous>, transform_indices = @transform_1, window_bounds = array<i64: 1, 128>}, {pipeline_mode = #tpu.pipeline_mode<synchronous>, transform_indices = @transform_2, window_bounds = array<i64: 1, 128>}, {pipeline_mode = #tpu.pipeline_mode<synchronous>, transform_indices = @transform_3, window_bounds = array<i64: 128, 128>}, {transform_indices = @transform_4, window_bounds = array<i64: 64, 128>}, {transform_indices = @transform_5, window_bounds = array<i64: 64, 128>}]} {
    %c0 = arith.constant 0 : index
    %c0_0 = arith.constant 0 : index
    %0 = vector.load %arg1[%c0, %c0_0] : memref<64x128xf32, #tpu.memory_space<vmem>>, vector<64x128xf32>
    %cst = arith.constant dense<0.000000e+00> : vector<64xf32>
    %1 = vector.multi_reduction <add>, %0, %cst [1] : vector<64x128xf32> to vector<64xf32>
    %2 = vector.shape_cast %1 : vector<64xf32> to vector<64x1xf32>
    %cst_1 = arith.constant 1.280000e+02 : f32
    %3 = vector.broadcast %cst_1 : f32 to vector<64x1xf32>
    %4 = arith.divf %2, %3 : vector<64x1xf32>
    %5 = vector.broadcast %4 : vector<64x1xf32> to vector<64x128xf32>
    %6 = arith.subf %0, %5 : vector<64x128xf32>
    %7 = arith.mulf %6, %6 : vector<64x128xf32>
    %cst_2 = arith.constant dense<0.000000e+00> : vector<64xf32>
    %8 = vector.multi_reduction <add>, %7, %cst_2 [1] : vector<64x128xf32> to vector<64xf32>
    %9 = vector.shape_cast %8 : vector<64xf32> to vector<64x1xf32>
    %cst_3 = arith.constant 1.280000e+02 : f32
    %10 = vector.broadcast %cst_3 : f32 to vector<64x1xf32>
    %11 = arith.divf %9, %10 : vector<64x1xf32>
    %12 = vector.broadcast %4 : vector<64x1xf32> to vector<64x128xf32>
    %13 = arith.subf %0, %12 : vector<64x128xf32>
    %cst_4 = arith.constant 9.99999974E-6 : f32
    %14 = vector.broadcast %cst_4 : f32 to vector<64x1xf32>
    %15 = arith.addf %11, %14 : vector<64x1xf32>
    %16 = math.rsqrt %15 : vector<64x1xf32>
    %17 = vector.broadcast %16 : vector<64x1xf32> to vector<64x128xf32>
    %18 = arith.mulf %13, %17 : vector<64x128xf32>
    %c0_5 = arith.constant 0 : index
    %c0_6 = arith.constant 0 : index
    %19 = vector.load %arg2[%c0_5, %c0_6] : memref<1x128xf32, #tpu.memory_space<vmem>>, vector<1x128xf32>
    %20 = vector.broadcast %19 : vector<1x128xf32> to vector<64x128xf32>
    %21 = arith.mulf %18, %20 : vector<64x128xf32>
    %c0_7 = arith.constant 0 : index
    %c0_8 = arith.constant 0 : index
    %22 = vector.load %arg3[%c0_7, %c0_8] : memref<1x128xf32, #tpu.memory_space<vmem>>, vector<1x128xf32>
    %23 = vector.broadcast %22 : vector<1x128xf32> to vector<64x128xf32>
    %24 = arith.addf %21, %23 : vector<64x128xf32>
    %25 = arith.truncf %24 : vector<64x128xf32> to vector<64x128xbf16>
    %c0_9 = arith.constant 0 : index
    %c0_10 = arith.constant 0 : index
    %26 = vector.load %arg5[%c0_9, %c0_10] : memref<64x128xbf16, #tpu.memory_space<vmem>>, vector<64x128xbf16>
    tpu.vector_store %arg5[%c0_9, %c0_10], %25 {strides = array<i32>} : memref<64x128xbf16, #tpu.memory_space<vmem>>, vector<64x128xbf16>,
    %c0_11 = arith.constant 0 : index
    %c0_12 = arith.constant 0 : index
    %27 = vector.load %arg4[%c0_11, %c0_12] : memref<128x128xbf16, #tpu.memory_space<vmem>>, vector<128x128xbf16>
    %cst_13 = arith.constant dense<0.000000e+00> : vector<64x128xf32>
    %28 = tpu.matmul %25, %27, %cst_13 {dimension_numbers = #tpu.dot_dimension_numbers<[1], [0], [0], [1], [0, 0, 1, 1], [], []>} : vector<64x128xbf16>, vector<128x128xbf16>, vector<64x128xf32> -> vector<64x128xf32>
    %29 = arith.truncf %28 : vector<64x128xf32> to vector<64x128xbf16>
    %c0_14 = arith.constant 0 : index
    %c0_15 = arith.constant 0 : index
    %30 = vector.load %arg6[%c0_14, %c0_15] : memref<64x128xbf16, #tpu.memory_space<vmem>>, vector<64x128xbf16>
    tpu.vector_store %arg6[%c0_14, %c0_15], %29 {strides = array<i32>} : memref<64x128xbf16, #tpu.memory_space<vmem>>, vector<64x128xbf16>,
    return
  }
  func.func @transform_0(%arg0: i32) -> (i32, i32) {
    %c0_i32 = arith.constant 0 : i32
    %c0_i32_0 = arith.constant 0 : i32
    return %arg0, %c0_i32 : i32, i32
  }
  func.func @transform_1(%arg0: i32) -> (i32, i32) {
    %c0_i32 = arith.constant 0 : i32
    %c0_i32_0 = arith.constant 0 : i32
    %c0_i32_1 = arith.constant 0 : i32
    return %c0_i32, %c0_i32_0 : i32, i32
  }
  func.func @transform_2(%arg0: i32) -> (i32, i32) {
    %c0_i32 = arith.constant 0 : i32
    %c0_i32_0 = arith.constant 0 : i32
    %c0_i32_1 = arith.constant 0 : i32
    return %c0_i32, %c0_i32_0 : i32, i32
  }
  func.func @transform_3(%arg0: i32) -> (i32, i32) {
    %c0_i32 = arith.constant 0 : i32
    %c0_i32_0 = arith.constant 0 : i32
    %c0_i32_1 = arith.constant 0 : i32
    return %c0_i32, %c0_i32_0 : i32, i32
  }
  func.func @transform_4(%arg0: i32) -> (i32, i32) {
    %c0_i32 = arith.constant 0 : i32
    %c0_i32_0 = arith.constant 0 : i32
    return %arg0, %c0_i32 : i32, i32
  }
  func.func @transform_5(%arg0: i32) -> (i32, i32) {
    %c0_i32 = arith.constant 0 : i32
    %c0_i32_0 = arith.constant 0 : i32
    return %arg0, %c0_i32 : i32, i32
  }
}

module attributes {stable_mosaic.version = 11 : i64} {
  func.func @_hw_matmul_kernel(%arg0: i32, %arg1: memref<64x128xbf16, #tpu.memory_space<vmem>>, %arg2: memref<64x128xbf16, #tpu.memory_space<vmem>>, %arg3: memref<128x128xbf16, #tpu.memory_space<vmem>>, %arg4: memref<128x128xbf16, #tpu.memory_space<vmem>>, %arg5: memref<64x128xbf16, #tpu.memory_space<vmem>>, %arg6: memref<64x128xbf16, #tpu.memory_space<vmem>>) attributes {dimension_semantics = [#tpu.dimension_semantics<parallel>], iteration_bounds = array<i64: 8>, scalar_prefetch = 0 : i64, scratch_operands = 0 : i64, tpu.core_type = #tpu.core_type<tc>, window_params = [{transform_indices = @transform_0, window_bounds = array<i64: 64, 128>}, {transform_indices = @transform_1, window_bounds = array<i64: 64, 128>}, {pipeline_mode = #tpu.pipeline_mode<synchronous>, transform_indices = @transform_2, window_bounds = array<i64: 128, 128>}, {pipeline_mode = #tpu.pipeline_mode<synchronous>, transform_indices = @transform_3, window_bounds = array<i64: 128, 128>}, {transform_indices = @transform_4, window_bounds = array<i64: 64, 128>}, {transform_indices = @transform_5, window_bounds = array<i64: 64, 128>}]} {
    %c0 = arith.constant 0 : index
    %c0_0 = arith.constant 0 : index
    %0 = vector.load %arg1[%c0, %c0_0] : memref<64x128xbf16, #tpu.memory_space<vmem>>, vector<64x128xbf16>
    %c0_1 = arith.constant 0 : index
    %c0_2 = arith.constant 0 : index
    %1 = vector.load %arg3[%c0_1, %c0_2] : memref<128x128xbf16, #tpu.memory_space<vmem>>, vector<128x128xbf16>
    %cst = arith.constant dense<0.000000e+00> : vector<64x128xf32>
    %2 = tpu.matmul %0, %1, %cst {dimension_numbers = #tpu.dot_dimension_numbers<[1], [0], [0], [1], [0, 0, 1, 1], [], []>} : vector<64x128xbf16>, vector<128x128xbf16>, vector<64x128xf32> -> vector<64x128xf32>
    %3 = arith.truncf %2 : vector<64x128xf32> to vector<64x128xbf16>
    %c0_3 = arith.constant 0 : index
    %c0_4 = arith.constant 0 : index
    %4 = vector.load %arg5[%c0_3, %c0_4] : memref<64x128xbf16, #tpu.memory_space<vmem>>, vector<64x128xbf16>
    tpu.vector_store %arg5[%c0_3, %c0_4], %3 {strides = array<i32>} : memref<64x128xbf16, #tpu.memory_space<vmem>>, vector<64x128xbf16>,
    %c0_5 = arith.constant 0 : index
    %c0_6 = arith.constant 0 : index
    %5 = vector.load %arg2[%c0_5, %c0_6] : memref<64x128xbf16, #tpu.memory_space<vmem>>, vector<64x128xbf16>
    %c0_7 = arith.constant 0 : index
    %c0_8 = arith.constant 0 : index
    %6 = vector.load %arg4[%c0_7, %c0_8] : memref<128x128xbf16, #tpu.memory_space<vmem>>, vector<128x128xbf16>
    %cst_9 = arith.constant dense<0.000000e+00> : vector<64x128xf32>
    %7 = tpu.matmul %5, %6, %cst_9 {dimension_numbers = #tpu.dot_dimension_numbers<[1], [0], [0], [1], [0, 0, 1, 1], [], []>} : vector<64x128xbf16>, vector<128x128xbf16>, vector<64x128xf32> -> vector<64x128xf32>
    %8 = arith.truncf %7 : vector<64x128xf32> to vector<64x128xbf16>
    %c0_10 = arith.constant 0 : index
    %c0_11 = arith.constant 0 : index
    %9 = vector.load %arg6[%c0_10, %c0_11] : memref<64x128xbf16, #tpu.memory_space<vmem>>, vector<64x128xbf16>
    tpu.vector_store %arg6[%c0_10, %c0_11], %8 {strides = array<i32>} : memref<64x128xbf16, #tpu.memory_space<vmem>>, vector<64x128xbf16>,
    return
  }
  func.func @transform_0(%arg0: i32) -> (i32, i32) {
    %c0_i32 = arith.constant 0 : i32
    %c0_i32_0 = arith.constant 0 : i32
    return %arg0, %c0_i32 : i32, i32
  }
  func.func @transform_1(%arg0: i32) -> (i32, i32) {
    %c0_i32 = arith.constant 0 : i32
    %c0_i32_0 = arith.constant 0 : i32
    return %arg0, %c0_i32 : i32, i32
  }
  func.func @transform_2(%arg0: i32) -> (i32, i32) {
    %c0_i32 = arith.constant 0 : i32
    %c0_i32_0 = arith.constant 0 : i32
    %c0_i32_1 = arith.constant 0 : i32
    return %c0_i32, %c0_i32_0 : i32, i32
  }
  func.func @transform_3(%arg0: i32) -> (i32, i32) {
    %c0_i32 = arith.constant 0 : i32
    %c0_i32_0 = arith.constant 0 : i32
    %c0_i32_1 = arith.constant 0 : i32
    return %c0_i32, %c0_i32_0 : i32, i32
  }
  func.func @transform_4(%arg0: i32) -> (i32, i32) {
    %c0_i32 = arith.constant 0 : i32
    %c0_i32_0 = arith.constant 0 : i32
    return %arg0, %c0_i32 : i32, i32
  }
  func.func @transform_5(%arg0: i32) -> (i32, i32) {
    %c0_i32 = arith.constant 0 : i32
    %c0_i32_0 = arith.constant 0 : i32
    return %arg0, %c0_i32 : i32, i32
  }
}

module attributes {stable_mosaic.version = 11 : i64} {
  func.func @_pool_reweight_kernel(%arg0: i32, %arg1: i32, %arg2: memref<1x64x128xbf16, #tpu.memory_space<vmem>>, %arg3: memref<1x64x128xbf16, #tpu.memory_space<vmem>>, %arg4: memref<1x64x128xbf16, #tpu.memory_space<vmem>>, %arg5: memref<128x32xbf16, #tpu.memory_space<vmem>>, %arg6: memref<1x32xf32, #tpu.memory_space<vmem>>, %arg7: memref<32x384xbf16, #tpu.memory_space<vmem>>, %arg8: memref<1x384xf32, #tpu.memory_space<vmem>>, %arg9: memref<1x3x128xf32, #tpu.memory_space<vmem>>, %arg10: memref<1x128xf32, #tpu.memory_space<vmem>>) attributes {dimension_semantics = [#tpu.dimension_semantics<parallel>, #tpu.dimension_semantics<arbitrary>], iteration_bounds = array<i64: 2, 4>, scalar_prefetch = 0 : i64, scratch_operands = 1 : i64, tpu.core_type = #tpu.core_type<tc>, window_params = [{transform_indices = @transform_0, window_bounds = array<i64: 1, 64, 128>}, {transform_indices = @transform_1, window_bounds = array<i64: 1, 64, 128>}, {transform_indices = @transform_2, window_bounds = array<i64: 1, 64, 128>}, {pipeline_mode = #tpu.pipeline_mode<synchronous>, transform_indices = @transform_3, window_bounds = array<i64: 128, 32>}, {pipeline_mode = #tpu.pipeline_mode<synchronous>, transform_indices = @transform_4, window_bounds = array<i64: 1, 32>}, {pipeline_mode = #tpu.pipeline_mode<synchronous>, transform_indices = @transform_5, window_bounds = array<i64: 32, 384>}, {pipeline_mode = #tpu.pipeline_mode<synchronous>, transform_indices = @transform_6, window_bounds = array<i64: 1, 384>}, {transform_indices = @transform_7, window_bounds = array<i64: 1, 3, 128>}]} {
    %c0_i32 = arith.constant 0 : i32
    %0 = arith.cmpi eq, %arg1, %c0_i32 : i32
    %1 = arith.extui %0 : i1 to i32
    %c0_i32_0 = arith.constant 0 : i32
    %2 = arith.cmpi ne, %1, %c0_i32_0 : i32
    scf.if %2 {
      %cst_14 = arith.constant 0.000000e+00 : f32
      %22 = vector.broadcast %cst_14 : f32 to vector<1x128xf32>
      %c0_15 = arith.constant 0 : index
      %c0_16 = arith.constant 0 : index
      %23 = vector.load %arg10[%c0_15, %c0_16] : memref<1x128xf32, #tpu.memory_space<vmem>>, vector<1x128xf32>
      tpu.vector_store %arg10[%c0_15, %c0_16], %22 {strides = array<i32>} : memref<1x128xf32, #tpu.memory_space<vmem>>, vector<1x128xf32>,
    } else {
    }
    %c0 = arith.constant 0 : index
    %c0_1 = arith.constant 0 : index
    %c0_2 = arith.constant 0 : index
    %3 = vector.load %arg2[%c0, %c0_1, %c0_2] : memref<1x64x128xbf16, #tpu.memory_space<vmem>>, vector<1x64x128xbf16>
    %4 = vector.shape_cast %3 : vector<1x64x128xbf16> to vector<64x128xbf16>
    %5 = arith.extf %4 : vector<64x128xbf16> to vector<64x128xf32>
    %c0_3 = arith.constant 0 : index
    %c0_4 = arith.constant 0 : index
    %c0_5 = arith.constant 0 : index
    %6 = vector.load %arg3[%c0_3, %c0_4, %c0_5] : memref<1x64x128xbf16, #tpu.memory_space<vmem>>, vector<1x64x128xbf16>
    %7 = vector.shape_cast %6 : vector<1x64x128xbf16> to vector<64x128xbf16>
    %8 = arith.extf %7 : vector<64x128xbf16> to vector<64x128xf32>
    %9 = arith.addf %5, %8 : vector<64x128xf32>
    %c0_6 = arith.constant 0 : index
    %c0_7 = arith.constant 0 : index
    %c0_8 = arith.constant 0 : index
    %10 = vector.load %arg4[%c0_6, %c0_7, %c0_8] : memref<1x64x128xbf16, #tpu.memory_space<vmem>>, vector<1x64x128xbf16>
    %11 = vector.shape_cast %10 : vector<1x64x128xbf16> to vector<64x128xbf16>
    %12 = arith.extf %11 : vector<64x128xbf16> to vector<64x128xf32>
    %13 = arith.addf %9, %12 : vector<64x128xf32>
    %c0_9 = arith.constant 0 : index
    %c0_10 = arith.constant 0 : index
    %14 = vector.load %arg10[%c0_9, %c0_10] : memref<1x128xf32, #tpu.memory_space<vmem>>, vector<1x128xf32>
    %cst = arith.constant dense<0.000000e+00> : vector<128xf32>
    %15 = vector.multi_reduction <add>, %13, %cst [0] : vector<64x128xf32> to vector<128xf32>
    %16 = vector.shape_cast %15 : vector<128xf32> to vector<1x128xf32>
    %17 = arith.addf %14, %16 : vector<1x128xf32>
    %c0_11 = arith.constant 0 : index
    %c0_12 = arith.constant 0 : index
    %18 = vector.load %arg10[%c0_11, %c0_12] : memref<1x128xf32, #tpu.memory_space<vmem>>, vector<1x128xf32>
    tpu.vector_store %arg10[%c0_11, %c0_12], %17 {strides = array<i32>} : memref<1x128xf32, #tpu.memory_space<vmem>>, vector<1x128xf32>,
    %c3_i32 = arith.constant 3 : i32
    %19 = arith.cmpi eq, %arg1, %c3_i32 : i32
    %20 = arith.extui %19 : i1 to i32
    %c0_i32_13 = arith.constant 0 : i32
    %21 = arith.cmpi ne, %20, %c0_i32_13 : i32
    scf.if %21 {
      %c0_14 = arith.constant 0 : index
      %c0_15 = arith.constant 0 : index
      %22 = vector.load %arg10[%c0_14, %c0_15] : memref<1x128xf32, #tpu.memory_space<vmem>>, vector<1x128xf32>
      %cst_16 = arith.constant 3.906250e-03 : f32
      %23 = vector.broadcast %cst_16 : f32 to vector<1x128xf32>
      %24 = arith.mulf %22, %23 : vector<1x128xf32>
      %25 = arith.truncf %24 : vector<1x128xf32> to vector<1x128xbf16>
      %c0_17 = arith.constant 0 : index
      %c0_18 = arith.constant 0 : index
      %26 = vector.load %arg5[%c0_17, %c0_18] : memref<128x32xbf16, #tpu.memory_space<vmem>>, vector<128x32xbf16>
      %cst_19 = arith.constant dense<0.000000e+00> : vector<1x32xf32>
      %27 = tpu.matmul %25, %26, %cst_19 {dimension_numbers = #tpu.dot_dimension_numbers<[1], [0], [0], [1], [0, 0, 1, 1], [], []>} : vector<1x128xbf16>, vector<128x32xbf16>, vector<1x32xf32> -> vector<1x32xf32>
      %c0_20 = arith.constant 0 : index
      %c0_21 = arith.constant 0 : index
      %28 = vector.load %arg6[%c0_20, %c0_21] : memref<1x32xf32, #tpu.memory_space<vmem>>, vector<1x32xf32>
      %29 = arith.addf %27, %28 : vector<1x32xf32>
      %cst_22 = arith.constant 5.000000e-01 : f32
      %30 = vector.broadcast %cst_22 : f32 to vector<1x32xf32>
      %31 = arith.mulf %30, %29 : vector<1x32xf32>
      %cst_23 = arith.constant 0.707106769 : f32
      %32 = vector.broadcast %cst_23 : f32 to vector<1x32xf32>
      %33 = arith.mulf %29, %32 : vector<1x32xf32>
      %34 = math.erf %33 : vector<1x32xf32>
      %cst_24 = arith.constant 1.000000e+00 : f32
      %35 = vector.broadcast %cst_24 : f32 to vector<1x32xf32>
      %36 = arith.addf %35, %34 : vector<1x32xf32>
      %37 = arith.mulf %31, %36 : vector<1x32xf32>
      %38 = arith.truncf %37 : vector<1x32xf32> to vector<1x32xbf16>
      %c0_25 = arith.constant 0 : index
      %c0_26 = arith.constant 0 : index
      %39 = vector.load %arg7[%c0_25, %c0_26] : memref<32x384xbf16, #tpu.memory_space<vmem>>, vector<32x384xbf16>
      %cst_27 = arith.constant dense<0.000000e+00> : vector<1x384xf32>
      %40 = tpu.matmul %38, %39, %cst_27 {dimension_numbers = #tpu.dot_dimension_numbers<[1], [0], [0], [1], [0, 0, 1, 1], [], []>} : vector<1x32xbf16>, vector<32x384xbf16>, vector<1x384xf32> -> vector<1x384xf32>
      %c0_28 = arith.constant 0 : index
      %c0_29 = arith.constant 0 : index
      %41 = vector.load %arg8[%c0_28, %c0_29] : memref<1x384xf32, #tpu.memory_space<vmem>>, vector<1x384xf32>
      %42 = arith.addf %40, %41 : vector<1x384xf32>
      %43 = vector.extract_strided_slice %42 {offsets = [0, 0], sizes = [1, 128], strides = [1, 1]} : vector<1x384xf32> to vector<1x128xf32>
      %44 = vector.extract_strided_slice %42 {offsets = [0, 128], sizes = [1, 128], strides = [1, 1]} : vector<1x384xf32> to vector<1x128xf32>
      %45 = vector.extract_strided_slice %42 {offsets = [0, 256], sizes = [1, 128], strides = [1, 1]} : vector<1x384xf32> to vector<1x128xf32>
      %46 = arith.maximumf %43, %44 : vector<1x128xf32>
      %47 = arith.maximumf %46, %45 : vector<1x128xf32>
      %48 = arith.subf %43, %47 : vector<1x128xf32>
      %49 = math.exp %48 : vector<1x128xf32>
      %50 = arith.subf %44, %47 : vector<1x128xf32>
      %51 = math.exp %50 : vector<1x128xf32>
      %52 = arith.subf %45, %47 : vector<1x128xf32>
      %53 = math.exp %52 : vector<1x128xf32>
      %54 = arith.addf %49, %51 : vector<1x128xf32>
      %55 = arith.addf %54, %53 : vector<1x128xf32>
      %cst_30 = arith.constant 1.000000e+00 : f32
      %56 = vector.broadcast %cst_30 : f32 to vector<1x128xf32>
      %57 = arith.divf %56, %55 : vector<1x128xf32>
      %58 = arith.mulf %49, %57 : vector<1x128xf32>
      %59 = arith.mulf %51, %57 : vector<1x128xf32>
      %60 = arith.mulf %53, %57 : vector<1x128xf32>
      %61 = tpu.concatenate %58, %59, %60 in 0 : vector<1x128xf32>, vector<1x128xf32>, vector<1x128xf32> -> vector<3x128xf32>
      %c0_31 = arith.constant 0 : index
      %c0_32 = arith.constant 0 : index
      %c0_33 = arith.constant 0 : index
      %62 = vector.load %arg9[%c0_31, %c0_32, %c0_33] : memref<1x3x128xf32, #tpu.memory_space<vmem>>, vector<1x3x128xf32>
      %63 = vector.shape_cast %62 : vector<1x3x128xf32> to vector<3x128xf32>
      %64 = vector.shape_cast %61 : vector<3x128xf32> to vector<1x3x128xf32>
      tpu.vector_store %arg9[%c0_31, %c0_32, %c0_33], %64 {strides = array<i32>} : memref<1x3x128xf32, #tpu.memory_space<vmem>>, vector<1x3x128xf32>,
    } else {
    }
    return
  }
  func.func @transform_0(%arg0: i32, %arg1: i32) -> (i32, i32, i32) {
    %c0_i32 = arith.constant 0 : i32
    %c0_i32_0 = arith.constant 0 : i32
    return %arg0, %arg1, %c0_i32 : i32, i32, i32
  }
  func.func @transform_1(%arg0: i32, %arg1: i32) -> (i32, i32, i32) {
    %c0_i32 = arith.constant 0 : i32
    %c0_i32_0 = arith.constant 0 : i32
    return %arg0, %arg1, %c0_i32 : i32, i32, i32
  }
  func.func @transform_2(%arg0: i32, %arg1: i32) -> (i32, i32, i32) {
    %c0_i32 = arith.constant 0 : i32
    %c0_i32_0 = arith.constant 0 : i32
    return %arg0, %arg1, %c0_i32 : i32, i32, i32
  }
  func.func @transform_3(%arg0: i32, %arg1: i32) -> (i32, i32) {
    %c0_i32 = arith.constant 0 : i32
    %c0_i32_0 = arith.constant 0 : i32
    %c0_i32_1 = arith.constant 0 : i32
    return %c0_i32, %c0_i32_0 : i32, i32
  }
  func.func @transform_4(%arg0: i32, %arg1: i32) -> (i32, i32) {
    %c0_i32 = arith.constant 0 : i32
    %c0_i32_0 = arith.constant 0 : i32
    %c0_i32_1 = arith.constant 0 : i32
    return %c0_i32, %c0_i32_0 : i32, i32
  }
  func.func @transform_5(%arg0: i32, %arg1: i32) -> (i32, i32) {
    %c0_i32 = arith.constant 0 : i32
    %c0_i32_0 = arith.constant 0 : i32
    %c0_i32_1 = arith.constant 0 : i32
    return %c0_i32, %c0_i32_0 : i32, i32
  }
  func.func @transform_6(%arg0: i32, %arg1: i32) -> (i32, i32) {
    %c0_i32 = arith.constant 0 : i32
    %c0_i32_0 = arith.constant 0 : i32
    %c0_i32_1 = arith.constant 0 : i32
    return %c0_i32, %c0_i32_0 : i32, i32
  }
  func.func @transform_7(%arg0: i32, %arg1: i32) -> (i32, i32, i32) {
    %c0_i32 = arith.constant 0 : i32
    %c0_i32_0 = arith.constant 0 : i32
    %c0_i32_1 = arith.constant 0 : i32
    return %arg0, %c0_i32, %c0_i32_0 : i32, i32, i32
  }
}

module attributes {stable_mosaic.version = 11 : i64} {
  func.func @_combine_proj_residual_kernel(%arg0: i32, %arg1: i32, %arg2: memref<1x64x128xbf16, #tpu.memory_space<vmem>>, %arg3: memref<1x64x128xbf16, #tpu.memory_space<vmem>>, %arg4: memref<1x64x128xbf16, #tpu.memory_space<vmem>>, %arg5: memref<1x64x128xf32, #tpu.memory_space<vmem>>, %arg6: memref<1x3x128xf32, #tpu.memory_space<vmem>>, %arg7: memref<128x128xbf16, #tpu.memory_space<vmem>>, %arg8: memref<1x128xf32, #tpu.memory_space<vmem>>, %arg9: memref<1x64x128xf32, #tpu.memory_space<vmem>>) attributes {dimension_semantics = [#tpu.dimension_semantics<parallel>, #tpu.dimension_semantics<parallel>], iteration_bounds = array<i64: 2, 4>, scalar_prefetch = 0 : i64, scratch_operands = 0 : i64, tpu.core_type = #tpu.core_type<tc>, window_params = [{transform_indices = @transform_0, window_bounds = array<i64: 1, 64, 128>}, {transform_indices = @transform_1, window_bounds = array<i64: 1, 64, 128>}, {transform_indices = @transform_2, window_bounds = array<i64: 1, 64, 128>}, {transform_indices = @transform_3, window_bounds = array<i64: 1, 64, 128>}, {transform_indices = @transform_4, window_bounds = array<i64: 1, 3, 128>}, {pipeline_mode = #tpu.pipeline_mode<synchronous>, transform_indices = @transform_5, window_bounds = array<i64: 128, 128>}, {pipeline_mode = #tpu.pipeline_mode<synchronous>, transform_indices = @transform_6, window_bounds = array<i64: 1, 128>}, {transform_indices = @transform_7, window_bounds = array<i64: 1, 64, 128>}]} {
    %c0 = arith.constant 0 : index
    %c0_0 = arith.constant 0 : index
    %c0_1 = arith.constant 0 : index
    %0 = vector.load %arg6[%c0, %c0_0, %c0_1] : memref<1x3x128xf32, #tpu.memory_space<vmem>>, vector<1x3x128xf32>
    %1 = vector.shape_cast %0 : vector<1x3x128xf32> to vector<3x128xf32>
    %c0_2 = arith.constant 0 : index
    %c0_3 = arith.constant 0 : index
    %c0_4 = arith.constant 0 : index
    %2 = vector.load %arg2[%c0_2, %c0_3, %c0_4] : memref<1x64x128xbf16, #tpu.memory_space<vmem>>, vector<1x64x128xbf16>
    %3 = vector.shape_cast %2 : vector<1x64x128xbf16> to vector<64x128xbf16>
    %4 = arith.extf %3 : vector<64x128xbf16> to vector<64x128xf32>
    %5 = vector.extract_strided_slice %1 {offsets = [0, 0], sizes = [1, 128], strides = [1, 1]} : vector<3x128xf32> to vector<1x128xf32>
    %6 = vector.broadcast %5 : vector<1x128xf32> to vector<64x128xf32>
    %7 = arith.mulf %4, %6 : vector<64x128xf32>
    %c0_5 = arith.constant 0 : index
    %c0_6 = arith.constant 0 : index
    %c0_7 = arith.constant 0 : index
    %8 = vector.load %arg3[%c0_5, %c0_6, %c0_7] : memref<1x64x128xbf16, #tpu.memory_space<vmem>>, vector<1x64x128xbf16>
    %9 = vector.shape_cast %8 : vector<1x64x128xbf16> to vector<64x128xbf16>
    %10 = arith.extf %9 : vector<64x128xbf16> to vector<64x128xf32>
    %11 = vector.extract_strided_slice %1 {offsets = [1, 0], sizes = [1, 128], strides = [1, 1]} : vector<3x128xf32> to vector<1x128xf32>
    %12 = vector.broadcast %11 : vector<1x128xf32> to vector<64x128xf32>
    %13 = arith.mulf %10, %12 : vector<64x128xf32>
    %14 = arith.addf %7, %13 : vector<64x128xf32>
    %c0_8 = arith.constant 0 : index
    %c0_9 = arith.constant 0 : index
    %c0_10 = arith.constant 0 : index
    %15 = vector.load %arg4[%c0_8, %c0_9, %c0_10] : memref<1x64x128xbf16, #tpu.memory_space<vmem>>, vector<1x64x128xbf16>
    %16 = vector.shape_cast %15 : vector<1x64x128xbf16> to vector<64x128xbf16>
    %17 = arith.extf %16 : vector<64x128xbf16> to vector<64x128xf32>
    %18 = vector.extract_strided_slice %1 {offsets = [2, 0], sizes = [1, 128], strides = [1, 1]} : vector<3x128xf32> to vector<1x128xf32>
    %19 = vector.broadcast %18 : vector<1x128xf32> to vector<64x128xf32>
    %20 = arith.mulf %17, %19 : vector<64x128xf32>
    %21 = arith.addf %14, %20 : vector<64x128xf32>
    %22 = arith.truncf %21 : vector<64x128xf32> to vector<64x128xbf16>
    %c0_11 = arith.constant 0 : index
    %c0_12 = arith.constant 0 : index
    %23 = vector.load %arg7[%c0_11, %c0_12] : memref<128x128xbf16, #tpu.memory_space<vmem>>, vector<128x128xbf16>
    %cst = arith.constant dense<0.000000e+00> : vector<64x128xf32>
    %24 = tpu.matmul %22, %23, %cst {dimension_numbers = #tpu.dot_dimension_numbers<[1], [0], [0], [1], [0, 0, 1, 1], [], []>} : vector<64x128xbf16>, vector<128x128xbf16>, vector<64x128xf32> -> vector<64x128xf32>
    %c0_13 = arith.constant 0 : index
    %c0_14 = arith.constant 0 : index
    %25 = vector.load %arg8[%c0_13, %c0_14] : memref<1x128xf32, #tpu.memory_space<vmem>>, vector<1x128xf32>
    %26 = vector.broadcast %25 : vector<1x128xf32> to vector<64x128xf32>
    %27 = arith.addf %24, %26 : vector<64x128xf32>
    %c0_15 = arith.constant 0 : index
    %c0_16 = arith.constant 0 : index
    %c0_17 = arith.constant 0 : index
    %28 = vector.load %arg5[%c0_15, %c0_16, %c0_17] : memref<1x64x128xf32, #tpu.memory_space<vmem>>, vector<1x64x128xf32>
    %29 = vector.shape_cast %28 : vector<1x64x128xf32> to vector<64x128xf32>
    %cst_18 = arith.constant 1.000000e+00 : f32
    %30 = vector.broadcast %cst_18 : f32 to vector<64x128xf32>
    %31 = arith.mulf %27, %30 : vector<64x128xf32>
    %32 = arith.addf %29, %31 : vector<64x128xf32>
    %c0_19 = arith.constant 0 : index
    %c0_20 = arith.constant 0 : index
    %c0_21 = arith.constant 0 : index
    %33 = vector.load %arg9[%c0_19, %c0_20, %c0_21] : memref<1x64x128xf32, #tpu.memory_space<vmem>>, vector<1x64x128xf32>
    %34 = vector.shape_cast %33 : vector<1x64x128xf32> to vector<64x128xf32>
    %35 = vector.shape_cast %32 : vector<64x128xf32> to vector<1x64x128xf32>
    tpu.vector_store %arg9[%c0_19, %c0_20, %c0_21], %35 {strides = array<i32>} : memref<1x64x128xf32, #tpu.memory_space<vmem>>, vector<1x64x128xf32>,
    return
  }
  func.func @transform_0(%arg0: i32, %arg1: i32) -> (i32, i32, i32) {
    %c0_i32 = arith.constant 0 : i32
    %c0_i32_0 = arith.constant 0 : i32
    return %arg0, %arg1, %c0_i32 : i32, i32, i32
  }
  func.func @transform_1(%arg0: i32, %arg1: i32) -> (i32, i32, i32) {
    %c0_i32 = arith.constant 0 : i32
    %c0_i32_0 = arith.constant 0 : i32
    return %arg0, %arg1, %c0_i32 : i32, i32, i32
  }
  func.func @transform_2(%arg0: i32, %arg1: i32) -> (i32, i32, i32) {
    %c0_i32 = arith.constant 0 : i32
    %c0_i32_0 = arith.constant 0 : i32
    return %arg0, %arg1, %c0_i32 : i32, i32, i32
  }
  func.func @transform_3(%arg0: i32, %arg1: i32) -> (i32, i32, i32) {
    %c0_i32 = arith.constant 0 : i32
    %c0_i32_0 = arith.constant 0 : i32
    return %arg0, %arg1, %c0_i32 : i32, i32, i32
  }
  func.func @transform_4(%arg0: i32, %arg1: i32) -> (i32, i32, i32) {
    %c0_i32 = arith.constant 0 : i32
    %c0_i32_0 = arith.constant 0 : i32
    %c0_i32_1 = arith.constant 0 : i32
    return %arg0, %c0_i32, %c0_i32_0 : i32, i32, i32
  }
  func.func @transform_5(%arg0: i32, %arg1: i32) -> (i32, i32) {
    %c0_i32 = arith.constant 0 : i32
    %c0_i32_0 = arith.constant 0 : i32
    %c0_i32_1 = arith.constant 0 : i32
    return %c0_i32, %c0_i32_0 : i32, i32
  }
  func.func @transform_6(%arg0: i32, %arg1: i32) -> (i32, i32) {
    %c0_i32 = arith.constant 0 : i32
    %c0_i32_0 = arith.constant 0 : i32
    %c0_i32_1 = arith.constant 0 : i32
    return %c0_i32, %c0_i32_0 : i32, i32
  }
  func.func @transform_7(%arg0: i32, %arg1: i32) -> (i32, i32, i32) {
    %c0_i32 = arith.constant 0 : i32
    %c0_i32_0 = arith.constant 0 : i32
    return %arg0, %arg1, %c0_i32 : i32, i32, i32
  }
}

module attributes {stable_mosaic.version = 11 : i64} {
  func.func @_ln2_mlp_residual_kernel(%arg0: i32, %arg1: i32, %arg2: memref<64x128xf32, #tpu.memory_space<vmem>>, %arg3: memref<1x128xf32, #tpu.memory_space<vmem>>, %arg4: memref<1x128xf32, #tpu.memory_space<vmem>>, %arg5: memref<128x512xbf16, #tpu.memory_space<vmem>>, %arg6: memref<1x512xf32, #tpu.memory_space<vmem>>, %arg7: memref<512x128xbf16, #tpu.memory_space<vmem>>, %arg8: memref<1x128xf32, #tpu.memory_space<vmem>>, %arg9: memref<64x128xf32, #tpu.memory_space<vmem>>, %arg10: memref<64x128xbf16, #tpu.memory_space<vmem>>, %arg11: memref<64x128xf32, #tpu.memory_space<vmem>>) attributes {dimension_semantics = [#tpu.dimension_semantics<parallel>, #tpu.dimension_semantics<arbitrary>], iteration_bounds = array<i64: 8, 1>, scalar_prefetch = 0 : i64, scratch_operands = 2 : i64, tpu.core_type = #tpu.core_type<tc>, window_params = [{transform_indices = @transform_0, window_bounds = array<i64: 64, 128>}, {pipeline_mode = #tpu.pipeline_mode<synchronous>, transform_indices = @transform_1, window_bounds = array<i64: 1, 128>}, {pipeline_mode = #tpu.pipeline_mode<synchronous>, transform_indices = @transform_2, window_bounds = array<i64: 1, 128>}, {transform_indices = @transform_3, window_bounds = array<i64: 128, 512>}, {transform_indices = @transform_4, window_bounds = array<i64: 1, 512>}, {transform_indices = @transform_5, window_bounds = array<i64: 512, 128>}, {pipeline_mode = #tpu.pipeline_mode<synchronous>, transform_indices = @transform_6, window_bounds = array<i64: 1, 128>}, {transform_indices = @transform_7, window_bounds = array<i64: 64, 128>}]} {
    %c0_i32 = arith.constant 0 : i32
    %0 = arith.cmpi eq, %arg1, %c0_i32 : i32
    %1 = arith.extui %0 : i1 to i32
    %c0_i32_0 = arith.constant 0 : i32
    %2 = arith.cmpi ne, %1, %c0_i32_0 : i32
    scf.if %2 {
      %c0_18 = arith.constant 0 : index
      %c0_19 = arith.constant 0 : index
      %26 = vector.load %arg2[%c0_18, %c0_19] : memref<64x128xf32, #tpu.memory_space<vmem>>, vector<64x128xf32>
      %cst_20 = arith.constant dense<0.000000e+00> : vector<64xf32>
      %27 = vector.multi_reduction <add>, %26, %cst_20 [1] : vector<64x128xf32> to vector<64xf32>
      %28 = vector.shape_cast %27 : vector<64xf32> to vector<64x1xf32>
      %cst_21 = arith.constant 1.280000e+02 : f32
      %29 = vector.broadcast %cst_21 : f32 to vector<64x1xf32>
      %30 = arith.divf %28, %29 : vector<64x1xf32>
      %31 = vector.broadcast %30 : vector<64x1xf32> to vector<64x128xf32>
      %32 = arith.subf %26, %31 : vector<64x128xf32>
      %33 = arith.mulf %32, %32 : vector<64x128xf32>
      %cst_22 = arith.constant dense<0.000000e+00> : vector<64xf32>
      %34 = vector.multi_reduction <add>, %33, %cst_22 [1] : vector<64x128xf32> to vector<64xf32>
      %35 = vector.shape_cast %34 : vector<64xf32> to vector<64x1xf32>
      %cst_23 = arith.constant 1.280000e+02 : f32
      %36 = vector.broadcast %cst_23 : f32 to vector<64x1xf32>
      %37 = arith.divf %35, %36 : vector<64x1xf32>
      %38 = vector.broadcast %30 : vector<64x1xf32> to vector<64x128xf32>
      %39 = arith.subf %26, %38 : vector<64x128xf32>
      %cst_24 = arith.constant 9.99999974E-6 : f32
      %40 = vector.broadcast %cst_24 : f32 to vector<64x1xf32>
      %41 = arith.addf %37, %40 : vector<64x1xf32>
      %42 = math.rsqrt %41 : vector<64x1xf32>
      %43 = vector.broadcast %42 : vector<64x1xf32> to vector<64x128xf32>
      %44 = arith.mulf %39, %43 : vector<64x128xf32>
      %c0_25 = arith.constant 0 : index
      %c0_26 = arith.constant 0 : index
      %45 = vector.load %arg3[%c0_25, %c0_26] : memref<1x128xf32, #tpu.memory_space<vmem>>, vector<1x128xf32>
      %46 = vector.broadcast %45 : vector<1x128xf32> to vector<64x128xf32>
      %47 = arith.mulf %44, %46 : vector<64x128xf32>
      %c0_27 = arith.constant 0 : index
      %c0_28 = arith.constant 0 : index
      %48 = vector.load %arg4[%c0_27, %c0_28] : memref<1x128xf32, #tpu.memory_space<vmem>>, vector<1x128xf32>
      %49 = vector.broadcast %48 : vector<1x128xf32> to vector<64x128xf32>
      %50 = arith.addf %47, %49 : vector<64x128xf32>
      %51 = arith.truncf %50 : vector<64x128xf32> to vector<64x128xbf16>
      %c0_29 = arith.constant 0 : index
      %c0_30 = arith.constant 0 : index
      %52 = vector.load %arg10[%c0_29, %c0_30] : memref<64x128xbf16, #tpu.memory_space<vmem>>, vector<64x128xbf16>
      tpu.vector_store %arg10[%c0_29, %c0_30], %51 {strides = array<i32>} : memref<64x128xbf16, #tpu.memory_space<vmem>>, vector<64x128xbf16>,
      %cst_31 = arith.constant 0.000000e+00 : f32
      %53 = vector.broadcast %cst_31 : f32 to vector<64x128xf32>
      %c0_32 = arith.constant 0 : index
      %c0_33 = arith.constant 0 : index
      %54 = vector.load %arg11[%c0_32, %c0_33] : memref<64x128xf32, #tpu.memory_space<vmem>>, vector<64x128xf32>
      tpu.vector_store %arg11[%c0_32, %c0_33], %53 {strides = array<i32>} : memref<64x128xf32, #tpu.memory_space<vmem>>, vector<64x128xf32>,
    } else {
    }
    %c0 = arith.constant 0 : index
    %c0_1 = arith.constant 0 : index
    %3 = vector.load %arg10[%c0, %c0_1] : memref<64x128xbf16, #tpu.memory_space<vmem>>, vector<64x128xbf16>
    %c0_2 = arith.constant 0 : index
    %c0_3 = arith.constant 0 : index
    %4 = vector.load %arg5[%c0_2, %c0_3] : memref<128x512xbf16, #tpu.memory_space<vmem>>, vector<128x512xbf16>
    %cst = arith.constant dense<0.000000e+00> : vector<64x512xf32>
    %5 = tpu.matmul %3, %4, %cst {dimension_numbers = #tpu.dot_dimension_numbers<[1], [0], [0], [1], [0, 0, 1, 1], [], []>} : vector<64x128xbf16>, vector<128x512xbf16>, vector<64x512xf32> -> vector<64x512xf32>
    %c0_4 = arith.constant 0 : index
    %c0_5 = arith.constant 0 : index
    %6 = vector.load %arg6[%c0_4, %c0_5] : memref<1x512xf32, #tpu.memory_space<vmem>>, vector<1x512xf32>
    %7 = vector.broadcast %6 : vector<1x512xf32> to vector<64x512xf32>
    %8 = arith.addf %5, %7 : vector<64x512xf32>
    %cst_6 = arith.constant 5.000000e-01 : f32
    %9 = vector.broadcast %cst_6 : f32 to vector<64x512xf32>
    %10 = arith.mulf %9, %8 : vector<64x512xf32>
    %cst_7 = arith.constant 0.707106769 : f32
    %11 = vector.broadcast %cst_7 : f32 to vector<64x512xf32>
    %12 = arith.mulf %8, %11 : vector<64x512xf32>
    %13 = math.erf %12 : vector<64x512xf32>
    %cst_8 = arith.constant 1.000000e+00 : f32
    %14 = vector.broadcast %cst_8 : f32 to vector<64x512xf32>
    %15 = arith.addf %14, %13 : vector<64x512xf32>
    %16 = arith.mulf %10, %15 : vector<64x512xf32>
    %c0_9 = arith.constant 0 : index
    %c0_10 = arith.constant 0 : index
    %17 = vector.load %arg11[%c0_9, %c0_10] : memref<64x128xf32, #tpu.memory_space<vmem>>, vector<64x128xf32>
    %18 = arith.truncf %16 : vector<64x512xf32> to vector<64x512xbf16>
    %c0_11 = arith.constant 0 : index
    %c0_12 = arith.constant 0 : index
    %19 = vector.load %arg7[%c0_11, %c0_12] : memref<512x128xbf16, #tpu.memory_space<vmem>>, vector<512x128xbf16>
    %cst_13 = arith.constant dense<0.000000e+00> : vector<64x128xf32>
    %20 = tpu.matmul %18, %19, %cst_13 {dimension_numbers = #tpu.dot_dimension_numbers<[1], [0], [0], [1], [0, 0, 1, 1], [], []>} : vector<64x512xbf16>, vector<512x128xbf16>, vector<64x128xf32> -> vector<64x128xf32>
    %21 = arith.addf %17, %20 : vector<64x128xf32>
    %c0_14 = arith.constant 0 : index
    %c0_15 = arith.constant 0 : index
    %22 = vector.load %arg11[%c0_14, %c0_15] : memref<64x128xf32, #tpu.memory_space<vmem>>, vector<64x128xf32>
    tpu.vector_store %arg11[%c0_14, %c0_15], %21 {strides = array<i32>} : memref<64x128xf32, #tpu.memory_space<vmem>>, vector<64x128xf32>,
    %c0_i32_16 = arith.constant 0 : i32
    %23 = arith.cmpi eq, %arg1, %c0_i32_16 : i32
    %24 = arith.extui %23 : i1 to i32
    %c0_i32_17 = arith.constant 0 : i32
    %25 = arith.cmpi ne, %24, %c0_i32_17 : i32
    scf.if %25 {
      %c0_18 = arith.constant 0 : index
      %c0_19 = arith.constant 0 : index
      %26 = vector.load %arg11[%c0_18, %c0_19] : memref<64x128xf32, #tpu.memory_space<vmem>>, vector<64x128xf32>
      %c0_20 = arith.constant 0 : index
      %c0_21 = arith.constant 0 : index
      %27 = vector.load %arg8[%c0_20, %c0_21] : memref<1x128xf32, #tpu.memory_space<vmem>>, vector<1x128xf32>
      %28 = vector.broadcast %27 : vector<1x128xf32> to vector<64x128xf32>
      %29 = arith.addf %26, %28 : vector<64x128xf32>
      %c0_22 = arith.constant 0 : index
      %c0_23 = arith.constant 0 : index
      %30 = vector.load %arg2[%c0_22, %c0_23] : memref<64x128xf32, #tpu.memory_space<vmem>>, vector<64x128xf32>
      %cst_24 = arith.constant 1.000000e+00 : f32
      %31 = vector.broadcast %cst_24 : f32 to vector<64x128xf32>
      %32 = arith.mulf %29, %31 : vector<64x128xf32>
      %33 = arith.addf %30, %32 : vector<64x128xf32>
      %c0_25 = arith.constant 0 : index
      %c0_26 = arith.constant 0 : index
      %34 = vector.load %arg9[%c0_25, %c0_26] : memref<64x128xf32, #tpu.memory_space<vmem>>, vector<64x128xf32>
      tpu.vector_store %arg9[%c0_25, %c0_26], %33 {strides = array<i32>} : memref<64x128xf32, #tpu.memory_space<vmem>>, vector<64x128xf32>,
    } else {
    }
    return
  }
  func.func @transform_0(%arg0: i32, %arg1: i32) -> (i32, i32) {
    %c0_i32 = arith.constant 0 : i32
    %c0_i32_0 = arith.constant 0 : i32
    return %arg0, %c0_i32 : i32, i32
  }
  func.func @transform_1(%arg0: i32, %arg1: i32) -> (i32, i32) {
    %c0_i32 = arith.constant 0 : i32
    %c0_i32_0 = arith.constant 0 : i32
    %c0_i32_1 = arith.constant 0 : i32
    return %c0_i32, %c0_i32_0 : i32, i32
  }
  func.func @transform_2(%arg0: i32, %arg1: i32) -> (i32, i32) {
    %c0_i32 = arith.constant 0 : i32
    %c0_i32_0 = arith.constant 0 : i32
    %c0_i32_1 = arith.constant 0 : i32
    return %c0_i32, %c0_i32_0 : i32, i32
  }
  func.func @transform_3(%arg0: i32, %arg1: i32) -> (i32, i32) {
    %c0_i32 = arith.constant 0 : i32
    %c0_i32_0 = arith.constant 0 : i32
    return %c0_i32, %arg1 : i32, i32
  }
  func.func @transform_4(%arg0: i32, %arg1: i32) -> (i32, i32) {
    %c0_i32 = arith.constant 0 : i32
    %c0_i32_0 = arith.constant 0 : i32
    return %c0_i32, %arg1 : i32, i32
  }
  func.func @transform_5(%arg0: i32, %arg1: i32) -> (i32, i32) {
    %c0_i32 = arith.constant 0 : i32
    %c0_i32_0 = arith.constant 0 : i32
    return %arg1, %c0_i32 : i32, i32
  }
  func.func @transform_6(%arg0: i32, %arg1: i32) -> (i32, i32) {
    %c0_i32 = arith.constant 0 : i32
    %c0_i32_0 = arith.constant 0 : i32
    %c0_i32_1 = arith.constant 0 : i32
    return %c0_i32, %c0_i32_0 : i32, i32
  }
  func.func @transform_7(%arg0: i32, %arg1: i32) -> (i32, i32) {
    %c0_i32 = arith.constant 0 : i32
    %c0_i32_0 = arith.constant 0 : i32
    return %arg0, %c0_i32 : i32, i32
  }
}

</mosaic_0001>

<bundles_post_ra>
// kernel: permutator_block.5
= control target key start
LH: loop header
LB: loop body
LE: loop exit
PB: predicated region body
PF: predicated region fallthrough
CT: control target
= control target key end

     0   :  { %11 = vsyncpa [#allocation3], 0  ;;  %s1413_s0 = inlined_call_operand.hbm [shape: f32[512,128], index: 0, kind: input, shape index: {}]   ;;  %s1414_s1 = inlined_call_operand.hbm [shape: f32[1,128], index: 1, kind: input, shape index: {}]   ;;  %s1415_s2 = inlined_call_operand.hbm [shape: f32[1,128], index: 2, kind: input, shape index: {}]   ;;  %s1416_s3 = inlined_call_operand.vmem [shape: bf16[128,128], index: 3, kind: input, shape index: {}]   ;;  %s1417_s4 = inlined_call_operand.vmem [shape: bf16[512,128], index: 4, kind: output, shape index: {0}]   ;;  %s1418_s5 = inlined_call_operand.vmem [shape: bf16[512,128], index: 5, kind: output, shape index: {1}]  }
   0x1   :  { %13 = vsyncpa [#allocation3 + $0x1], 0 }
   0x2   :  { %14 = vsyncpa [#allocation5], 0  ;;  %s1150_s18 = smov 0   ;;  %s1152_s19 = smov 0  }
   0x3   :  { %s1154_s20 = smov 0   ;;  %s1156_s21 = smov 0  }
   0x4 LB: > { %s743_s22 = sadd.s32 4294967295, %s1113_s21   ;;  %s1170_s23 = sadd.s32 1, %s1113_s21   ;;  %s1113_s21 = sphi %s1156_s21, %s1437_s21   ;;  %s1109_s20 = sphi %s1154_s20, %s1436_s20   ;;  %s1105_s19 = sphi %s1152_s19, %s1435_s19   ;;  %s1101_s18 = sphi %s1150_s18, %s1434_s18  }
   0x5   : > { %s24_s24 = ssub.s32 %s1113_s21, %s1170_s23  ;;  %s27_s25 = sadd.s32 1, %s1109_s20 }
   0x6   : > { %p25_p0 = scmp.eq.s32.totalorder %s24_s24, 0  ;;  %p34_p1 = scmp.ne.s32.totalorder %s1109_s20, %s1105_s19 }
   0x7   : > { %p35_p2 = scmp.eq.s32.totalorder %s1113_s21, 0  ;;  %p40_p3 = scmp.ne.s32.totalorder %s1105_s19, %s1101_s18 }
   0x8   : > { %s1180_s26 = scalar_select %p25_p0, %s1109_s20, %s27_s25  }
   0x9   : > { %p1182_p4 = por %p35_p2, %p34_p1  ;;  %p1188_p5 = scmp.eq.s32.totalorder %s743_s22, 0 }
   0xa   : > { %p745_p6 = scmp.ge.s32.totalorder %s1113_s21, 1  ;;  %p166_p7 = scmp.lt.s32.totalorder %s1113_s21, 9 }
   0xb   : > { %s1425_s28 = scalar_select %p1188_p5, 1, 0 }
   0xc   : > { %p1196_p8 = por %p1188_p5, %p40_p3  ;;  %p1200_p9 = pnand %p745_p6, %p166_p7 }
   0xd   : > { %s1115_s6 = smov [#allocation4]   ;;  %p926_p11 = scmp.lt.s32.totalorder %s1113_s21, 8 }
   0xe   : > { %s1426_s29 = scalar_select %p1196_p8, 1, 0 }
   0xf   : > { %s1427_s30 = scalar_select %p1200_p9, 1, 0 }
  0x10   : > { %s179_s7 = sshll.u32 %s1115_s6, 4  ;;  %p913_p10 = pneg %p1200_p9  ;;  %s180_s7 = int_to_ptr.vmem [resolvable:$true] %s179_s7 }
  0x11   : > { %s1116_s9 = smov [#allocation6]   ;;  %p1215_p13 = pnand %p926_p11, %p1182_p4 }
  0x12   : > { %p1209_p12 = pnand %p913_p10, %p1188_p5  ;;  %s190_s10 = sshll.u32 %s1116_s9, 4  ;;  %s1219_s10 = int_to_ptr.vmem [resolvable:$true] %s190_s10 }
  0x13   : > { %s1429_s11 = scalar_select %p1215_p13, 1, 0 }
  0x14   : > { %s204_s12 = sand.u32 1, %s1109_s20   ;;  %s989_s15 = scalar_lea.hbm %s1414_s1, 16 }
  0x15   : > { %p990_p0 = scmp.ne.s32.totalorder %s1414_s1, %s989_s15  ;;  %p991_p1 = pneg %p1209_p12 }
  0x16   : > { %p996_p4 = scmp.lt.u32.totalorder %s989_s15, %s1414_s1 }
  0x17   : > { %p992_p2 = pnand %p991_p1, %p990_p0 }
  0x19   : > { %p993_p3 = pneg %p992_p2 }
  0x1b   : > { %p998_p6 = pnand %p996_p4, %p993_p3 }
  0x1d   : > { %1001 = shalt.err (!%p998_p6)
}
  0x1e   : > { %s1002_s25 = scalar_lea.vmem %s180_s7, 16  ;;  %s1009_s27 = scalar_lea.vmem %s180_s7, 32 }
  0x1f   : > { %p1003_p7 = scmp.ne.s32.totalorder %s180_s7, %s1002_s25  ;;  %p1010_p5 = scmp.lt.s32.totalorder %s180_s7, %s180_s7 }
  0x20   : > { %p1011_p8 = scmp.lt.s32.totalorder %s1009_s27, %s1002_s25 }
  0x21   : > { %p1005_p10 = pnand %p1003_p7, %p991_p1 }
  0x22   : > { %p1012_p9 = por %p1011_p8, %p1010_p5 }
  0x23   : > { %p1006_p11 = pneg %p1005_p10 }
  0x25   : > { %p1013_p13 = pnand %p1012_p9, %p1006_p11 }
  0x27   : > { %1016 = shalt.err (!%p1013_p13)
}
  0x28   : > { %916 = dma.hbm_to_vmem [thread:$0]  (!%p1209_p12), %s1414_s1, 16, %s180_s7, [#allocation5]  }
  0x29   : > { %s1017_s15 = scalar_lea.hbm %s1415_s2, 16 }
  0x2a   : > { %p1018_p0 = scmp.ne.s32.totalorder %s1415_s2, %s1017_s15  ;;  %p1024_p9 = scmp.lt.u32.totalorder %s1017_s15, %s1415_s2 }
  0x2c   : > { %p1020_p5 = pnand %p1018_p0, %p991_p1 }
  0x2e   : > { %p1021_p8 = pneg %p1020_p5 }
  0x30   : > { %p1026_p13 = pnand %p1024_p9, %p1021_p8 }
  0x32   : > { %1029 = shalt.err (!%p1026_p13)
}
  0x33   : > { %s1030_s7 = scalar_lea.vmem %s1219_s10, 16  ;;  %s1037_s25 = scalar_lea.vmem %s1219_s10, 32 }
  0x34   : > { %p1031_p2 = scmp.ne.s32.totalorder %s1219_s10, %s1030_s7  ;;  %p1038_p6 = scmp.lt.s32.totalorder %s1219_s10, %s1219_s10 }
  0x35   : > { %p1039_p7 = scmp.lt.s32.totalorder %s1037_s25, %s1030_s7 }
  0x36   : > { %p1033_p3 = pnand %p1031_p2, %p991_p1 }
  0x37   : > { %p1040_p10 = por %p1039_p7, %p1038_p6 }
  0x38   : > { %p1034_p4 = pneg %p1033_p3 }
  0x3a   : > { %p1041_p11 = pnand %p1040_p10, %p1034_p4 }
  0x3c   : > { %1044 = shalt.err (!%p1041_p11)
}
  0x3d   : > { %919 = dma.hbm_to_vmem [thread:$0]  (!%p1209_p12), %s1415_s2, 16, %s1219_s10, [#allocation5]  }
  0x3e   : > { %s749_s9 = sshll.u32 %s204_s12, 6  ;;  %s788_s13 = sshll.u32 %s1113_s21, 10 }
  0x3f   : > { %s1276_s16 = scalar_lea.hbm %s1413_s0, %s788_s13  ;;  %s208_s8 = scalar_lea.vmem [#allocation2], %s749_s9 }
  0x40   : > { %s215_s17 = sshll.u32 %s208_s8, 4  ;;  %s1282_s18 = scalar_lea.sflag [#allocation3], %s204_s12  ;;  %s1278_s17 = int_to_ptr.vmem [resolvable:$true] %s215_s17 }
  0x41   : > { %s1045_s10 = scalar_lea.hbm %s1276_s16, 1024  ;;  %p1430_p1 = scmp.ne.s32.totalorder %s1429_s11, 0 }
  0x42   : > { %p1046_p12 = scmp.ne.s32.totalorder %s1276_s16, %s1045_s10  ;;  %s1050_s25 = scalar_lea.hbm %s1413_s0, 8192 }
  0x43   : > { %p1047_p0 = pneg %p1430_p1  ;;  %p1051_p9 = scmp.lt.u32.totalorder %s1276_s16, %s1413_s0 }
  0x44   : > { %p1052_p13 = scmp.lt.u32.totalorder %s1050_s25, %s1045_s10  ;;  %p1054_p3 = scmp.lt.u32.totalorder %s1045_s10, %s1276_s16 }
  0x45   : > { %p1048_p5 = pnand %p1047_p0, %p1046_p12 }
  0x46   : > { %p1053_p2 = por %p1052_p13, %p1051_p9 }
  0x47   : > { %p1049_p8 = pneg %p1048_p5 }
  0x48   : > { %p1055_p4 = por %p1054_p3, %p1053_p2 }
  0x4a   : > { %p1056_p6 = pnand %p1055_p4, %p1049_p8 }
  0x4c   : > { %1059 = shalt.err (!%p1056_p6)
}
  0x4d   : > { %s1060_s12 = scalar_lea.vmem %s1278_s17, 1024  ;;  %s1117_s9 = smov [#allocation2]  }
  0x4e   : > { %p1061_p7 = scmp.ne.s32.totalorder %s1278_s17, %s1060_s12  ;;  %s1065_s13 = sshll.u32 %s1117_s9, 4  ;;  %s1066_s13 = int_to_ptr.vmem [resolvable:$false] %s1065_s13 }
  0x4f   : > { %s1067_s14 = scalar_lea.vmem %s1066_s13, 2048  ;;  %p1068_p12 = scmp.lt.s32.totalorder %s1278_s17, %s1066_s13 }
  0x50   : > { %p1063_p10 = pnand %p1061_p7, %p1047_p0  ;;  %p1069_p5 = scmp.lt.s32.totalorder %s1067_s14, %s1060_s12 }
  0x52   : > { %p1064_p11 = pneg %p1063_p10  ;;  %p1070_p9 = por %p1069_p5, %p1068_p12 }
  0x54   : > { %p1071_p13 = pnand %p1070_p9, %p1064_p11 }
  0x56   : > { %1074 = shalt.err (!%p1071_p13)
}
  0x57   : > { %s1118_s15 = smov 128   ;;  %s1119_s8 = smov 8  }
  0x58   : > { %923 = dma.hbm_to_vmem [thread:$0]  (!%p1430_p1), %s1276_s16, 1024, %s1278_s17, %s1282_s18, %s1118_s15, %s1118_s15, %s1119_s8  }
  0x59   : > { %p1431_p0 = scmp.ne.s32.totalorder %s1427_s30, 0 }
  0x5a   : > { %s229_s10 = sand.u32 (!%p1431_p0), 1, %s1105_s19   ;;  %p1432_p8 = scmp.ne.s32.totalorder (!%p1431_p0), %s1426_s29, 0 }
  0x5b   : > { %227 = sbr.rel (%p1431_p0) target bundleno = 650 (0x28a), region = 36  ;;  %s753_s24 = sshll.u32 (!%p1431_p0), %s229_s10, 6 }
  0x5c   : > { %s230_s7 = scalar_lea.sflag (!%p1431_p0), [#allocation3], %s229_s10  ;;  %s233_s25 = scalar_lea.vmem (!%p1431_p0), [#allocation2], %s753_s24 }
  0x62   : > { %1092 = dma.done.wait (%p1432_p8), %s230_s7, 1024  }
  0x63   : > { %1094 = vsyncadd (%p1432_p8), %s230_s7, 4294966272  ;;  %p1433_p2 = scmp.ne.s32.totalorder %s1425_s28, 0 }
  0x65   : > { %1096 = dma.done.wait (%p1433_p2), [#allocation5], 32  }
  0x66   : > { %1098 = vsyncadd (%p1433_p2), [#allocation5], 4294967264  ;;  %v287_v0 = vld [vmem:[%s233_s25] sm:$0xff]  ;;  %v288_v2 = vld [vmem:[%s233_s25 + $0x8] sm:$0xff]  ;;  %s756_s24 = sshll.u32 %s743_s22, 3 }
  0x67   : > { %v291_v1 = vld [vmem:[%s233_s25 + $0x20] sm:$0xff]  ;;  %295 = vadd.xlane.f32.xlu0 %v287_v0  ;;  %v292_v3 = vld [vmem:[%s233_s25 + $0x28] sm:$0xff]  ;;  %v289_v4 = vld [vmem:[%s233_s25 + $0x10] sm:$0xff]  ;;  %p275_p1 = scmp.lt.s32.totalorder %s756_s24, 63 }
  0x68   : > { %303 = vadd.xlane.f32.xlu1 %v291_v1  ;;  %v290_v5 = vld [vmem:[%s233_s25 + $0x18] sm:$0xff]  ;;  %v293_v6 = vld [vmem:[%s233_s25 + $0x30] sm:$0xff]  ;;  %v965_v40 = vld [vmem:[%s1416_s3] sm:$0xff]  }
  0x69   : > { %v294_v7 = vld [vmem:[%s233_s25 + $0x38] sm:$0xff]  ;;  %863 = vmatprep.subr.bf16.mxu0 %v965_v40  ;;  %887 = vmatprep.subr.bf16.mxu1 %v965_v40  ;;  %v966_v41 = vld [vmem:[%s1416_s3 + $0x8] sm:$0xff]   ;;  %v967_v42 = vld [vmem:[%s1416_s3 + $0x10] sm:$0xff]   ;;  %s1439_s24 = smov (!%p275_p1, %s756_s24), 63 }
  0x6a   : > { %864 = vmatpush3.bf16.msra.mxu0 %v965_v40  ;;  %895 = vmatpush3.bf16.msra.mxu1 %v965_v40  ;;  %v968_v43 = vld [vmem:[%s1416_s3 + $0x18] sm:$0xff]   ;;  %v969_v44 = vld [vmem:[%s1416_s3 + $0x20] sm:$0xff]   ;;  %v970_v45 = vld [vmem:[%s1416_s3 + $0x28] sm:$0xff]   ;;  %s757_s21 = sshll.u32 %s1439_s24, 2 }
  0x6b   : > { %297 = vadd.xlane.f32.xlu0 %v288_v2  ;;  %865 = vmatprep.subr.bf16.mxu0 %v966_v41  ;;  %v971_v46 = vld [vmem:[%s1416_s3 + $0x30] sm:$0xff]   ;;  %v972_v47 = vld [vmem:[%s1416_s3 + $0x38] sm:$0xff]   ;;  %s278_s25 = scalar_lea.vmem %s1417_s4, %s757_s21  ;;  %s284_s30 = scalar_lea.vmem %s1418_s5, %s757_s21 }
  0x6c   : > { %305 = vadd.xlane.f32.xlu1 %v292_v3  ;;  %888 = vmatprep.subr.bf16.mxu1 %v966_v41 }
  0x6e   : > { %866 = vmatpush3.bf16.msra.mxu0 %v966_v41  ;;  %896 = vmatpush3.bf16.msra.mxu1 %v966_v41 }
  0x6f   : > { %299 = vadd.xlane.f32.xlu0 %v289_v4  ;;  %867 = vmatprep.subr.bf16.mxu0 %v967_v42 }
  0x70   : > { %301 = vadd.xlane.f32.xlu1 %v290_v5  ;;  %889 = vmatprep.subr.bf16.mxu1 %v967_v42 }
  0x72   : > { %868 = vmatpush3.bf16.msra.mxu0 %v967_v42  ;;  %897 = vmatpush3.bf16.msra.mxu1 %v967_v42 }
  0x73   : > { %307 = vadd.xlane.f32.xlu0 %v293_v6  ;;  %869 = vmatprep.subr.bf16.mxu0 %v968_v43 }
  0x74   : > { %309 = vadd.xlane.f32.xlu1 %v294_v7  ;;  %890 = vmatprep.subr.bf16.mxu1 %v968_v43 }
  0x76   : > { %870 = vmatpush3.bf16.msra.mxu0 %v968_v43  ;;  %898 = vmatpush3.bf16.msra.mxu1 %v968_v43 }
  0x77   : > { %871 = vmatprep.subr.bf16.mxu0 %v969_v44  ;;  %891 = vmatprep.subr.bf16.mxu1 %v969_v44 }
  0x7a   : > { %872 = vmatpush3.bf16.msra.mxu0 %v969_v44  ;;  %899 = vmatpush3.bf16.msra.mxu1 %v969_v44 }
  0x7b   : > { %873 = vmatprep.subr.bf16.mxu0 %v970_v45  ;;  %892 = vmatprep.subr.bf16.mxu1 %v970_v45 }
  0x7e   : > { %874 = vmatpush3.bf16.msra.mxu0 %v970_v45  ;;  %900 = vmatpush3.bf16.msra.mxu1 %v970_v45 }
  0x7f   : > { %875 = vmatprep.subr.bf16.mxu0 %v971_v46  ;;  %893 = vmatprep.subr.bf16.mxu1 %v971_v46 }
  0x82   : > { %876 = vmatpush3.bf16.msra.mxu0 %v971_v46  ;;  %901 = vmatpush3.bf16.msra.mxu1 %v971_v46 }
  0x83   : > { %877 = vmatprep.subr.bf16.mxu0 %v972_v47  ;;  %894 = vmatprep.subr.bf16.mxu1 %v972_v47 }
  0x86   : > { %878 = vmatpush3.bf16.msra.mxu0 %v972_v47  ;;  %902 = vmatpush3.bf16.msra.mxu1 %v972_v47 }
  0xf4   : > { %v296_v8 = vpop.xlane.xlu0 %295 }
  0xf5   : > { %v304_v9 = vpop.xlane.xlu1 %303  ;;  %v312_v10 = vmul.f32 0.0078125, %v296_v8 }
  0xf6   : > { %v316_v11 = vmul.f32 0.0078125, %v304_v9  ;;  %v760_v9 = vld [vmem:[#allocation4] ss:$0 sm:$0xff] }
  0xf7   : > { %v1321_v12 = vsub.f32 %v287_v0, %v312_v10 }
  0xf8   : > { %v1323_v13 = vsub.f32 %v291_v1, %v316_v11  ;;  %v298_v14 = vpop.xlane.xlu0 %297 }
  0xf9   : > { %v306_v15 = vpop.xlane.xlu1 %305  ;;  %v313_v16 = vmul.f32 0.0078125, %v298_v14  ;;  %v328_v17 = vmul.f32 %v1321_v12, %v1321_v12 }
  0xfa   : > { %v317_v18 = vmul.f32 0.0078125, %v306_v15  ;;  %v332_v21 = vmul.f32 %v1323_v13, %v1323_v13 }
  0xfb   : > { %v1327_v19 = vsub.f32 %v288_v2, %v313_v16  ;;  %336 = vadd.xlane.f32.xlu0 %v328_v17  ;;  %v761_v17 = vld [vmem:[#allocation6] ss:$0 sm:$0xff] }
  0xfc   : > { %v1329_v20 = vsub.f32 %v292_v3, %v317_v18  ;;  %v300_v22 = vpop.xlane.xlu0 %299 }
  0xfd   : > { %v302_v23 = vpop.xlane.xlu1 %301  ;;  %v314_v24 = vmul.f32 0.0078125, %v300_v22  ;;  %v329_v25 = vmul.f32 %v1327_v19, %v1327_v19 }
  0xfe   : > { %v315_v26 = vmul.f32 0.0078125, %v302_v23  ;;  %v333_v29 = vmul.f32 %v1329_v20, %v1329_v20 }
  0xff   : > { %v1335_v27 = vsub.f32 %v289_v4, %v314_v24  ;;  %344 = vadd.xlane.f32.xlu0 %v332_v21  ;;  %338 = vadd.xlane.f32.xlu1 %v329_v25 }
 0x100   : > { %v1337_v28 = vsub.f32 %v290_v5, %v315_v26  ;;  %v308_v30 = vpop.xlane.xlu0 %307 }
 0x101   : > { %v310_v31 = vpop.xlane.xlu1 %309  ;;  %v318_v32 = vmul.f32 0.0078125, %v308_v30  ;;  %v330_v33 = vmul.f32 %v1335_v27, %v1335_v27 }
 0x102   : > { %v319_v34 = vmul.f32 0.0078125, %v310_v31  ;;  %v331_v37 = vmul.f32 %v1337_v28, %v1337_v28 }
 0x103   : > { %v1343_v35 = vsub.f32 %v293_v6, %v318_v32  ;;  %346 = vadd.xlane.f32.xlu1 %v333_v29  ;;  %340 = vadd.xlane.f32.xlu0 %v330_v33 }
 0x104   : > { %v1345_v36 = vsub.f32 %v294_v7, %v319_v34 }
 0x105   : > { %v334_v38 = vmul.f32 %v1343_v35, %v1343_v35 }
 0x106   : > { %v335_v39 = vmul.f32 %v1345_v36, %v1345_v36 }
 0x107   : > { %342 = vadd.xlane.f32.xlu1 %v331_v37  ;;  %348 = vadd.xlane.f32.xlu0 %v334_v38 }
 0x10b   : > { %350 = vadd.xlane.f32.xlu1 %v335_v39 }
 0x188   : > { %v337_v48 = vpop.xlane.xlu0 %336 }
 0x189   : > { %v352_v49 = vmul.f32 0.0078125, %v337_v48 }
 0x18b   : > { %v360_v50 = vadd.f32 1e-05, %v352_v49 }
 0x18c   : > { %v339_v51 = vpop.xlane.xlu1 %338  ;;  %v345_v52 = vpop.xlane.xlu0 %344 }
 0x18d   : > { %973 = vrsqrt.f32 %v360_v50  ;;  %v353_v53 = vmul.f32 0.0078125, %v339_v51  ;;  %v356_v54 = vmul.f32 0.0078125, %v345_v52 }
 0x18f   : > { %v361_v55 = vadd.f32 1e-05, %v353_v53  ;;  %v364_v56 = vadd.f32 1e-05, %v356_v54 }
 0x190   : > { %v347_v57 = vpop.xlane.xlu1 %346  ;;  %v341_v58 = vpop.xlane.xlu0 %340 }
 0x191   : > { %975 = vrsqrt.f32 %v361_v55  ;;  %v357_v59 = vmul.f32 0.0078125, %v347_v57  ;;  %v354_v60 = vmul.f32 0.0078125, %v341_v58 }
 0x192   : > { %977 = vrsqrt.f32 %v364_v56 }
 0x193   : > { %v365_v61 = vadd.f32 1e-05, %v357_v59  ;;  %v362_v62 = vadd.f32 1e-05, %v354_v60 }
 0x194   : > { %v343_v63 = vpop.xlane.xlu1 %342  ;;  %v349_v0 = vpop.xlane.xlu0 %348 }
 0x195   : > { %979 = vrsqrt.f32 %v365_v61  ;;  %v355_v1 = vmul.f32 0.0078125, %v343_v63  ;;  %v358_v2 = vmul.f32 0.0078125, %v349_v0 }
 0x196   : > { %981 = vrsqrt.f32 %v362_v62 }
 0x197   : > { %v974_v3 = vpop.eup %973  ;;  %v363_v4 = vadd.f32 1e-05, %v355_v1  ;;  %v366_v5 = vadd.f32 1e-05, %v358_v2 }
 0x198   : > { %v351_v6 = vpop.xlane.xlu1 %350  ;;  %v376_v7 = vmul.f32 %v974_v3, %v1321_v12 }
 0x199   : > { %983 = vrsqrt.f32 %v363_v4  ;;  %v359_v8 = vmul.f32 0.0078125, %v351_v6 }
 0x19a   : > { %985 = vrsqrt.f32 %v366_v5  ;;  %v391_v16 = vmul.f32 %v760_v9, %v376_v7 }
 0x19b   : > { %v976_v10 = vpop.eup %975  ;;  %v367_v11 = vadd.f32 1e-05, %v359_v8 }
 0x19c   : > { %v978_v14 = vpop.eup %977  ;;  %v377_v15 = vmul.f32 %v976_v10, %v1327_v19  ;;  %v406_v23 = vadd.f32 %v761_v17, %v391_v16 }
 0x19d   : > { %987 = vrsqrt.f32 %v367_v11  ;;  %v380_v18 = vmul.f32 %v978_v14, %v1323_v13 }
 0x19e   : > { %v392_v12 = vmul.f32 %v760_v9, %v377_v15 }
 0x19f   : > { %v980_v21 = vpop.eup %979  ;;  %v395_v26 = vmul.f32 %v760_v9, %v380_v18 }
 0x1a0   : > { %v982_v22 = vpop.eup %981  ;;  %v407_v24 = vadd.f32 %v761_v17, %v392_v12  ;;  %v381_v25 = vmul.f32 %v980_v21, %v1329_v20 }
 0x1a1   : > { %v378_v19 = vmul.f32 %v982_v22, %v1335_v27  ;;  %v410_v32 = vadd.f32 %v761_v17, %v395_v26 }
 0x1a2   : > { %v414_v29 = vpack.c.bf16 %v407_v24, %v406_v23  ;;  %v396_v30 = vmul.f32 %v760_v9, %v381_v25 }
 0x1a3   : > { %v984_v31 = vpop.eup %983  ;;  %v393_v37 = vmul.f32 %v760_v9, %v378_v19 }
 0x1a4   : > { %v986_v13 = vpop.eup %985  ;;  %809 = vst [vmem:[%s278_s25] sm:$0xff] %v414_v29   ;;  %879 = vmatprep.mubr.bf16.mxu0 %v414_v29  ;;  %v411_v33 = vadd.f32 %v761_v17, %v396_v30  ;;  %v379_v34 = vmul.f32 %v984_v31, %v1337_v28 }
 0x1a5   : > { %v382_v20 = vmul.f32 %v986_v13, %v1343_v35  ;;  %v408_v27 = vadd.f32 %v761_v17, %v393_v37 }
 0x1a6   : > { %v416_v38 = vpack.c.bf16 %v411_v33, %v410_v32  ;;  %v394_v39 = vmul.f32 %v760_v9, %v379_v34 }
 0x1a7   : > { %v988_v40 = vpop.eup %987  ;;  %v397_v43 = vmul.f32 %v760_v9, %v382_v20 }
 0x1a8   : > { %846 = vst [vmem:[%s278_s25 + $0x10] sm:$0xff] %v416_v38   ;;  %883 = vmatprep.mubr.bf16.mxu1 %v416_v38  ;;  %v409_v41 = vadd.f32 %v761_v17, %v394_v39  ;;  %v383_v42 = vmul.f32 %v988_v40, %v1345_v36 }
 0x1a9   : > { %v412_v46 = vadd.f32 %v761_v17, %v397_v43 }
 0x1aa   : > { %v415_v44 = vpack.c.bf16 %v409_v41, %v408_v27  ;;  %v398_v45 = vmul.f32 %v760_v9, %v383_v42 }
 0x1ac   : > { %845 = vst [vmem:[%s278_s25 + $0x8] sm:$0xff] %v415_v44   ;;  %880 = vmatmul.mubr.bf16.vlgmr.msra.gmra.mrb[0].mxu0 %v415_v44  ;;  %v413_v28 = vadd.f32 %v761_v17, %v398_v45 }
 0x1ae   : > { %v417_v47 = vpack.c.bf16 %v413_v28, %v412_v46 }
 0x1b0   : > { %847 = vst [vmem:[%s278_s25 + $0x18] sm:$0xff] %v417_v47   ;;  %884 = vmatmul.mubr.bf16.vlgmr.msra.gmra.mrb[0].mxu1 %v417_v47 }
 0x27f   : > { %v881_v35 = vpop.f32.mrb[0].mxu0 }
 0x280   : > { %v552_v48 = vpop.f32.mrb[1].mxu0 }
 0x281   : > { %v882_v49 = vpop.f32.mrb[2].mxu0 }
 0x282   : > { %v833_v50 = vpack.c.bf16 %v882_v49, %v881_v35  ;;  %v555_v36 = vpop.f32.mrb[3].mxu0 }
 0x283   : > { %v828_v51 = vpack.c.bf16 %v555_v36, %v552_v48  ;;  %v885_v52 = vpop.f32.mrb[0].mxu1 }
 0x284   : > { %848 = vst [vmem:[%s284_s30 + $0x8] sm:$0xff] %v833_v50   ;;  %v568_v53 = vpop.f32.mrb[1].mxu1 }
 0x285   : > { %829 = vst [vmem:[%s284_s30] sm:$0xff] %v828_v51   ;;  %v886_v54 = vpop.f32.mrb[2].mxu1 }
 0x286   : > { %v843_v55 = vpack.c.bf16 %v886_v54, %v885_v52  ;;  %v571_v56 = vpop.f32.mrb[3].mxu1 }
 0x287   : > { %v838_v57 = vpack.c.bf16 %v571_v56, %v568_v53 }
 0x288   : > { %850 = vst [vmem:[%s284_s30 + $0x18] sm:$0xff] %v843_v55  }
 0x289   : > { %849 = vst [vmem:[%s284_s30 + $0x10] sm:$0xff] %v838_v57  }
 0x28a PF: > { %p17_p3 = scmp.ge.s32.totalorder %s1170_s23, 10   ;;  %s1434_s18 = smov %s1105_s19 }
 0x28b   : > { %s1435_s19 = smov %s1109_s20  ;;  %s1436_s20 = smov %s1180_s26 }
 0x28c   : > { %s1437_s21 = smov %s1170_s23  ;;  %19 = sbr.rel (!%p17_p3) target bundleno = 4 (0x4), region = 96 }
 0x293   :  { %662 = vsyncpa [#allocation3], 1 }
 0x294   :  { %664 = vsyncpa [#allocation3 + $0x1], 1 }
 0x295   :  { %665 = vsyncpa [#allocation5], 1 }

// kernel: permutator_block.6
= control target key start
LH: loop header
LB: loop body
LE: loop exit
PB: predicated region body
PF: predicated region fallthrough
CT: control target
= control target key end

     0   :  { %s1028_s18 = smov 0   ;;  %s1117_s0 = inlined_call_operand.vmem [shape: bf16[512,128], index: 0, kind: input, shape index: {}]   ;;  %s1118_s1 = inlined_call_operand.vmem [shape: bf16[512,128], index: 1, kind: input, shape index: {}]   ;;  %s1119_s2 = inlined_call_operand.vmem [shape: bf16[128,128], index: 2, kind: input, shape index: {}]   ;;  %s1120_s3 = inlined_call_operand.vmem [shape: bf16[128,128], index: 3, kind: input, shape index: {}]   ;;  %s1121_s4 = inlined_call_operand.vmem [shape: bf16[512,128], index: 4, kind: output, shape index: {0}]   ;;  %s1122_s5 = inlined_call_operand.vmem [shape: bf16[512,128], index: 5, kind: output, shape index: {1}]  }
   0x1 LB: > { %s769_s19 = sadd.s32 4294967295, %s996_s18   ;;  %p773_p0 = scmp.ge.s32.totalorder %s996_s18, 1  ;;  %s996_s18 = sphi %s1028_s18, %s16_s18  }
   0x2   : > { %p202_p1 = scmp.lt.s32.totalorder %s996_s18, 9 }
   0x4   : > { %p203_p2 = pnand %p773_p0, %p202_p1 }
   0x5   : > { %v966_v0 = vld [vmem:[%s1119_s2] sm:$0xff] (!%p203_p2)   ;;  %s774_s22 = sshll.u32 (!%p203_p2), %s769_s19, 3  ;;  %v968_v2 = vld [vmem:[%s1119_s2 + $0x8] sm:$0xff] (!%p203_p2)   ;;  %v970_v4 = vld [vmem:[%s1119_s2 + $0x10] sm:$0xff] (!%p203_p2)  }
   0x6   : > { %206 = sbr.rel (%p203_p2) target bundleno = 265 (0x109), region = 36  ;;  %v967_v1 = vld [vmem:[%s1120_s3] sm:$0xff] (!%p203_p2)   ;;  %910 = vmatprep.subr.bf16.mxu0 (!%p203_p2), %v966_v0  ;;  %p241_p3 = scmp.lt.s32.totalorder (!%p203_p2), %s774_s22, 63  ;;  %v969_v3 = vld [vmem:[%s1120_s3 + $0x8] sm:$0xff] (!%p203_p2)   ;;  %v971_v5 = vld [vmem:[%s1120_s3 + $0x10] sm:$0xff] (!%p203_p2)  }
   0x7   : > { %934 = vmatprep.subr.bf16.mxu1 (!%p203_p2), %v967_v1  ;;  %911 = vmatpush3.bf16.msra.mxu0 (!%p203_p2), %v966_v0  ;;  %v972_v6 = vld [vmem:[%s1119_s2 + $0x18] sm:$0xff] (!%p203_p2)   ;;  %v974_v8 = vld [vmem:[%s1119_s2 + $0x20] sm:$0xff] (!%p203_p2)   ;;  %v976_v10 = vld [vmem:[%s1119_s2 + $0x28] sm:$0xff] (!%p203_p2)  }
   0x8   : > { %935 = vmatpush3.bf16.msra.mxu1 (!%p203_p2), %v967_v1  ;;  %912 = vmatprep.subr.bf16.mxu0 (!%p203_p2), %v968_v2  ;;  %v973_v7 = vld [vmem:[%s1120_s3 + $0x18] sm:$0xff] (!%p203_p2)   ;;  %v975_v9 = vld [vmem:[%s1120_s3 + $0x20] sm:$0xff] (!%p203_p2)   ;;  %v977_v11 = vld [vmem:[%s1120_s3 + $0x28] sm:$0xff] (!%p203_p2)  }
   0x9   : > { %936 = vmatprep.subr.bf16.mxu1 (!%p203_p2), %v969_v3  ;;  %v978_v14 = vld [vmem:[%s1119_s2 + $0x30] sm:$0xff] (!%p203_p2)   ;;  %v980_v16 = vld [vmem:[%s1119_s2 + $0x38] sm:$0xff] (!%p203_p2)  }
   0xa   : > { %v979_v15 = vld [vmem:[%s1120_s3 + $0x30] sm:$0xff] (!%p203_p2)   ;;  %v981_v17 = vld [vmem:[%s1120_s3 + $0x38] sm:$0xff] (!%p203_p2)  }
   0xb   : > { %913 = vmatpush3.bf16.msra.mxu0 (!%p203_p2), %v968_v2 }
   0xc   : > { %937 = vmatpush3.bf16.msra.mxu1 (!%p203_p2), %v969_v3  ;;  %914 = vmatprep.subr.bf16.mxu0 (!%p203_p2), %v970_v4 }
   0xd   : > { %s1124_s22 = smov (!%p241_p3, %s774_s22), 63  ;;  %938 = vmatprep.subr.bf16.mxu1 %v971_v5 }
   0xe   : > { %s1060_s12 = sshll.u32 %s1124_s22, 2 }
   0xf   : > { %915 = vmatpush3.bf16.msra.mxu0 %v970_v4  ;;  %s1072_s20 = scalar_lea.vmem %s1117_s0, %s1060_s12  ;;  %s1081_s25 = scalar_lea.vmem %s1118_s1, %s1060_s12 }
  0x10   : > { %939 = vmatpush3.bf16.msra.mxu1 %v971_v5  ;;  %916 = vmatprep.subr.bf16.mxu0 %v972_v6  ;;  %v982_v12 = vld [vmem:[%s1072_s20] sm:$0xff]   ;;  %v984_v18 = vld [vmem:[%s1072_s20 + $0x8] sm:$0xff]   ;;  %v986_v20 = vld [vmem:[%s1072_s20 + $0x10] sm:$0xff]   ;;  %s256_s14 = scalar_lea.vmem %s1121_s4, %s1060_s12  ;;  %s262_s17 = scalar_lea.vmem %s1122_s5, %s1060_s12 }
  0x11   : > { %940 = vmatprep.subr.bf16.mxu1 %v973_v7  ;;  %v983_v13 = vld [vmem:[%s1081_s25] sm:$0xff]   ;;  %926 = vmatprep.mubr.bf16.mxu0 %v982_v12  ;;  %v985_v19 = vld [vmem:[%s1081_s25 + $0x8] sm:$0xff]   ;;  %v987_v21 = vld [vmem:[%s1081_s25 + $0x10] sm:$0xff]  }
  0x12   : > { %950 = vmatprep.mubr.bf16.mxu1 %v983_v13  ;;  %v988_v22 = vld [vmem:[%s1072_s20 + $0x18] sm:$0xff]  }
  0x13   : > { %917 = vmatpush3.bf16.msra.mxu0 %v972_v6  ;;  %v989_v23 = vld [vmem:[%s1081_s25 + $0x18] sm:$0xff]  }
  0x14   : > { %941 = vmatpush3.bf16.msra.mxu1 %v973_v7  ;;  %918 = vmatprep.subr.bf16.mxu0 %v974_v8 }
  0x15   : > { %942 = vmatprep.subr.bf16.mxu1 %v975_v9 }
  0x17   : > { %919 = vmatpush3.bf16.msra.mxu0 %v974_v8 }
  0x18   : > { %943 = vmatpush3.bf16.msra.mxu1 %v975_v9  ;;  %920 = vmatprep.subr.bf16.mxu0 %v976_v10 }
  0x19   : > { %944 = vmatprep.subr.bf16.mxu1 %v977_v11 }
  0x1b   : > { %921 = vmatpush3.bf16.msra.mxu0 %v976_v10 }
  0x1c   : > { %945 = vmatpush3.bf16.msra.mxu1 %v977_v11  ;;  %922 = vmatprep.subr.bf16.mxu0 %v978_v14 }
  0x1d   : > { %946 = vmatprep.subr.bf16.mxu1 %v979_v15 }
  0x1f   : > { %923 = vmatpush3.bf16.msra.mxu0 %v978_v14 }
  0x20   : > { %947 = vmatpush3.bf16.msra.mxu1 %v979_v15  ;;  %924 = vmatprep.subr.bf16.mxu0 %v980_v16 }
  0x21   : > { %948 = vmatprep.subr.bf16.mxu1 %v981_v17 }
  0x23   : > { %925 = vmatpush3.bf16.msra.mxu0 %v980_v16 }
  0x24   : > { %949 = vmatpush3.bf16.msra.mxu1 %v981_v17 }
  0x26   : > { %927 = vmatmul.mubr.bf16.vlgmr.msra.gmra.mrb[0].mxu0 %v984_v18 }
  0x27   : > { %951 = vmatmul.mubr.bf16.vlgmr.msra.gmra.mrb[0].mxu1 %v985_v19  ;;  %930 = vmatprep.mubr.bf16.mxu0 %v986_v20 }
  0x28   : > { %954 = vmatprep.mubr.bf16.mxu1 %v987_v21 }
  0x2e   : > { %931 = vmatmul.mubr.bf16.gmra.mrb[4].mxu0 %v988_v22 }
  0x2f   : > { %955 = vmatmul.mubr.bf16.gmra.mrb[4].mxu1 %v989_v23 }
  0xf9   : > { %v928_v24 = vpop.f32.mrb[0].mxu0 }
  0xfa   : > { %v952_v25 = vpop.f32.mrb[0].mxu1  ;;  %v395_v26 = vpop.f32.mrb[1].mxu0 }
  0xfb   : > { %v596_v27 = vpop.f32.mrb[1].mxu1  ;;  %v929_v28 = vpop.f32.mrb[2].mxu0 }
  0xfc   : > { %v848_v29 = vpack.c.bf16 %v929_v28, %v928_v24  ;;  %v953_v30 = vpop.f32.mrb[2].mxu1  ;;  %v398_v31 = vpop.f32.mrb[3].mxu0 }
  0xfd   : > { %v868_v32 = vpack.c.bf16 %v953_v30, %v952_v25  ;;  %v843_v33 = vpack.c.bf16 %v398_v31, %v395_v26  ;;  %v599_v34 = vpop.f32.mrb[3].mxu1 }
  0xfe   : > { %880 = vst [vmem:[%s256_s14 + $0x8] sm:$0xff] %v848_v29   ;;  %v863_v35 = vpack.c.bf16 %v599_v34, %v596_v27 }
  0xff   : > { %883 = vst [vmem:[%s262_s17 + $0x8] sm:$0xff] %v868_v32   ;;  %844 = vst [vmem:[%s256_s14] sm:$0xff] %v843_v33  }
 0x100   : > { %864 = vst [vmem:[%s262_s17] sm:$0xff] %v863_v35  }
 0x101   : > { %v932_v36 = vpop.f32.mrb[4].mxu0 }
 0x102   : > { %v956_v37 = vpop.f32.mrb[4].mxu1  ;;  %v411_v38 = vpop.f32.mrb[5].mxu0 }
 0x103   : > { %v612_v39 = vpop.f32.mrb[5].mxu1  ;;  %v933_v40 = vpop.f32.mrb[6].mxu0 }
 0x104   : > { %v858_v41 = vpack.c.bf16 %v933_v40, %v932_v36  ;;  %v957_v42 = vpop.f32.mrb[6].mxu1  ;;  %v414_v43 = vpop.f32.mrb[7].mxu0 }
 0x105   : > { %v878_v44 = vpack.c.bf16 %v957_v42, %v956_v37  ;;  %v853_v45 = vpack.c.bf16 %v414_v43, %v411_v38  ;;  %v615_v46 = vpop.f32.mrb[7].mxu1 }
 0x106   : > { %882 = vst [vmem:[%s256_s14 + $0x18] sm:$0xff] %v858_v41   ;;  %v873_v47 = vpack.c.bf16 %v615_v46, %v612_v39 }
 0x107   : > { %885 = vst [vmem:[%s262_s17 + $0x18] sm:$0xff] %v878_v44   ;;  %881 = vst [vmem:[%s256_s14 + $0x10] sm:$0xff] %v853_v45  }
 0x108   : > { %884 = vst [vmem:[%s262_s17 + $0x10] sm:$0xff] %v873_v47  }
 0x109 PF: > { %s16_s18 = sadd.s32 1, %s996_s18  }
 0x10a   : > { %p13_p4 = scmp.ge.s32.totalorder %s16_s18, 10  }
 0x10c   :  { %15 = sbr.rel (!%p13_p4) target bundleno = 1 (0x1), region = 81 }

// kernel: permutator_block.7
= control target key start
LH: loop header
LB: loop body
LE: loop exit
PB: predicated region body
PF: predicated region fallthrough
CT: control target
= control target key end

     0   :  { %s1144_s24 = smov 0   ;;  %s1146_s25 = smov 0   ;;  %s1265_s0 = inlined_call_operand.vmem [shape: bf16[2,256,128], index: 0, kind: input, shape index: {}]   ;;  %s1266_s1 = inlined_call_operand.vmem [shape: bf16[2,256,128], index: 1, kind: input, shape index: {}]   ;;  %s1267_s2 = inlined_call_operand.vmem [shape: bf16[2,256,128], index: 2, kind: input, shape index: {}]   ;;  %s1268_s3 = inlined_call_operand.vmem [shape: bf16[128,32], index: 3, kind: input, shape index: {}]   ;;  %s1269_s4 = inlined_call_operand.vmem [shape: f32[1,32], index: 4, kind: input, shape index: {}]   ;;  %s1270_s5 = inlined_call_operand.vmem [shape: bf16[32,384], index: 5, kind: input, shape index: {}]   ;;  %s1271_s6 = inlined_call_operand.vmem [shape: f32[1,384], index: 6, kind: input, shape index: {}]   ;;  %s1272_s7 = inlined_call_operand.vmem [shape: f32[2,3,128], index: 7, kind: output, shape index: {}]  }
   0x1   :  { %s1148_s26 = smov 0   ;;  %s1150_s27 = smov 0  }
   0x2   :  { %s1152_s28 = smov 0  }
   0x3 LB: > { %s26_s29 = sadd.s32 1, %s1090_s26  ;;  %s29_s30 = sadd.s32 1, %s1094_s27  ;;  %s1098_s28 = sphi %s1152_s28, %s17_s28   ;;  %s1094_s27 = sphi %s1150_s27, %s1278_s27   ;;  %s1090_s26 = sphi %s1148_s26, %s1277_s26   ;;  %s1086_s25 = sphi %s1146_s25, %s1276_s25   ;;  %s1082_s24 = sphi %s1144_s24, %s1275_s24  }
   0x4   : > { %p27_p0 = scmp.ge.s32.totalorder %s26_s29, 4  ;;  %p862_p1 = scmp.ge.s32.totalorder %s1098_s28, 1 }
   0x5   : > { %p290_p2 = scmp.lt.s32.totalorder %s1098_s28, 9 }
   0x6   : > { %s1280_s29 = smov (%p27_p0, %s26_s29), 0  ;;  %s1282_s30 = smov (!%p27_p0, %s29_s30), %s1094_s27 }
   0x7   : > { %p291_p3 = pnand %p862_p1, %p290_p2  ;;  %p31_p4 = scmp.ge.s32.totalorder %s1282_s30, 2 }
   0x8   : > { %s863_s8 = sshll.u32 (!%p291_p3), %s1082_s24, 3  ;;  %p344_p5 = scmp.lt.s32.totalorder (!%p291_p3), %s1086_s25, 1 }
   0x9   : > { %s1284_s30 = smov (%p31_p4, %s1282_s30), 0  ;;  %294 = sbr.rel (%p291_p3) target bundleno = 570 (0x23a), region = 48 }
   0xa   : > { %1273 = sst [smem:[#allocation3_spill]] %s1284_s30  ;;  %p346_p6 = scmp.lt.s32.totalorder (!%p291_p3), %s863_s8, 31 }
   0xb   : > { %p873_p7 = scmp.ne.s32.totalorder (!%p291_p3), %s1082_s24, 0 }
  0x10   : > { %s1286_s25 = smov (!%p344_p5, %s1086_s25), 1  ;;  %s1288_s8 = smov (!%p346_p6, %s863_s8), 31 }
  0x11   : > { %s864_s9 = sshll.u32 %s1286_s25, 5  ;;  %s872_s10 = sshll.u32 %s1286_s25, 2  ;;  %v1100_v0 = vmov (!%p873_p7), 0.0  }
  0x12   : > { %s349_s11 = sadd.s32 %s864_s9, %s1288_s8  ;;  %s1180_s14 = scalar_lea.vmem %s1272_s7, %s872_s10  ;;  %382 = vst [vmem:[#allocation2] sm:$0x1] (!%p873_p7), %v1100_v0 }
  0x13   : > { %s865_s15 = sshll.u32 %s349_s11, 2  ;;  %381 = sbr.rel (%p873_p7) target bundleno = 26 (0x1a), region = 52 }
  0x14   : > { %s351_s18 = scalar_lea.vmem %s1265_s0, %s865_s15  ;;  %s361_s21 = scalar_lea.vmem %s1266_s1, %s865_s15 }
  0x15   : > { %s1191_s30 = scalar_lea.vmem %s1267_s2, %s865_s15 }
  0x1a PF: > { %v894_v1 = vld [vmem:[%s351_s18] sm:$0xff]   ;;  %v941_v2 = vld [vmem:[%s351_s18 + $0x8] sm:$0xff]   ;;  %v942_v6 = vld [vmem:[%s351_s18 + $0x10] sm:$0xff]   ;;  %p874_p8 = scmp.ne.s32.totalorder %s1082_s24, 3 }
  0x1b   : > { %v895_v3 = vunpack.c.l.bf16 %v894_v1  ;;  %v896_v4 = vunpack.c.h.bf16 %v894_v1  ;;  %v899_v5 = vunpack.c.l.bf16 %v941_v2  ;;  %v910_v7 = vld [vmem:[%s361_s21] sm:$0xff]   ;;  %v944_v8 = vld [vmem:[%s361_s21 + $0x8] sm:$0xff]   ;;  %v900_v9 = vunpack.c.h.bf16 %v941_v2  ;;  %v945_v10 = vld [vmem:[%s361_s21 + $0x10] sm:$0xff]  }
  0x1c   : > { %v911_v11 = vunpack.c.l.bf16 %v910_v7  ;;  %v912_v12 = vunpack.c.h.bf16 %v910_v7  ;;  %v915_v13 = vunpack.c.l.bf16 %v944_v8  ;;  %v916_v14 = vunpack.c.h.bf16 %v944_v8  ;;  %v926_v17 = vld [vmem:[%s1191_s30] sm:$0xff]   ;;  %v947_v18 = vld [vmem:[%s1191_s30 + $0x8] sm:$0xff]   ;;  %v943_v19 = vld [vmem:[%s351_s18 + $0x18] sm:$0xff]  }
  0x1d   : > { %v903_v15 = vunpack.c.l.bf16 %v942_v6  ;;  %v919_v16 = vunpack.c.l.bf16 %v945_v10  ;;  %v946_v20 = vld [vmem:[%s361_s21 + $0x18] sm:$0xff]   ;;  %v904_v24 = vunpack.c.h.bf16 %v942_v6  ;;  %v920_v25 = vunpack.c.h.bf16 %v945_v10  ;;  %v948_v27 = vld [vmem:[%s1191_s30 + $0x10] sm:$0xff]   ;;  %v447_v1 = vld [vmem:[#allocation2] sm:$0x1] }
  0x1e   : > { %v415_v21 = vadd.f32 %v911_v11, %v895_v3  ;;  %v416_v22 = vadd.f32 %v912_v12, %v896_v4  ;;  %v417_v23 = vadd.f32 %v915_v13, %v899_v5  ;;  %v418_v26 = vadd.f32 %v916_v14, %v900_v9  ;;  %v949_v41 = vld [vmem:[%s1191_s30 + $0x18] sm:$0xff]   ;;  %v1034_v4 = vld [vmem:[%s1268_s3] sm:$0xff] (!%p874_p8)   ;;  %v1035_v6 = vld [vmem:[%s1268_s3 + $0x8] sm:$0xff] (!%p874_p8)  }
  0x1f   : > { %v927_v28 = vunpack.c.l.bf16 %v926_v17  ;;  %v928_v29 = vunpack.c.h.bf16 %v926_v17  ;;  %v931_v30 = vunpack.c.l.bf16 %v947_v18  ;;  %v932_v31 = vunpack.c.h.bf16 %v947_v18  ;;  %v1036_v7 = vld [vmem:[%s1268_s3 + $0x10] sm:$0xff] (!%p874_p8)   ;;  %v1037_v8 = vld [vmem:[%s1268_s3 + $0x18] sm:$0xff] (!%p874_p8)   ;;  %v1038_v9 = vld [vmem:[%s1268_s3 + $0x20] sm:$0xff] (!%p874_p8)  }
  0x20   : > { %v907_v32 = vunpack.c.l.bf16 %v943_v19  ;;  %v923_v33 = vunpack.c.l.bf16 %v946_v20  ;;  %v419_v34 = vadd.f32 %v919_v16, %v903_v15  ;;  %v935_v35 = vunpack.c.l.bf16 %v948_v27  ;;  %v1039_v10 = vld [vmem:[%s1268_s3 + $0x28] sm:$0xff] (!%p874_p8)   ;;  %v1040_v11 = vld [vmem:[%s1268_s3 + $0x30] sm:$0xff] (!%p874_p8)   ;;  %v1041_v14 = vld [vmem:[%s1268_s3 + $0x38] sm:$0xff] (!%p874_p8)  }
  0x21   : > { %v439_v36 = vadd.f32 %v927_v28, %v415_v21  ;;  %v440_v37 = vadd.f32 %v928_v29, %v416_v22  ;;  %v441_v38 = vadd.f32 %v931_v30, %v417_v23  ;;  %v908_v39 = vunpack.c.h.bf16 %v943_v19  ;;  %v1042_v16 = vld [vmem:[%s1270_s5 + $0x4] ss:$12 sps:$4 sm:$0xff] (!%p874_p8)   ;;  %v1044_v17 = vld [vmem:[%s1270_s5] ss:$12 sps:$4 sm:$0xff] (!%p874_p8)   ;;  %v1045_v18 = vld [vmem:[%s1270_s5 + $0x1c] ss:$12 sps:$4 sm:$0xff] (!%p874_p8)  }
  0x22   : > { %v924_v40 = vunpack.c.h.bf16 %v946_v20  ;;  %v420_v42 = vadd.f32 %v920_v25, %v904_v24  ;;  %v936_v43 = vunpack.c.h.bf16 %v948_v27  ;;  %v442_v44 = vadd.f32 %v932_v31, %v418_v26  ;;  %642 = vmatprep.subr.bf16.mxu1 (!%p874_p8), %v1042_v16  ;;  %v1047_v19 = vld [vmem:[%s1270_s5 + $0x18] ss:$12 sps:$4 sm:$0xff] (!%p874_p8)   ;;  %v486_v21 = vld [vmem:[%s1269_s4] sm:$0x1] (!%p874_p8) }
  0x23   : > { %v448_v45 = vadd.f32 %v440_v37, %v439_v36  ;;  %v421_v46 = vadd.f32 %v923_v33, %v907_v32  ;;  %v939_v47 = vunpack.c.l.bf16 %v949_v41  ;;  %v443_v48 = vadd.f32 %v935_v35, %v419_v34  ;;  %643 = vmatpush1.bf16.msra.mxu1 (!%p874_p8), %v1044_v17  ;;  %v1048_v32 = vld [vmem:[%s1270_s5 + $0x8] ss:$12 sps:$4 sm:$0xff] (!%p874_p8)   ;;  %v1049_v34 = vld [vmem:[%s1270_s5 + $0x20] ss:$12 sps:$4 sm:$0xff] (!%p874_p8)  }
  0x24   : > { %v422_v50 = vadd.f32 %v924_v40, %v908_v39  ;;  %v940_v51 = vunpack.c.h.bf16 %v949_v41  ;;  %v444_v52 = vadd.f32 %v936_v43, %v420_v42  ;;  %v1101_v5 = vmov (!%p874_p8), 0.0   ;;  %644 = vmatprep.subr.bf16.mxu1 (!%p874_p8), %v1045_v18 }
  0x25   : > { %v449_v49 = vadd.f32 %v448_v45, %v441_v38  ;;  %v445_v54 = vadd.f32 %v939_v47, %v421_v46  ;;  %962 = vmatprep.subr.bf16.mxu0 (!%p874_p8), %v1101_v5  ;;  %vm1102_vm0 = vmmov (!%p874_p8), 0   ;;  %v1103_v20 = vmov (!%p874_p8), 0   ;;  %v589_v38 = vld [vmem:[%s1271_s6] sm:$0x7] (!%p874_p8) }
  0x26   : > { %v446_v56 = vadd.f32 %v940_v51, %v422_v50  ;;  %963 = vmatpush3.bf16.msra.mxu0 (!%p874_p8), %v1034_v4  ;;  %978 = vmatprep.mubr.msk.bf16.mxu0 (!%p874_p8), %vm1102_vm0, %v1101_v5  ;;  %vm638_vm1 = vcmask (!%p874_p8), 261120   ;;  %v623_v35 = vlaneseq (!%p874_p8)  ;;  %vm747_vm2 = vcmask (!%p874_p8), 1040384  }
  0x27   : > { %v450_v53 = vadd.f32 %v449_v49, %v442_v44  ;;  %964 = vmatprep.subr.bf16.mxu0 (!%p874_p8), %v1101_v5  ;;  %645 = vmatpush1.bf16.msra.mxu1 (!%p874_p8), %v1047_v19  ;;  %vm749_vm3 = vcmask (!%p874_p8), 1041408  }
  0x28   : > { %982 = vmatprep.subr.bf16.mxu1 (!%p874_p8), %v1101_v5  ;;  %674 = vmatprep.mubr.bf16.mxu1 (!%p874_p8), %v1103_v20  ;;  %v624_v36 = vshrl.u32 (!%p874_p8), %v623_v35, 7 }
  0x29   : > { %v451_v55 = vadd.f32 %v450_v53, %v443_v48 }
  0x2a   : > { %965 = vmatpush3.bf16.msra.mxu0 (!%p874_p8), %v1035_v6  ;;  %v625_v37 = vsub.s32 (!%p874_p8), 0, %v624_v36  ;;  %v629_v39 = vsub.s32 (!%p874_p8), 1, %v624_v36  ;;  %v633_v45 = vsub.s32 (!%p874_p8), 2, %v624_v36 }
  0x2b   : > { %v452_v57 = vadd.f32 %v451_v55, %v444_v52  ;;  %966 = vmatprep.subr.bf16.mxu0 (!%p874_p8), %v1101_v5 }
  0x2c   : > { %v626_v40 = vrot.slane (!%p874_p8), %v589_v38, %v625_v37  ;;  %v630_v41 = vrot.slane (!%p874_p8), %v589_v38, %v629_v39  ;;  %v634_v50 = vrot.slane (!%p874_p8), %v589_v38, %v633_v45 }
  0x2d   : > { %v453_v58 = vadd.f32 %v452_v57, %v445_v54 }
  0x2e   : > { %967 = vmatpush3.bf16.msra.mxu0 (!%p874_p8), %v1036_v7 }
  0x2f   : > { %v454_v59 = vadd.f32 %v453_v58, %v446_v56  ;;  %968 = vmatprep.subr.bf16.mxu0 (!%p874_p8), %v1101_v5 }
  0x31   : > { %v455_v60 = vrot.slane %v454_v59, 4 }
  0x32   : > { %969 = vmatpush3.bf16.msra.mxu0 (!%p874_p8), %v1037_v8 }
  0x33   : > { %v456_v61 = vadd.f32 %v455_v60, %v454_v59  ;;  %970 = vmatprep.subr.bf16.mxu0 (!%p874_p8), %v1101_v5 }
  0x35   : > { %v457_v62 = vrot.slane %v456_v61, 2 }
  0x36   : > { %971 = vmatpush3.bf16.msra.mxu0 (!%p874_p8), %v1038_v9 }
  0x37   : > { %v458_v63 = vadd.f32 %v457_v62, %v456_v61  ;;  %972 = vmatprep.subr.bf16.mxu0 (!%p874_p8), %v1101_v5 }
  0x39   : > { %v459_v0 = vrot.slane %v458_v63, 1  ;;  %466 = sbr.rel (%p874_p8) target bundleno = 570 (0x23a), region = 56 }
  0x3a   : > { %973 = vmatpush3.bf16.msra.mxu0 (!%p874_p8), %v1039_v10 }
  0x3b   : > { %v460_v2 = vadd.f32 %v459_v0, %v458_v63  ;;  %974 = vmatprep.subr.bf16.mxu0 (!%p874_p8), %v1101_v5 }
  0x3d   : > { %v461_v3 = vadd.f32 %v460_v2, %v447_v1 }
  0x3e   : > { %975 = vmatpush3.bf16.msra.mxu0 (!%p874_p8), %v1040_v11 }
  0x3f   : > { %462 = vst [vmem:[#allocation2] sm:$0x1] %v461_v3  ;;  %976 = vmatprep.subr.bf16.mxu0 (!%p874_p8), %v1101_v5 }
  0x42   : > { %977 = vmatpush3.bf16.msra.mxu0 %v1041_v14 }
  0x46   : > { %v467_v12 = vld [vmem:[#allocation2] sm:$0x1] }
  0x47   : > { %v468_v13 = vmul.f32 0.00390625, %v467_v12 }
  0x49   : > { %v469_v15 = vpack.c.bf16 %v468_v13, %v468_v13 }
  0x4b   : > { %979 = vmatmul.mubr.bf16.vlgmr.msra.gmra.mrb[0].mxu0 %v469_v15 }
 0x11e   : > { %v569_v22 = vpop.f32.mrb[0].mxu0 }
 0x11f   : > { %v570_v23 = vadd.f32 %v569_v22, %v486_v21  ;;  %v980_v24 = vpop.f32.mrb[1].mxu0 }
 0x120   : > { %v572_v25 = vpop.f32.mrb[2].mxu0 }
 0x121   : > { %v576_v26 = vmul.f32 0.70710677, %v570_v23  ;;  %v981_v27 = vpop.f32.mrb[3].mxu0  ;;  %v575_v29 = vmul.f32 0.5, %v570_v23 }
 0x123   : > { %1050 = verf.f32 %v576_v26 }
 0x12d   : > { %v1051_v28 = vpop.eup %1050 }
 0x12e   : > { %v578_v30 = vadd.f32 1.0, %v1051_v28 }
 0x130   : > { %v579_v31 = vmul.f32 %v578_v30, %v575_v29 }
 0x132   : > { %v580_v33 = vpack.c.bf16 %v579_v31, %v579_v31 }
 0x134   : > { %889 = vmatmul.mubr.msk.bf16.vlgmr.msra.gmra.mrb[0].mxu1 %vm638_vm1, %v580_v33 }
 0x135   : > { %983 = vmatpush3.bf16.msra.mxu1 %v1048_v32  ;;  %986 = vmatprep.mubr.msk.bf16.mxu1 %vm1102_vm0, %v1101_v5 }
 0x136   : > { %984 = vmatprep.subr.bf16.mxu1 %v1101_v5 }
 0x139   : > { %985 = vmatpush3.bf16.msra.mxu1 %v1049_v34 }
 0x13c   : > { %987 = vmatmul.mubr.msk.bf16.vlgmr.msra.gmra.mrb[4].mxu1 %vm638_vm1, %v580_v33 }
 0x207   : > { %v676_v42 = vpop.f32.mrb[0].mxu1 }
 0x208   : > { %v677_v43 = vadd.f32 %v676_v42, %v626_v40  ;;  %v678_v44 = vpop.f32.mrb[1].mxu1 }
 0x209   : > { %v679_v46 = vadd.f32 %v678_v44, %v630_v41  ;;  %v680_v47 = vpop.f32.mrb[2].mxu1 }
 0x20a   : > { %v681_v48 = vpop.f32.mrb[3].mxu1 }
 0x20b   : > { %v723_v49 = vmax.f32 %v677_v43, %v679_v46 }
 0x20f   : > { %v717_v51 = vpop.f32.mrb[4].mxu1 }
 0x210   : > { %v718_v52 = vadd.f32 %v717_v51, %v634_v50  ;;  %v988_v53 = vpop.f32.mrb[5].mxu1 }
 0x211   : > { %v720_v54 = vpop.f32.mrb[6].mxu1 }
 0x212   : > { %v724_v55 = vmax.f32 %v723_v49, %v718_v52  ;;  %v989_v56 = vpop.f32.mrb[7].mxu1 }
 0x214   : > { %v725_v57 = vsub.f32 %v677_v43, %v724_v55  ;;  %v728_v58 = vsub.f32 %v679_v46, %v724_v55  ;;  %v731_v59 = vsub.f32 %v718_v52, %v724_v55 }
 0x216   : > { %v726_v60 = vmul.f32 1.442695, %v725_v57  ;;  %v729_v61 = vmul.f32 1.442695, %v728_v58  ;;  %v732_v62 = vmul.f32 1.442695, %v731_v59 }
 0x218   : > { %1052 = vpow2.f32 %v726_v60 }
 0x219   : > { %1054 = vpow2.f32 %v729_v61 }
 0x21a   : > { %1056 = vpow2.f32 %v732_v62 }
 0x222   : > { %v1053_v63 = vpop.eup %1052 }
 0x223   : > { %v1055_v0 = vpop.eup %1054 }
 0x224   : > { %v734_v1 = vadd.f32 %v1055_v0, %v1053_v63  ;;  %v1057_v2 = vpop.eup %1056 }
 0x226   : > { %v735_v3 = vadd.f32 %v1057_v2, %v734_v1 }
 0x228   : > { %1058 = vrcp.f32 %v735_v3 }
 0x232   : > { %v1059_v4 = vpop.eup %1058 }
 0x233   : > { %v738_v5 = vmul.f32 %v1059_v4, %v1053_v63  ;;  %v739_v6 = vmul.f32 %v1059_v4, %v1055_v0  ;;  %v740_v7 = vmul.f32 %v1059_v4, %v1057_v2 }
 0x235   : > { %v742_v8 = vrot.slane %v739_v6, 7  ;;  %v745_v9 = vrot.slane %v740_v7, 6 }
 0x237   : > { %v748_v10 = vsel %vm747_vm2, %v738_v5, %v742_v8 }
 0x238   : > { %v750_v11 = vsel %vm749_vm3, %v748_v10, %v745_v9 }
 0x239   : > { %751 = vst [vmem:[%s1180_s14] sm:$0x7] %v750_v11 }
 0x23a PF: > { %s17_s28 = sadd.s32 1, %s1098_s28   ;;  %s1274_s20 = sld [smem:[#allocation3_spill]] }
 0x23b   : > { %p14_p9 = scmp.ge.s32.totalorder %s17_s28, 10   ;;  %s1275_s24 = smov %s1090_s26 }
 0x23c   : > { %s1276_s25 = smov %s1094_s27  ;;  %s1277_s26 = smov %s1280_s29 }
 0x23d   :  { %16 = sbr.rel (!%p14_p9) target bundleno = 3 (0x3), region = 92 }
 0x240   : > { %s1278_s27 = smov %s1274_s20 }

// kernel: permutator_block.8
= control target key start
LH: loop header
LB: loop body
LE: loop exit
PB: predicated region body
PF: predicated region fallthrough
CT: control target
= control target key end

     0   :  { %s1134_s24 = smov 0   ;;  %s1136_s25 = smov 0   ;;  %s1279_s0 = inlined_call_operand.vmem [shape: bf16[2,256,128], index: 0, kind: input, shape index: {}]   ;;  %s1280_s1 = inlined_call_operand.vmem [shape: bf16[2,256,128], index: 1, kind: input, shape index: {}]   ;;  %s1281_s2 = inlined_call_operand.vmem [shape: bf16[2,256,128], index: 2, kind: input, shape index: {}]   ;;  %s1282_s3 = inlined_call_operand.vmem [shape: f32[2,256,128], index: 3, kind: input, shape index: {}]   ;;  %s1283_s4 = inlined_call_operand.vmem [shape: f32[2,3,128], index: 4, kind: input, shape index: {}]   ;;  %s1284_s5 = inlined_call_operand.vmem [shape: bf16[128,128], index: 5, kind: input, shape index: {}]   ;;  %s1285_s6 = inlined_call_operand.vmem [shape: f32[1,128], index: 6, kind: input, shape index: {}]   ;;  %s1286_s7 = inlined_call_operand.vmem [shape: f32[2,256,128], index: 7, kind: output, shape index: {}]  }
   0x1   :  { %s1138_s26 = smov 0   ;;  %s1140_s27 = smov 0  }
   0x2   :  { %s1142_s28 = smov 0  }
   0x3 LB: > { %s26_s29 = sadd.s32 1, %s1084_s26  ;;  %s29_s30 = sadd.s32 1, %s1088_s27  ;;  %s1092_s28 = sphi %s1142_s28, %s17_s28   ;;  %s1088_s27 = sphi %s1140_s27, %s1290_s27   ;;  %s1084_s26 = sphi %s1138_s26, %s1289_s26   ;;  %s1080_s25 = sphi %s1136_s25, %s1288_s25   ;;  %s1076_s24 = sphi %s1134_s24, %s1287_s24  }
   0x4   : > { %p27_p0 = scmp.ge.s32.totalorder %s26_s29, 4  ;;  %p869_p1 = scmp.ge.s32.totalorder %s1092_s28, 1 }
   0x5   : > { %p318_p2 = scmp.lt.s32.totalorder %s1092_s28, 9 }
   0x6   : > { %s1292_s29 = smov (%p27_p0, %s26_s29), 0  ;;  %s1294_s30 = smov (!%p27_p0, %s29_s30), %s1088_s27 }
   0x7   : > { %p319_p3 = pnand %p869_p1, %p318_p2  ;;  %p31_p4 = scmp.ge.s32.totalorder %s1294_s30, 2 }
   0x8   : > { %v1046_v0 = vld [vmem:[%s1284_s5] sm:$0xff] (!%p319_p3)   ;;  %s870_s10 = sshll.u32 (!%p319_p3), %s1076_s24, 3  ;;  %v1047_v1 = vld [vmem:[%s1284_s5 + $0x8] sm:$0xff] (!%p319_p3)   ;;  %p390_p5 = scmp.lt.s32.totalorder (!%p319_p3), %s1080_s25, 1  ;;  %v1048_v2 = vld [vmem:[%s1284_s5 + $0x10] sm:$0xff] (!%p319_p3)   ;;  %v461_v3 = vlaneseq (!%p319_p3) }
   0x9   : > { %s1296_s30 = smov (%p31_p4, %s1294_s30), 0  ;;  %322 = sbr.rel (%p319_p3) target bundleno = 265 (0x109), region = 48 }
   0xa   : > { %966 = vmatprep.subr.bf16.mxu0 (!%p319_p3), %v1046_v0  ;;  %990 = vmatprep.subr.bf16.mxu1 (!%p319_p3), %v1046_v0  ;;  %p392_p6 = scmp.lt.s32.totalorder (!%p319_p3), %s870_s10, 31  ;;  %v1049_v4 = vld [vmem:[%s1284_s5 + $0x18] sm:$0xff] (!%p319_p3)   ;;  %v462_v6 = vshrl.u32 (!%p319_p3), %v461_v3, 7  ;;  %v1050_v21 = vld [vmem:[%s1284_s5 + $0x20] sm:$0xff] (!%p319_p3)   ;;  %v1051_v39 = vld [vmem:[%s1284_s5 + $0x28] sm:$0xff] (!%p319_p3)  }
   0xb   : > { %967 = vmatpush3.bf16.msra.mxu0 (!%p319_p3), %v1046_v0  ;;  %998 = vmatpush3.bf16.msra.mxu1 (!%p319_p3), %v1046_v0  ;;  %v1052_v59 = vld [vmem:[%s1284_s5 + $0x30] sm:$0xff] (!%p319_p3)  }
   0xc   : > { %968 = vmatprep.subr.bf16.mxu0 (!%p319_p3), %v1047_v1  ;;  %991 = vmatprep.subr.bf16.mxu1 (!%p319_p3), %v1047_v1  ;;  %v463_v12 = vsub.s32 (!%p319_p3), 0, %v462_v6  ;;  %v491_v18 = vsub.s32 (!%p319_p3), 1, %v462_v6  ;;  %v527_v23 = vsub.s32 (!%p319_p3), 2, %v462_v6 }
   0xf   : > { %969 = vmatpush3.bf16.msra.mxu0 (!%p319_p3), %v1047_v1  ;;  %999 = vmatpush3.bf16.msra.mxu1 (!%p319_p3), %v1047_v1 }
  0x10   : > { %s1298_s25 = smov (!%p390_p5, %s1080_s25), 1  ;;  %s1300_s10 = smov (!%p392_p6, %s870_s10), 31  ;;  %970 = vmatprep.subr.bf16.mxu0 %v1048_v2  ;;  %992 = vmatprep.subr.bf16.mxu1 %v1048_v2 }
  0x11   : > { %s871_s15 = sshll.u32 %s1298_s25, 5  ;;  %s882_s17 = sshll.u32 %s1298_s25, 2 }
  0x12   : > { %s1176_s16 = sadd.s32 %s871_s15, %s1300_s10  ;;  %s432_s21 = scalar_lea.vmem %s1283_s4, %s882_s17 }
  0x13   : > { %s872_s18 = sshll.u32 %s1176_s16, 2  ;;  %v444_v5 = vld [vmem:[%s432_s21] sm:$0x7]  ;;  %971 = vmatpush3.bf16.msra.mxu0 %v1048_v2  ;;  %1000 = vmatpush3.bf16.msra.mxu1 %v1048_v2  ;;  %s881_s24 = sshll.u32 %s1176_s16, 3 }
  0x14   : > { %s1188_s9 = scalar_lea.vmem %s1279_s0, %s872_s18  ;;  %s1193_s11 = scalar_lea.vmem %s1280_s1, %s872_s18  ;;  %972 = vmatprep.subr.bf16.mxu0 %v1049_v4  ;;  %993 = vmatprep.subr.bf16.mxu1 %v1049_v4  ;;  %v1209_v22 = vrot.slane %v444_v5, %v463_v12  ;;  %v1211_v26 = vrot.slane %v444_v5, %v491_v18  ;;  %v1216_v33 = vrot.slane %v444_v5, %v527_v23 }
  0x15   : > { %s1198_s14 = scalar_lea.vmem %s1281_s2, %s872_s18  ;;  %v898_v7 = vld [vmem:[%s1188_s9] sm:$0xff]   ;;  %v946_v9 = vld [vmem:[%s1188_s9 + $0x10] sm:$0xff]   ;;  %v945_v30 = vld [vmem:[%s1188_s9 + $0x8] sm:$0xff]   ;;  %s427_s10 = scalar_lea.vmem %s1282_s3, %s881_s24 }
  0x16   : > { %v914_v8 = vld [vmem:[%s1193_s11] sm:$0xff]   ;;  %v899_v10 = vunpack.c.l.bf16 %v898_v7  ;;  %v900_v11 = vunpack.c.h.bf16 %v898_v7  ;;  %v949_v15 = vld [vmem:[%s1193_s11 + $0x10] sm:$0xff]   ;;  %v907_v24 = vunpack.c.l.bf16 %v946_v9  ;;  %v908_v25 = vunpack.c.h.bf16 %v946_v9  ;;  %v948_v44 = vld [vmem:[%s1193_s11 + $0x8] sm:$0xff]   ;;  %s441_s13 = scalar_lea.vmem %s1286_s7, %s881_s24 }
  0x17   : > { %v915_v13 = vunpack.c.l.bf16 %v914_v8  ;;  %v930_v14 = vld [vmem:[%s1198_s14] sm:$0xff]   ;;  %v952_v16 = vld [vmem:[%s1198_s14 + $0x10] sm:$0xff]   ;;  %v916_v17 = vunpack.c.h.bf16 %v914_v8  ;;  %v923_v27 = vunpack.c.l.bf16 %v949_v15  ;;  %v924_v28 = vunpack.c.h.bf16 %v949_v15  ;;  %973 = vmatpush3.bf16.msra.mxu0 %v1049_v4  ;;  %1001 = vmatpush3.bf16.msra.mxu1 %v1049_v4  ;;  %v951_v49 = vld [vmem:[%s1198_s14 + $0x8] sm:$0xff]  }
  0x18   : > { %v931_v19 = vunpack.c.l.bf16 %v930_v14  ;;  %v932_v20 = vunpack.c.h.bf16 %v930_v14  ;;  %v939_v29 = vunpack.c.l.bf16 %v952_v16  ;;  %v465_v31 = vmul.f32 %v899_v10, %v1209_v22  ;;  %974 = vmatprep.subr.bf16.mxu0 %v1050_v21  ;;  %994 = vmatprep.subr.bf16.mxu1 %v1050_v21  ;;  %v947_v58 = vld [vmem:[%s1188_s9 + $0x18] sm:$0xff]  }
  0x19   : > { %v466_v32 = vmul.f32 %v900_v11, %v1209_v22  ;;  %v469_v34 = vmul.f32 %v907_v24, %v1209_v22  ;;  %v493_v35 = vmul.f32 %v915_v13, %v1211_v26  ;;  %v494_v36 = vmul.f32 %v916_v17, %v1211_v26  ;;  %v950_v0 = vld [vmem:[%s1193_s11 + $0x18] sm:$0xff]  }
  0x1a   : > { %v470_v37 = vmul.f32 %v908_v25, %v1209_v22  ;;  %v940_v38 = vunpack.c.h.bf16 %v952_v16  ;;  %v529_v40 = vmul.f32 %v931_v19, %v1216_v33  ;;  %v530_v41 = vmul.f32 %v932_v20, %v1216_v33  ;;  %v953_v9 = vld [vmem:[%s1198_s14 + $0x18] sm:$0xff]  }
  0x1b   : > { %v497_v42 = vmul.f32 %v923_v27, %v1211_v26  ;;  %v903_v43 = vunpack.c.l.bf16 %v945_v30  ;;  %v501_v45 = vadd.f32 %v493_v35, %v465_v31  ;;  %v502_v46 = vadd.f32 %v494_v36, %v466_v32  ;;  %975 = vmatpush3.bf16.msra.mxu0 %v1050_v21  ;;  %1002 = vmatpush3.bf16.msra.mxu1 %v1050_v21  ;;  %v1053_v14 = vld [vmem:[%s1284_s5 + $0x38] sm:$0xff]   ;;  %v687_v35 = vld [vmem:[%s427_s10 + $0x10] sm:$0xff] }
  0x1c   : > { %v498_v47 = vmul.f32 %v924_v28, %v1211_v26  ;;  %v533_v48 = vmul.f32 %v939_v29, %v1216_v33  ;;  %v534_v51 = vmul.f32 %v940_v38, %v1216_v33  ;;  %v904_v52 = vunpack.c.h.bf16 %v945_v30  ;;  %976 = vmatprep.subr.bf16.mxu0 %v1051_v39  ;;  %995 = vmatprep.subr.bf16.mxu1 %v1051_v39 }
  0x1d   : > { %v505_v50 = vadd.f32 %v497_v42, %v469_v34  ;;  %v467_v53 = vmul.f32 %v903_v43, %v1209_v22  ;;  %v537_v54 = vadd.f32 %v529_v40, %v501_v45  ;;  %v538_v55 = vadd.f32 %v530_v41, %v502_v46  ;;  %v685_v41 = vld [vmem:[%s427_s10] sm:$0xff] }
  0x1e   : > { %v506_v56 = vadd.f32 %v498_v47, %v470_v37  ;;  %v919_v57 = vunpack.c.l.bf16 %v948_v44  ;;  %v468_v61 = vmul.f32 %v904_v52, %v1209_v22  ;;  %v920_v62 = vunpack.c.h.bf16 %v948_v44  ;;  %v691_v37 = vld [vmem:[%s427_s10 + $0x30] sm:$0xff]  ;;  %v689_v43 = vld [vmem:[%s427_s10 + $0x20] sm:$0xff]  ;;  %v688_v47 = vld [vmem:[%s427_s10 + $0x18] sm:$0xff] }
  0x1f   : > { %v541_v60 = vadd.f32 %v533_v48, %v505_v50  ;;  %v935_v63 = vunpack.c.l.bf16 %v951_v49  ;;  %v545_v1 = vpack.c.bf16 %v538_v55, %v537_v54  ;;  %v936_v4 = vunpack.c.h.bf16 %v951_v49  ;;  %977 = vmatpush3.bf16.msra.mxu0 %v1051_v39  ;;  %1003 = vmatpush3.bf16.msra.mxu1 %v1051_v39  ;;  %v692_v49 = vld [vmem:[%s427_s10 + $0x38] sm:$0xff]  ;;  %v686_v55 = vld [vmem:[%s427_s10 + $0x8] sm:$0xff] }
  0x20   : > { %v542_v2 = vadd.f32 %v534_v51, %v506_v56  ;;  %v495_v3 = vmul.f32 %v919_v57, %v1211_v26  ;;  %v496_v5 = vmul.f32 %v920_v62, %v1211_v26  ;;  %v911_v7 = vunpack.c.l.bf16 %v947_v58  ;;  %978 = vmatprep.subr.bf16.mxu0 %v1052_v59  ;;  %996 = vmatprep.subr.bf16.mxu1 %v1052_v59  ;;  %v690_v57 = vld [vmem:[%s427_s10 + $0x28] sm:$0xff] }
  0x21   : > { %v531_v6 = vmul.f32 %v935_v63, %v1216_v33  ;;  %v912_v8 = vunpack.c.h.bf16 %v947_v58  ;;  %v532_v12 = vmul.f32 %v936_v4, %v1216_v33  ;;  %v927_v13 = vunpack.c.l.bf16 %v950_v0  ;;  %982 = vmatprep.mubr.bf16.mxu0 %v545_v1 }
  0x22   : > { %v547_v10 = vpack.c.bf16 %v542_v2, %v541_v60  ;;  %v503_v11 = vadd.f32 %v495_v3, %v467_v53  ;;  %v504_v15 = vadd.f32 %v496_v5, %v468_v61  ;;  %v471_v16 = vmul.f32 %v911_v7, %v1209_v22 }
  0x23   : > { %v472_v17 = vmul.f32 %v912_v8, %v1209_v22  ;;  %v928_v18 = vunpack.c.h.bf16 %v950_v0  ;;  %v499_v19 = vmul.f32 %v927_v13, %v1211_v26  ;;  %v943_v20 = vunpack.c.l.bf16 %v953_v9  ;;  %979 = vmatpush3.bf16.msra.mxu0 %v1052_v59  ;;  %1004 = vmatpush3.bf16.msra.mxu1 %v1052_v59 }
  0x24   : > { %986 = vmatprep.mubr.bf16.mxu1 %v547_v10  ;;  %v944_v21 = vunpack.c.h.bf16 %v953_v9  ;;  %v539_v23 = vadd.f32 %v531_v6, %v503_v11  ;;  %v540_v24 = vadd.f32 %v532_v12, %v504_v15  ;;  %980 = vmatprep.subr.bf16.mxu0 %v1053_v14 }
  0x25   : > { %v500_v25 = vmul.f32 %v928_v18, %v1211_v26  ;;  %v507_v27 = vadd.f32 %v499_v19, %v471_v16  ;;  %v535_v28 = vmul.f32 %v943_v20, %v1216_v33  ;;  %997 = vmatprep.subr.bf16.mxu1 %v1053_v14  ;;  %v886_v26 = vld [vmem:[%s1285_s6] ss:$0 sm:$0xff] }
  0x26   : > { %v536_v29 = vmul.f32 %v944_v21, %v1216_v33  ;;  %v546_v31 = vpack.c.bf16 %v540_v24, %v539_v23 }
  0x27   : > { %v508_v22 = vadd.f32 %v500_v25, %v472_v17  ;;  %v543_v30 = vadd.f32 %v535_v28, %v507_v27  ;;  %981 = vmatpush3.bf16.msra.mxu0 %v1053_v14  ;;  %1005 = vmatpush3.bf16.msra.mxu1 %v1053_v14 }
  0x29   : > { %v544_v32 = vadd.f32 %v536_v29, %v508_v22 }
  0x2a   : > { %983 = vmatmul.mubr.bf16.vlgmr.msra.gmra.mrb[0].mxu0 %v546_v31 }
  0x2b   : > { %v548_v34 = vpack.c.bf16 %v544_v32, %v543_v30 }
  0x2d   : > { %987 = vmatmul.mubr.bf16.vlgmr.msra.gmra.mrb[0].mxu1 %v548_v34 }
  0xfd   : > { %v984_v33 = vpop.f32.mrb[0].mxu0 }
  0xfe   : > { %v663_v38 = vadd.f32 %v984_v33, %v886_v26  ;;  %v654_v40 = vpop.f32.mrb[1].mxu0 }
  0xff   : > { %v655_v44 = vadd.f32 %v886_v26, %v654_v40  ;;  %v985_v46 = vpop.f32.mrb[2].mxu0 }
 0x100   : > { %v988_v36 = vpop.f32.mrb[0].mxu1  ;;  %v695_v50 = vadd.f32 %v687_v35, %v663_v38  ;;  %v666_v52 = vadd.f32 %v985_v46, %v886_v26  ;;  %v657_v54 = vpop.f32.mrb[3].mxu0 }
 0x101   : > { %v679_v39 = vadd.f32 %v988_v36, %v886_v26  ;;  %v670_v42 = vpop.f32.mrb[1].mxu1  ;;  %v693_v58 = vadd.f32 %v685_v41, %v655_v44  ;;  %v658_v60 = vadd.f32 %v886_v26, %v657_v54 }
 0x102   : > { %v671_v45 = vadd.f32 %v886_v26, %v670_v42  ;;  %v989_v48 = vpop.f32.mrb[2].mxu1  ;;  %703 = vst [vmem:[%s441_s13 + $0x10] sm:$0xff] %v695_v50  ;;  %v696_v62 = vadd.f32 %v688_v47, %v666_v52 }
 0x103   : > { %v699_v51 = vadd.f32 %v691_v37, %v679_v39  ;;  %v682_v53 = vadd.f32 %v989_v48, %v886_v26  ;;  %v673_v56 = vpop.f32.mrb[3].mxu1  ;;  %701 = vst [vmem:[%s441_s13] sm:$0xff] %v693_v58  ;;  %v694_v0 = vadd.f32 %v686_v55, %v658_v60 }
 0x104   : > { %v697_v59 = vadd.f32 %v689_v43, %v671_v45  ;;  %v674_v61 = vadd.f32 %v886_v26, %v673_v56  ;;  %704 = vst [vmem:[%s441_s13 + $0x18] sm:$0xff] %v696_v62 }
 0x105   : > { %707 = vst [vmem:[%s441_s13 + $0x30] sm:$0xff] %v699_v51  ;;  %v700_v63 = vadd.f32 %v692_v49, %v682_v53  ;;  %702 = vst [vmem:[%s441_s13 + $0x8] sm:$0xff] %v694_v0 }
 0x106   : > { %705 = vst [vmem:[%s441_s13 + $0x20] sm:$0xff] %v697_v59  ;;  %v698_v1 = vadd.f32 %v690_v57, %v674_v61 }
 0x107   : > { %708 = vst [vmem:[%s441_s13 + $0x38] sm:$0xff] %v700_v63 }
 0x108   : > { %706 = vst [vmem:[%s441_s13 + $0x28] sm:$0xff] %v698_v1 }
 0x109 PF: > { %s17_s28 = sadd.s32 1, %s1092_s28   ;;  %s1287_s24 = smov %s1084_s26 }
 0x10a   : > { %p14_p7 = scmp.ge.s32.totalorder %s17_s28, 10   ;;  %s1288_s25 = smov %s1088_s27 }
 0x10b   : > { %s1289_s26 = smov %s1292_s29  ;;  %s1290_s27 = smov %s1296_s30 }
 0x10c   :  { %16 = sbr.rel (!%p14_p7) target bundleno = 3 (0x3), region = 90 }

// kernel: permutator_block.9
= control target key start
LH: loop header
LB: loop body
LE: loop exit
PB: predicated region body
PF: predicated region fallthrough
CT: control target
= control target key end

     0   :  { %12 = vsyncpa [#allocation5], 0  ;;  %s2710_s0 = inlined_call_operand.vmem [shape: f32[512,128], index: 0, kind: input, shape index: {}]   ;;  %s2711_s1 = inlined_call_operand.vmem [shape: f32[1,128], index: 1, kind: input, shape index: {}]   ;;  %s2712_s2 = inlined_call_operand.vmem [shape: f32[1,128], index: 2, kind: input, shape index: {}]   ;;  %s2713_s3 = inlined_call_operand.vmem [shape: bf16[128,512], index: 3, kind: input, shape index: {}]   ;;  %s2714_s4 = inlined_call_operand.vmem [shape: f32[1,512], index: 4, kind: input, shape index: {}]   ;;  %s2715_s5 = inlined_call_operand.vmem [shape: bf16[512,128], index: 5, kind: input, shape index: {}]   ;;  %s2716_s6 = inlined_call_operand.vmem [shape: f32[1,128], index: 6, kind: input, shape index: {}]   ;;  %s2717_s7 = inlined_call_operand.hbm [shape: f32[512,128], index: 7, kind: output, shape index: {}]  }
   0x1   :  { %14 = vsyncpa [#allocation5 + $0x1], 0  ;;  %s2135_s24 = smov 0   ;;  %s2137_s25 = smov 0  }
   0x2   :  { %s2139_s26 = smov 0   ;;  %s2141_s27 = smov 0  }
   0x3   :  { %s2143_s28 = smov 0   ;;  %s2145_s29 = smov 0  }
   0x4 LB: > { %s1629_s30 = sadd.s32 4294967295, %s2089_s29   ;;  %s1630_s8 = sadd.s32 4294967294, %s2089_s29   ;;  %s2089_s29 = sphi %s2145_s29, %s20_s29   ;;  %s2085_s28 = sphi %s2143_s28, %s2724_s28   ;;  %s2081_s27 = sphi %s2141_s27, %s2723_s27   ;;  %s2077_s26 = sphi %s2139_s26, %s2722_s26   ;;  %s2073_s25 = sphi %s2137_s25, %s2721_s25   ;;  %s2069_s24 = sphi %s2135_s24, %s2720_s24  }
   0x5   : > { %s32_s9 = sadd.s32 1, %s2085_s28  ;;  %s206_s10 = sadd.s32 1, %s2077_s26 }
   0x6   : > { %p34_p0 = scmp.ge.s32.totalorder %s32_s9, 8  ;;  %p216_p1 = scmp.ne.s32.totalorder %s2077_s26, %s2073_s25 }
   0x7   : > { %p217_p2 = scmp.eq.s32.totalorder %s1629_s30, 7  ;;  %p222_p3 = scmp.ne.s32.totalorder %s2073_s25, %s2069_s24 }
   0x8   : > { %s2726_s9 = smov (%p34_p0, %s32_s9), 0  ;;  %p223_p5 = scmp.eq.s32.totalorder %s1630_s8, 7 }
   0x9   : > { %p2175_p4 = por %p217_p2, %p216_p1  ;;  %s203_s12 = ssub.s32 %s2085_s28, %s2726_s9 }
   0xa   : > { %p1636_p6 = scmp.ge.s32.totalorder %s2089_s29, 1  ;;  %p204_p7 = scmp.eq.s32.totalorder %s203_s12, 0 }
   0xb   : > { %p2182_p8 = por %p223_p5, %p222_p3  ;;  %p285_p9 = scmp.lt.s32.totalorder %s2089_s29, 9 }
   0xc   : > { %s2188_s14 = scalar_select %p204_p7, %s2077_s26, %s206_s10  }
   0xd   : > { %p286_p10 = pnand %p1636_p6, %p285_p9 }
   0xe   : > { %s1638_s15 = sshll.u32 (!%p286_p10), %s2081_s27, 3  ;;  %v1851_v8 = vld [vmem:[%s2713_s3 + $0x4] ss:$16 sps:$4 sm:$0xff] (!%p286_p10)   ;;  %v1853_v9 = vld [vmem:[%s2713_s3 + $0xc] ss:$16 sps:$4 sm:$0xff] (!%p286_p10)   ;;  %s328_s22 = sand.u32 (!%p286_p10), 1, %s2073_s25  }
   0xf   : > { %289 = sbr.rel (%p286_p10) target bundleno = 855 (0x357), region = 48  ;;  %p332_p11 = scmp.lt.s32.totalorder (!%p286_p10), %s1638_s15, 63  ;;  %v1855_v10 = vld [vmem:[%s2713_s3] ss:$16 sps:$4 sm:$0xff] (!%p286_p10)   ;;  %v1856_v11 = vld [vmem:[%s2713_s3 + $0x8] ss:$16 sps:$4 sm:$0xff] (!%p286_p10)   ;;  %721 = vmatprep.subr.bf16.mxu0 (!%p286_p10), %v1851_v8  ;;  %794 = vmatprep.subr.bf16.mxu1 (!%p286_p10), %v1853_v9 }
  0x10   : > { %v1857_v12 = vld [vmem:[%s2713_s3 + $0x24] ss:$16 sps:$4 sm:$0xff] (!%p286_p10)   ;;  %v1859_v13 = vld [vmem:[%s2713_s3 + $0x2c] ss:$16 sps:$4 sm:$0xff] (!%p286_p10)   ;;  %722 = vmatpush1.bf16.msra.mxu0 (!%p286_p10), %v1855_v10  ;;  %795 = vmatpush1.bf16.msra.mxu1 (!%p286_p10), %v1856_v11  ;;  %v1861_v46 = vld [vmem:[%s2713_s3 + $0x20] ss:$16 sps:$4 sm:$0xff] (!%p286_p10)  }
  0x11   : > { %723 = vmatprep.subr.bf16.mxu0 (!%p286_p10), %v1857_v12  ;;  %796 = vmatprep.subr.bf16.mxu1 (!%p286_p10), %v1859_v13  ;;  %v1862_v47 = vld [vmem:[%s2713_s3 + $0x28] ss:$16 sps:$4 sm:$0xff] (!%p286_p10)   ;;  %v1863_v48 = vld [vmem:[%s2713_s3 + $0x44] ss:$16 sps:$4 sm:$0xff] (!%p286_p10)   ;;  %v1865_v49 = vld [vmem:[%s2713_s3 + $0x4c] ss:$16 sps:$4 sm:$0xff] (!%p286_p10)  }
  0x12   : > { %v1867_v50 = vld [vmem:[%s2713_s3 + $0x40] ss:$16 sps:$4 sm:$0xff] (!%p286_p10)   ;;  %v1868_v51 = vld [vmem:[%s2713_s3 + $0x48] ss:$16 sps:$4 sm:$0xff] (!%p286_p10)   ;;  %v1869_v52 = vld [vmem:[%s2713_s3 + $0x64] ss:$16 sps:$4 sm:$0xff] (!%p286_p10)  }
  0x13   : > { %v1871_v53 = vld [vmem:[%s2713_s3 + $0x6c] ss:$16 sps:$4 sm:$0xff] (!%p286_p10)   ;;  %v1873_v54 = vld [vmem:[%s2713_s3 + $0x60] ss:$16 sps:$4 sm:$0xff] (!%p286_p10)   ;;  %v1874_v55 = vld [vmem:[%s2713_s3 + $0x68] ss:$16 sps:$4 sm:$0xff] (!%p286_p10)  }
  0x14   : > { %724 = vmatpush1.bf16.msra.mxu0 (!%p286_p10), %v1861_v46  ;;  %797 = vmatpush1.bf16.msra.mxu1 (!%p286_p10), %v1862_v47  ;;  %v1875_v56 = vld [vmem:[%s2713_s3 + $0x84] ss:$16 sps:$4 sm:$0xff] (!%p286_p10)   ;;  %v1877_v57 = vld [vmem:[%s2713_s3 + $0x8c] ss:$16 sps:$4 sm:$0xff] (!%p286_p10)   ;;  %v1879_v58 = vld [vmem:[%s2713_s3 + $0x80] ss:$16 sps:$4 sm:$0xff] (!%p286_p10)  }
  0x15   : > { %725 = vmatprep.subr.bf16.mxu0 (!%p286_p10), %v1863_v48  ;;  %798 = vmatprep.subr.bf16.mxu1 (!%p286_p10), %v1865_v49  ;;  %v1880_v59 = vld [vmem:[%s2713_s3 + $0x88] ss:$16 sps:$4 sm:$0xff] (!%p286_p10)   ;;  %v1881_v60 = vld [vmem:[%s2713_s3 + $0xa4] ss:$16 sps:$4 sm:$0xff] (!%p286_p10)   ;;  %v1883_v61 = vld [vmem:[%s2713_s3 + $0xac] ss:$16 sps:$4 sm:$0xff] (!%p286_p10)  }
  0x16   : > { %s2728_s15 = smov (!%p332_p11, %s1638_s15), 63  ;;  %v1885_v62 = vld [vmem:[%s2713_s3 + $0xa0] ss:$16 sps:$4 sm:$0xff]   ;;  %v1886_v63 = vld [vmem:[%s2713_s3 + $0xa8] ss:$16 sps:$4 sm:$0xff]   ;;  %v2091_v8 = vmov 0  }
  0x17   : > { %s1639_s16 = sshll.u32 %s2728_s15, 3  ;;  %753 = vmatprep.mubr.bf16.mxu0 %v2091_v8  ;;  %826 = vmatprep.mubr.bf16.mxu1 %v2091_v8  ;;  %v1899_v9 = vld [vmem:[%s2715_s5 + $0x40] sm:$0xff]   ;;  %s1637_s8 = sshll.u32 %s328_s22, 6 }
  0x18   : > { %s2194_s19 = scalar_lea.vmem %s2710_s0, %s1639_s16  ;;  %726 = vmatpush1.bf16.msra.mxu0 %v1867_v50  ;;  %799 = vmatpush1.bf16.msra.mxu1 %v1868_v51  ;;  %v1900_v10 = vld [vmem:[%s2715_s5 + $0xc0] sm:$0xff]   ;;  %s2631_s10 = scalar_lea.vmem [#allocation4], %s1637_s8 }
  0x19   : > { %v360_v0 = vld [vmem:[%s2194_s19] sm:$0xff]  ;;  %v362_v1 = vld [vmem:[%s2194_s19 + $0x10] sm:$0xff]  ;;  %v361_v2 = vld [vmem:[%s2194_s19 + $0x8] sm:$0xff]  ;;  %727 = vmatprep.subr.bf16.mxu0 %v1869_v52  ;;  %800 = vmatprep.subr.bf16.mxu1 %v1871_v53  ;;  %s1712_s12 = sshll.u32 %s2081_s27, 10  ;;  %s1517_s15 = sshll.u32 %s2631_s10, 4  ;;  %s2658_s15 = int_to_ptr.vmem [resolvable:$true] %s1517_s15 }
  0x1a   : > { %368 = vadd.xlane.f32.xlu0 %v360_v0  ;;  %372 = vadd.xlane.f32.xlu1 %v362_v1  ;;  %v363_v3 = vld [vmem:[%s2194_s19 + $0x18] sm:$0xff]  ;;  %v364_v4 = vld [vmem:[%s2194_s19 + $0x20] sm:$0xff]  ;;  %v365_v5 = vld [vmem:[%s2194_s19 + $0x28] sm:$0xff]  ;;  %s2656_s18 = scalar_lea.hbm %s2717_s7, %s1712_s12  ;;  %s2664_s27 = scalar_lea.sflag [#allocation5], %s328_s22 }
  0x1b   : > { %v366_v6 = vld [vmem:[%s2194_s19 + $0x30] sm:$0xff]  ;;  %v367_v7 = vld [vmem:[%s2194_s19 + $0x38] sm:$0xff]  ;;  %v1641_v49 = vld [vmem:[%s2712_s2] ss:$0 sm:$0xff]  ;;  %s2092_s20 = smov [#allocation4]  }
  0x1c   : > { %728 = vmatpush1.bf16.msra.mxu0 %v1873_v54  ;;  %801 = vmatpush1.bf16.msra.mxu1 %v1874_v55  ;;  %s2015_s21 = sshll.u32 %s2092_s20, 4  ;;  %s2016_s21 = int_to_ptr.vmem [resolvable:$false] %s2015_s21 }
  0x1d   : > { %729 = vmatprep.subr.bf16.mxu0 %v1875_v56  ;;  %802 = vmatprep.subr.bf16.mxu1 %v1877_v57  ;;  %s2017_s23 = scalar_lea.vmem %s2016_s21, 2048  ;;  %p2018_p1 = scmp.lt.s32.totalorder %s2658_s15, %s2016_s21 }
  0x1e   : > { %370 = vadd.xlane.f32.xlu0 %v361_v2  ;;  %374 = vadd.xlane.f32.xlu1 %v363_v3 }
  0x20   : > { %730 = vmatpush1.bf16.msra.mxu0 %v1879_v58  ;;  %803 = vmatpush1.bf16.msra.mxu1 %v1880_v59  ;;  %v1902_v58 = vld [vmem:[%s2715_s5 + $0x80] sm:$0xff]  }
  0x21   : > { %731 = vmatprep.subr.bf16.mxu0 %v1881_v60  ;;  %804 = vmatprep.subr.bf16.mxu1 %v1883_v61  ;;  %v1903_v60 = vld [vmem:[%s2715_s5 + $0x48] sm:$0xff]  }
  0x22   : > { %376 = vadd.xlane.f32.xlu0 %v364_v4  ;;  %378 = vadd.xlane.f32.xlu1 %v365_v5 }
  0x24   : > { %732 = vmatpush1.bf16.msra.mxu0 %v1885_v62  ;;  %805 = vmatpush1.bf16.msra.mxu1 %v1886_v63 }
  0x26   : > { %380 = vadd.xlane.f32.xlu0 %v366_v6  ;;  %382 = vadd.xlane.f32.xlu1 %v367_v7 }
  0xa7   : > { %v369_v14 = vpop.xlane.xlu0 %368  ;;  %v373_v15 = vpop.xlane.xlu1 %372 }
  0xa8   : > { %v385_v16 = vmul.f32 0.0078125, %v369_v14  ;;  %v387_v17 = vmul.f32 0.0078125, %v373_v15 }
  0xaa   : > { %v2222_v18 = vsub.f32 %v360_v0, %v385_v16  ;;  %v2224_v19 = vsub.f32 %v362_v1, %v387_v17  ;;  %v1887_v0 = vld [vmem:[%s2713_s3 + $0xc4] ss:$16 sps:$4 sm:$0xff]   ;;  %v1889_v1 = vld [vmem:[%s2713_s3 + $0xcc] ss:$16 sps:$4 sm:$0xff]  }
  0xab   : > { %v371_v20 = vpop.xlane.xlu0 %370  ;;  %v375_v21 = vpop.xlane.xlu1 %374  ;;  %733 = vmatprep.subr.bf16.mxu0 %v1887_v0  ;;  %806 = vmatprep.subr.bf16.mxu1 %v1889_v1  ;;  %v1905_v0 = vld [vmem:[%s2715_s5 + $0x8] sm:$0xff]  }
  0xac   : > { %v386_v22 = vmul.f32 0.0078125, %v371_v20  ;;  %v401_v23 = vmul.f32 %v2222_v18, %v2222_v18  ;;  %v388_v24 = vmul.f32 0.0078125, %v375_v21  ;;  %v403_v27 = vmul.f32 %v2224_v19, %v2224_v19  ;;  %v1906_v1 = vld [vmem:[%s2715_s5 + $0x88] sm:$0xff]  }
  0xae   : > { %v2228_v25 = vsub.f32 %v361_v2, %v386_v22  ;;  %409 = vadd.xlane.f32.xlu0 %v401_v23  ;;  %v2230_v26 = vsub.f32 %v363_v3, %v388_v24  ;;  %v1891_v2 = vld [vmem:[%s2713_s3 + $0xc0] ss:$16 sps:$4 sm:$0xff]   ;;  %v1892_v3 = vld [vmem:[%s2713_s3 + $0xc8] ss:$16 sps:$4 sm:$0xff]  }
  0xaf   : > { %v377_v28 = vpop.xlane.xlu0 %376  ;;  %v379_v29 = vpop.xlane.xlu1 %378  ;;  %734 = vmatpush1.bf16.msra.mxu0 %v1891_v2  ;;  %807 = vmatpush1.bf16.msra.mxu1 %v1892_v3 }
  0xb0   : > { %v389_v30 = vmul.f32 0.0078125, %v377_v28  ;;  %v402_v31 = vmul.f32 %v2228_v25, %v2228_v25  ;;  %v390_v32 = vmul.f32 0.0078125, %v379_v29  ;;  %v404_v35 = vmul.f32 %v2230_v26, %v2230_v26 }
  0xb2   : > { %v2236_v33 = vsub.f32 %v364_v4, %v389_v30  ;;  %413 = vadd.xlane.f32.xlu0 %v403_v27  ;;  %411 = vadd.xlane.f32.xlu1 %v402_v31  ;;  %v2238_v34 = vsub.f32 %v365_v5, %v390_v32  ;;  %v1893_v4 = vld [vmem:[%s2713_s3 + $0xe4] ss:$16 sps:$4 sm:$0xff]   ;;  %v1895_v5 = vld [vmem:[%s2713_s3 + $0xec] ss:$16 sps:$4 sm:$0xff]  }
  0xb3   : > { %v381_v36 = vpop.xlane.xlu0 %380  ;;  %v383_v37 = vpop.xlane.xlu1 %382  ;;  %735 = vmatprep.subr.bf16.mxu0 %v1893_v4  ;;  %808 = vmatprep.subr.bf16.mxu1 %v1895_v5 }
  0xb4   : > { %v391_v38 = vmul.f32 0.0078125, %v381_v36  ;;  %v405_v39 = vmul.f32 %v2236_v33, %v2236_v33  ;;  %v392_v40 = vmul.f32 0.0078125, %v383_v37  ;;  %v406_v43 = vmul.f32 %v2238_v34, %v2238_v34 }
  0xb6   : > { %v2244_v41 = vsub.f32 %v366_v6, %v391_v38  ;;  %415 = vadd.xlane.f32.xlu1 %v404_v35  ;;  %417 = vadd.xlane.f32.xlu0 %v405_v39  ;;  %v2246_v42 = vsub.f32 %v367_v7, %v392_v40  ;;  %v1897_v6 = vld [vmem:[%s2713_s3 + $0xe0] ss:$16 sps:$4 sm:$0xff]   ;;  %v1898_v7 = vld [vmem:[%s2713_s3 + $0xe8] ss:$16 sps:$4 sm:$0xff]  }
  0xb7   : > { %736 = vmatpush1.bf16.msra.mxu0 %v1897_v6  ;;  %809 = vmatpush1.bf16.msra.mxu1 %v1898_v7  ;;  %v1640_v40 = vld [vmem:[%s2711_s1] ss:$0 sm:$0xff] }
  0xb8   : > { %v407_v44 = vmul.f32 %v2244_v41, %v2244_v41  ;;  %v408_v45 = vmul.f32 %v2246_v42, %v2246_v42  ;;  %1713 = vmatprep.subr.bf16.mxu0 %v1899_v9  ;;  %1753 = vmatprep.subr.bf16.mxu1 %v1900_v10 }
  0xba   : > { %419 = vadd.xlane.f32.xlu1 %v406_v43  ;;  %421 = vadd.xlane.f32.xlu0 %v407_v44 }
  0xbe   : > { %423 = vadd.xlane.f32.xlu1 %v408_v45 }
 0x13b   : > { %v410_v11 = vpop.xlane.xlu0 %409 }
 0x13c   : > { %v425_v12 = vmul.f32 0.0078125, %v410_v11 }
 0x13e   : > { %v433_v13 = vadd.f32 1e-05, %v425_v12 }
 0x13f   : > { %v412_v14 = vpop.xlane.xlu1 %411  ;;  %v414_v15 = vpop.xlane.xlu0 %413 }
 0x140   : > { %1931 = vrsqrt.f32 %v433_v13  ;;  %v426_v16 = vmul.f32 0.0078125, %v412_v14  ;;  %v427_v17 = vmul.f32 0.0078125, %v414_v15 }
 0x142   : > { %v434_v20 = vadd.f32 1e-05, %v426_v16  ;;  %v435_v21 = vadd.f32 1e-05, %v427_v17 }
 0x143   : > { %v416_v22 = vpop.xlane.xlu1 %415  ;;  %v418_v23 = vpop.xlane.xlu0 %417 }
 0x144   : > { %1933 = vrsqrt.f32 %v434_v20  ;;  %v428_v24 = vmul.f32 0.0078125, %v416_v22  ;;  %v429_v28 = vmul.f32 0.0078125, %v418_v23  ;;  %v1909_v20 = vld [vmem:[%s2715_s5 + $0x10] sm:$0xff]   ;;  %v1912_v22 = vld [vmem:[%s2715_s5 + $0xd8] sm:$0xff]  }
 0x145   : > { %1935 = vrsqrt.f32 %v435_v21  ;;  %v1911_v21 = vld [vmem:[%s2715_s5 + $0x58] sm:$0xff]  }
 0x146   : > { %v436_v27 = vadd.f32 1e-05, %v428_v24  ;;  %v437_v32 = vadd.f32 1e-05, %v429_v28  ;;  %v1913_v23 = vld [vmem:[%s2715_s5 + $0x18] sm:$0xff]   ;;  %v1916_v28 = vld [vmem:[%s2715_s5 + $0xe0] sm:$0xff]  }
 0x147   : > { %v420_v29 = vpop.xlane.xlu1 %419  ;;  %v422_v36 = vpop.xlane.xlu0 %421  ;;  %v1914_v24 = vld [vmem:[%s2715_s5 + $0x98] sm:$0xff]  }
 0x148   : > { %1937 = vrsqrt.f32 %v436_v27  ;;  %v430_v30 = vmul.f32 0.0078125, %v420_v29  ;;  %v431_v44 = vmul.f32 0.0078125, %v422_v36  ;;  %v1915_v27 = vld [vmem:[%s2715_s5 + $0x60] sm:$0xff]   ;;  %v1922_v36 = vld [vmem:[%s2715_s5 + $0xa8] sm:$0xff]  }
 0x149   : > { %v1917_v29 = vld [vmem:[%s2715_s5 + $0x20] sm:$0xff]  }
 0x14a   : > { %v1932_v31 = vpop.eup %1931  ;;  %v438_v35 = vadd.f32 1e-05, %v430_v30  ;;  %v439_v51 = vadd.f32 1e-05, %v431_v44  ;;  %v1918_v30 = vld [vmem:[%s2715_s5 + $0xa0] sm:$0xff]   ;;  %v1928_v44 = vld [vmem:[%s2715_s5 + $0xf8] sm:$0xff]  }
 0x14b   : > { %v424_v37 = vpop.xlane.xlu1 %423  ;;  %v449_v38 = vmul.f32 %v1932_v31, %v2222_v18  ;;  %v1919_v31 = vld [vmem:[%s2715_s5 + $0x68] sm:$0xff]  }
 0x14c   : > { %1939 = vrsqrt.f32 %v438_v35  ;;  %v432_v39 = vmul.f32 0.0078125, %v424_v37  ;;  %v1921_v35 = vld [vmem:[%s2715_s5 + $0x28] sm:$0xff]   ;;  %v1923_v37 = vld [vmem:[%s2715_s5 + $0x70] sm:$0xff]  }
 0x14d   : > { %1941 = vrsqrt.f32 %v437_v32  ;;  %v464_v46 = vmul.f32 %v1640_v40, %v449_v38  ;;  %v1920_v32 = vld [vmem:[%s2715_s5 + $0xe8] sm:$0xff]   ;;  %v1924_v38 = vld [vmem:[%s2715_s5 + $0xf0] sm:$0xff]  }
 0x14e   : > { %v1934_v43 = vpop.eup %1933  ;;  %v440_v48 = vadd.f32 1e-05, %v432_v39  ;;  %v1925_v39 = vld [vmem:[%s2715_s5 + $0x30] sm:$0xff]  }
 0x14f   : > { %v450_v45 = vmul.f32 %v1934_v43, %v2228_v25  ;;  %v1936_v47 = vpop.eup %1935  ;;  %v479_v52 = vadd.f32 %v1641_v49, %v464_v46  ;;  %v1901_v25 = vld [vmem:[%s2715_s5] sm:$0xff]   ;;  %v1927_v43 = vld [vmem:[%s2715_s5 + $0x78] sm:$0xff]  }
 0x150   : > { %v451_v54 = vmul.f32 %v1936_v47, %v2224_v19  ;;  %1943 = vrsqrt.f32 %v440_v48  ;;  %v1904_v19 = vld [vmem:[%s2715_s5 + $0xc8] sm:$0xff]   ;;  %v1930_v46 = vld [vmem:[%s2715_s5 + $0xb8] sm:$0xff]   ;;  %v541_v47 = vlaneseq }
 0x151   : > { %v465_v50 = vmul.f32 %v1640_v40, %v450_v45  ;;  %1945 = vrsqrt.f32 %v439_v51  ;;  %v1929_v45 = vld [vmem:[%s2715_s5 + $0x38] sm:$0xff]  }
 0x152   : > { %v1938_v18 = vpop.eup %1937  ;;  %v542_v48 = vshrl.u32 %v541_v47, 7 }
 0x153   : > { %v480_v53 = vadd.f32 %v1641_v49, %v465_v50  ;;  %v452_v55 = vmul.f32 %v1938_v18, %v2230_v26  ;;  %v466_v26 = vmul.f32 %v1640_v40, %v451_v54  ;;  %v539_v18 = vld [vmem:[%s2714_s4] sm:$0xf] }
 0x154   : > { %v551_v50 = vsub.s32 2, %v542_v48  ;;  %v547_v51 = vsub.s32 1, %v542_v48 }
 0x155   : > { %v487_v56 = vpack.c.bf16 %v480_v53, %v479_v52  ;;  %v467_v57 = vmul.f32 %v1640_v40, %v452_v55  ;;  %v481_v2 = vadd.f32 %v1641_v49, %v466_v26  ;;  %v555_v52 = vsub.s32 3, %v542_v48 }
 0x156   : > { %v1940_v59 = vpop.eup %1939  ;;  %v2455_v54 = vrot.slane %v539_v18, %v551_v50  ;;  %v2457_v55 = vrot.slane %v539_v18, %v547_v51 }
 0x157   : > { %754 = vmatmul.mubr.bf16.vlgmr.msra.gmra.mrb[0].mxu0 %v487_v56  ;;  %827 = vmatmul.mubr.bf16.vlgmr.msra.gmra.mrb[0].mxu1 %v487_v56  ;;  %v1942_v61 = vpop.eup %1941  ;;  %v482_v62 = vadd.f32 %v1641_v49, %v467_v57  ;;  %v454_v63 = vmul.f32 %v1940_v59, %v2238_v34  ;;  %v2459_v56 = vrot.slane %v539_v18, %v555_v52 }
 0x158   : > { %763 = vmatprep.mubr.bf16.mxu0 %v2091_v8  ;;  %836 = vmatprep.mubr.bf16.mxu1 %v2091_v8  ;;  %v453_v3 = vmul.f32 %v1942_v61, %v2236_v33 }
 0x159   : > { %1714 = vmatpush3.bf16.msra.mxu0 %v1901_v25  ;;  %1754 = vmatpush3.bf16.msra.mxu1 %v1902_v58  ;;  %v488_v4 = vpack.c.bf16 %v482_v62, %v481_v2  ;;  %v469_v5 = vmul.f32 %v1640_v40, %v454_v63 }
 0x15a   : > { %1715 = vmatprep.subr.bf16.mxu0 %v1903_v60  ;;  %1755 = vmatprep.subr.bf16.mxu1 %v1904_v19  ;;  %v1944_v34 = vpop.eup %1943  ;;  %v468_v6 = vmul.f32 %v1640_v40, %v453_v3 }
 0x15b   : > { %v1946_v7 = vpop.eup %1945  ;;  %v484_v9 = vadd.f32 %v1641_v49, %v469_v5  ;;  %v456_v10 = vmul.f32 %v1944_v34, %v2246_v42  ;;  %v1907_v42 = vld [vmem:[%s2715_s5 + $0x50] sm:$0xff]  }
 0x15c   : > { %v483_v11 = vadd.f32 %v1641_v49, %v468_v6  ;;  %v455_v12 = vmul.f32 %v1946_v7, %v2244_v41  ;;  %v1908_v41 = vld [vmem:[%s2715_s5 + $0xd0] sm:$0xff]  }
 0x15d   : > { %1716 = vmatpush3.bf16.msra.mxu0 %v1905_v0  ;;  %1756 = vmatpush3.bf16.msra.mxu1 %v1906_v1  ;;  %v471_v13 = vmul.f32 %v1640_v40, %v456_v10 }
 0x15e   : > { %v489_v33 = vpack.c.bf16 %v484_v9, %v483_v11  ;;  %v470_v14 = vmul.f32 %v1640_v40, %v455_v12  ;;  %1717 = vmatprep.subr.bf16.mxu0 %v1907_v42  ;;  %1757 = vmatprep.subr.bf16.mxu1 %v1908_v41  ;;  %v1926_v40 = vld [vmem:[%s2715_s5 + $0xb0] sm:$0xff]  }
 0x15f   : > { %764 = vmatmul.mubr.bf16.gmra.mrb[4].mxu0 %v488_v4  ;;  %837 = vmatmul.mubr.bf16.gmra.mrb[4].mxu1 %v488_v4  ;;  %v486_v15 = vadd.f32 %v1641_v49, %v471_v13 }
 0x160   : > { %773 = vmatprep.mubr.bf16.mxu0 %v2091_v8  ;;  %846 = vmatprep.mubr.bf16.mxu1 %v2091_v8  ;;  %v485_v16 = vadd.f32 %v1641_v49, %v470_v14  ;;  %v543_v49 = vsub.s32 0, %v542_v48 }
 0x161   : > { %1718 = vmatpush3.bf16.msra.mxu0 %v1909_v20 }
 0x162   : > { %v490_v17 = vpack.c.bf16 %v486_v15, %v485_v16  ;;  %1719 = vmatprep.subr.bf16.mxu0 %v1911_v21  ;;  %v2453_v53 = vrot.slane %v539_v18, %v543_v49 }
 0x165   : > { %1720 = vmatpush3.bf16.msra.mxu0 %v1913_v23 }
 0x166   : > { %1721 = vmatprep.subr.bf16.mxu0 %v1915_v27 }
 0x167   : > { %774 = vmatmul.mubr.bf16.gmra.mrb[8].mxu0 %v489_v33  ;;  %847 = vmatmul.mubr.bf16.gmra.mrb[8].mxu1 %v489_v33 }
 0x168   : > { %783 = vmatprep.mubr.bf16.mxu0 %v2091_v8  ;;  %856 = vmatprep.mubr.bf16.mxu1 %v2091_v8  ;;  %v1910_v8 = vld [vmem:[%s2715_s5 + $0x90] sm:$0xff]  }
 0x169   : > { %1758 = vmatpush3.bf16.msra.mxu1 %v1910_v8  ;;  %1722 = vmatpush3.bf16.msra.mxu0 %v1917_v29 }
 0x16a   : > { %1759 = vmatprep.subr.bf16.mxu1 %v1912_v22  ;;  %1723 = vmatprep.subr.bf16.mxu0 %v1919_v31 }
 0x16d   : > { %1760 = vmatpush3.bf16.msra.mxu1 %v1914_v24  ;;  %1724 = vmatpush3.bf16.msra.mxu0 %v1921_v35 }
 0x16e   : > { %1761 = vmatprep.subr.bf16.mxu1 %v1916_v28  ;;  %1725 = vmatprep.subr.bf16.mxu0 %v1923_v37 }
 0x16f   : > { %784 = vmatmul.mubr.bf16.gmra.mrb[12].mxu0 %v490_v17  ;;  %857 = vmatmul.mubr.bf16.gmra.mrb[12].mxu1 %v490_v17 }
 0x171   : > { %1762 = vmatpush3.bf16.msra.mxu1 %v1918_v30  ;;  %1726 = vmatpush3.bf16.msra.mxu0 %v1925_v39 }
 0x172   : > { %1763 = vmatprep.subr.bf16.mxu1 %v1920_v32  ;;  %1727 = vmatprep.subr.bf16.mxu0 %v1927_v43 }
 0x175   : > { %1764 = vmatpush3.bf16.msra.mxu1 %v1922_v36  ;;  %1728 = vmatpush3.bf16.msra.mxu0 %v1929_v45 }
 0x176   : > { %1765 = vmatprep.subr.bf16.mxu1 %v1924_v38 }
 0x179   : > { %1766 = vmatpush3.bf16.msra.mxu1 %v1926_v40 }
 0x17a   : > { %1767 = vmatprep.subr.bf16.mxu1 %v1928_v44 }
 0x17d   : > { %1768 = vmatpush3.bf16.msra.mxu1 %v1930_v46 }
 0x22a   : > { %v755_v57 = vpop.f32.mrb[0].mxu0  ;;  %v828_v25 = vpop.f32.mrb[0].mxu1 }
 0x22b   : > { %v756_v58 = vadd.f32 %v755_v57, %v2453_v53  ;;  %v829_v59 = vadd.f32 %v828_v25, %v2455_v54  ;;  %v757_v60 = vpop.f32.mrb[1].mxu0  ;;  %v830_v19 = vpop.f32.mrb[1].mxu1 }
 0x22c   : > { %v758_v26 = vadd.f32 %v757_v60, %v2457_v55  ;;  %v831_v61 = vadd.f32 %v830_v19, %v2459_v56  ;;  %v759_v62 = vpop.f32.mrb[2].mxu0  ;;  %v832_v63 = vpop.f32.mrb[2].mxu1 }
 0x22d   : > { %v899_v0 = vmul.f32 0.70710677, %v756_v58  ;;  %v901_v1 = vmul.f32 0.70710677, %v829_v59  ;;  %v760_v4 = vadd.f32 %v759_v62, %v2453_v53  ;;  %v833_v5 = vadd.f32 %v832_v63, %v2455_v54  ;;  %v761_v34 = vpop.f32.mrb[3].mxu0  ;;  %v834_v6 = vpop.f32.mrb[3].mxu1 }
 0x22e   : > { %v900_v2 = vmul.f32 0.70710677, %v758_v26  ;;  %v902_v3 = vmul.f32 0.70710677, %v831_v61  ;;  %v762_v7 = vadd.f32 %v761_v34, %v2457_v55  ;;  %v835_v9 = vadd.f32 %v834_v6, %v2459_v56 }
 0x22f   : > { %1947 = verf.f32 %v899_v0  ;;  %v903_v10 = vmul.f32 0.70710677, %v760_v4  ;;  %v905_v11 = vmul.f32 0.70710677, %v833_v5  ;;  %v867_v28 = vmul.f32 0.5, %v756_v58 }
 0x230   : > { %1949 = verf.f32 %v901_v1  ;;  %v904_v12 = vmul.f32 0.70710677, %v762_v7  ;;  %v906_v13 = vmul.f32 0.70710677, %v835_v9  ;;  %v869_v37 = vmul.f32 0.5, %v829_v59 }
 0x231   : > { %1951 = verf.f32 %v900_v2  ;;  %v2476_v38 = vmul.f32 0.5, %v758_v26  ;;  %v2478_v39 = vmul.f32 0.5, %v831_v61  ;;  %v871_v44 = vmul.f32 0.5, %v760_v4 }
 0x232   : > { %1953 = verf.f32 %v902_v3  ;;  %v765_v33 = vpop.f32.mrb[4].mxu0  ;;  %v838_v15 = vpop.f32.mrb[4].mxu1  ;;  %v873_v49 = vmul.f32 0.5, %v833_v5  ;;  %v2480_v50 = vmul.f32 0.5, %v762_v7  ;;  %v2483_v25 = vmul.f32 0.5, %v835_v9 }
 0x233   : > { %1955 = verf.f32 %v903_v10  ;;  %v766_v14 = vadd.f32 %v765_v33, %v2453_v53  ;;  %v767_v16 = vpop.f32.mrb[5].mxu0  ;;  %v839_v17 = vadd.f32 %v838_v15, %v2455_v54  ;;  %v840_v41 = vpop.f32.mrb[5].mxu1 }
 0x234   : > { %1957 = verf.f32 %v905_v11  ;;  %v768_v42 = vadd.f32 %v767_v16, %v2457_v55  ;;  %v769_v20 = vpop.f32.mrb[6].mxu0  ;;  %v841_v21 = vadd.f32 %v840_v41, %v2459_v56  ;;  %v842_v22 = vpop.f32.mrb[6].mxu1 }
 0x235   : > { %1959 = verf.f32 %v904_v12  ;;  %v907_v8 = vmul.f32 0.70710677, %v766_v14  ;;  %v771_v23 = vpop.f32.mrb[7].mxu0  ;;  %v909_v24 = vmul.f32 0.70710677, %v839_v17  ;;  %v844_v27 = vpop.f32.mrb[7].mxu1  ;;  %v770_v31 = vadd.f32 %v769_v20, %v2453_v53 }
 0x236   : > { %1961 = verf.f32 %v906_v13  ;;  %v908_v29 = vmul.f32 0.70710677, %v768_v42  ;;  %v910_v30 = vmul.f32 0.70710677, %v841_v21  ;;  %v843_v32 = vadd.f32 %v842_v22, %v2455_v54 }
 0x237   : > { %1963 = verf.f32 %v907_v8  ;;  %v772_v35 = vadd.f32 %v771_v23, %v2457_v55  ;;  %v911_v45 = vmul.f32 0.70710677, %v770_v31  ;;  %v845_v51 = vadd.f32 %v844_v27, %v2459_v56 }
 0x238   : > { %1965 = verf.f32 %v909_v24  ;;  %v913_v18 = vmul.f32 0.70710677, %v843_v32  ;;  %v2485_v58 = vmul.f32 0.5, %v766_v14  ;;  %v2487_v62 = vmul.f32 0.5, %v839_v17 }
 0x239   : > { %v1948_v36 = vpop.eup %1947  ;;  %1967 = verf.f32 %v908_v29  ;;  %v912_v59 = vmul.f32 0.70710677, %v772_v35  ;;  %v2489_v63 = vmul.f32 0.5, %v768_v42  ;;  %v2491_v0 = vmul.f32 0.5, %v841_v21 }
 0x23a   : > { %v1950_v40 = vpop.eup %1949  ;;  %v963_v43 = vadd.f32 1.0, %v1948_v36  ;;  %1969 = verf.f32 %v910_v30  ;;  %v775_v46 = vpop.f32.mrb[8].mxu0  ;;  %v914_v10 = vmul.f32 0.70710677, %v845_v51  ;;  %v2510_v21 = vmul.f32 0.5, %v770_v31 }
 0x23b   : > { %v848_v47 = vpop.f32.mrb[8].mxu1  ;;  %v1952_v48 = vpop.eup %1951  ;;  %v965_v61 = vadd.f32 1.0, %v1950_v40  ;;  %1971 = verf.f32 %v911_v45  ;;  %v776_v11 = vadd.f32 %v775_v46, %v2453_v53  ;;  %v2512_v22 = vmul.f32 0.5, %v843_v32 }
 0x23c   : > { %v777_v52 = vpop.f32.mrb[9].mxu0  ;;  %v1954_v57 = vpop.eup %1953  ;;  %v2495_v4 = vmul.f32 %v963_v43, %v867_v28  ;;  %v964_v5 = vadd.f32 1.0, %v1952_v48  ;;  %1973 = verf.f32 %v913_v18  ;;  %v849_v14 = vadd.f32 %v848_v47, %v2455_v54 }
 0x23d   : > { %v850_v60 = vpop.f32.mrb[9].mxu1  ;;  %v779_v19 = vpop.f32.mrb[10].mxu0  ;;  %v966_v33 = vadd.f32 1.0, %v1954_v57  ;;  %1975 = verf.f32 %v912_v59  ;;  %v2503_v16 = vmul.f32 %v965_v61, %v869_v37  ;;  %v915_v42 = vmul.f32 0.70710677, %v776_v11 }
 0x23e   : > { %v1956_v26 = vpop.eup %1955  ;;  %v852_v1 = vpop.f32.mrb[10].mxu1  ;;  %v778_v41 = vadd.f32 %v777_v52, %v2457_v55  ;;  %v2514_v23 = vmul.f32 0.5, %v772_v35  ;;  %v2518_v36 = vmul.f32 0.5, %v845_v51  ;;  %1977 = verf.f32 %v914_v10 }
 0x23f   : > { %v2493_v2 = vpop.f32.mrb[11].mxu0  ;;  %v1958_v3 = vpop.eup %1957  ;;  %v967_v34 = vadd.f32 1.0, %v1956_v26  ;;  %v2521_v31 = vmul.f32 %v964_v5, %v2476_v38  ;;  %v2524_v32 = vmul.f32 %v966_v33, %v2478_v39  ;;  %1979 = verf.f32 %v915_v42 }
 0x240   : > { %v2497_v6 = vpop.f32.mrb[11].mxu1  ;;  %v1960_v7 = vpop.eup %1959  ;;  %v969_v9 = vadd.f32 1.0, %v1958_v3  ;;  %v917_v35 = vmul.f32 0.70710677, %v849_v14  ;;  %v916_v48 = vmul.f32 0.70710677, %v778_v41  ;;  %v780_v39 = vadd.f32 %v779_v19, %v2453_v53 }
 0x241   : > { %v1962_v12 = vpop.eup %1961  ;;  %v2500_v13 = vmul.f32 %v967_v34, %v871_v44  ;;  %v968_v30 = vadd.f32 1.0, %v1960_v7  ;;  %v853_v52 = vadd.f32 %v852_v1, %v2455_v54  ;;  %v2538_v61 = vmul.f32 0.5, %v776_v11 }
 0x242   : > { %v1964_v15 = vpop.eup %1963  ;;  %v2505_v17 = vmul.f32 %v969_v9, %v873_v49  ;;  %v785_v24 = vpop.f32.mrb[12].mxu0  ;;  %v970_v46 = vadd.f32 1.0, %v1962_v12  ;;  %v851_v49 = vadd.f32 %v850_v60, %v2459_v56  ;;  %1981 = verf.f32 %v917_v35 }
 0x243   : > { %v1966_v20 = vpop.eup %1965  ;;  %v1035_v8 = vpack.c.bf16 %v2500_v13, %v2495_v4  ;;  %v858_v27 = vpop.f32.mrb[12].mxu1  ;;  %v971_v47 = vadd.f32 1.0, %v1964_v15  ;;  %v1000_v57 = vmul.f32 %v968_v30, %v2480_v50  ;;  %v2540_v5 = vmul.f32 0.5, %v849_v14 }
 0x244   : > { %v1968_v28 = vpop.eup %1967  ;;  %v1037_v29 = vpack.c.bf16 %v2505_v17, %v2503_v16  ;;  %v787_v37 = vpop.f32.mrb[13].mxu0  ;;  %v973_v38 = vadd.f32 1.0, %v1966_v20  ;;  %1983 = verf.f32 %v916_v48  ;;  %v918_v60 = vmul.f32 0.70710677, %v851_v49 }
 0x245   : > { %v860_v40 = vpop.f32.mrb[13].mxu1  ;;  %v1970_v43 = vpop.eup %1969  ;;  %v972_v59 = vadd.f32 1.0, %v1968_v28  ;;  %v919_v34 = vmul.f32 0.70710677, %v780_v39  ;;  %v1002_v9 = vmul.f32 %v970_v46, %v2483_v25  ;;  %v2544_v10 = vmul.f32 %v971_v47, %v2485_v58 }
 0x246   : > { %v2526_v44 = vpop.f32.mrb[14].mxu0  ;;  %v2528_v45 = vpop.f32.mrb[14].mxu1  ;;  %v974_v26 = vadd.f32 1.0, %v1970_v43  ;;  %v2546_v19 = vmul.f32 0.5, %v778_v41  ;;  %v921_v1 = vmul.f32 0.70710677, %v853_v52  ;;  %v2549_v12 = vmul.f32 %v973_v38, %v2487_v62 }
 0x247   : > { %v2531_v18 = vpop.f32.mrb[15].mxu0  ;;  %v2533_v51 = vpop.f32.mrb[15].mxu1  ;;  %1985 = verf.f32 %v918_v60  ;;  %v782_v11 = vadd.f32 %v2493_v2, %v2457_v55  ;;  %v855_v33 = vadd.f32 %v2497_v6, %v2459_v56  ;;  %v2556_v14 = vmul.f32 %v972_v59, %v2489_v63 }
 0x248   : > { %v1972_v3 = vpop.eup %1971  ;;  %v2559_v25 = vmul.f32 %v974_v26, %v2491_v0  ;;  %1987 = verf.f32 %v919_v34  ;;  %v2562_v58 = vadd.f32 %v785_v24, %v2453_v53  ;;  %v2564_v62 = vmul.f32 0.5, %v851_v49 }
 0x249   : > { %v1974_v7 = vpop.eup %1973  ;;  %v975_v15 = vadd.f32 1.0, %v1972_v3  ;;  %1989 = verf.f32 %v921_v1  ;;  %v920_v42 = vmul.f32 0.70710677, %v782_v11  ;;  %v887_v28 = vmul.f32 0.5, %v780_v39 }
 0x24a   : > { %v1976_v50 = vpop.eup %1975  ;;  %v977_v2 = vadd.f32 1.0, %v1974_v7  ;;  %v922_v6 = vmul.f32 0.70710677, %v855_v33  ;;  %v923_v63 = vmul.f32 0.70710677, %v2562_v58  ;;  %v2568_v0 = vadd.f32 %v858_v27, %v2455_v54 }
 0x24b   : > { %v1978_v41 = vpop.eup %1977  ;;  %v976_v20 = vadd.f32 1.0, %v1976_v50  ;;  %1991 = verf.f32 %v920_v42  ;;  %v2571_v24 = vadd.f32 %v787_v37, %v2457_v55  ;;  %v2574_v43 = vadd.f32 %v860_v40, %v2459_v56 }
 0x24c   : > { %v1980_v30 = vpop.eup %1979  ;;  %1993 = verf.f32 %v922_v6  ;;  %v1036_v35 = vpack.c.bf16 %v1000_v57, %v2521_v31  ;;  %v1038_v46 = vpack.c.bf16 %v1002_v9, %v2524_v32  ;;  %v1007_v48 = vmul.f32 %v975_v15, %v2510_v21 }
 0x24d   : > { %v1982_v47 = vpop.eup %1981  ;;  %v978_v49 = vadd.f32 1.0, %v1978_v41  ;;  %v889_v38 = vmul.f32 0.5, %v853_v52  ;;  %v925_v39 = vmul.f32 0.70710677, %v2568_v0  ;;  %v1009_v27 = vmul.f32 %v977_v2, %v2512_v22 }
 0x24e   : > { %v1008_v37 = vmul.f32 %v976_v20, %v2514_v23  ;;  %v979_v59 = vadd.f32 1.0, %v1980_v30  ;;  %v924_v26 = vmul.f32 0.70710677, %v2571_v24  ;;  %1339 = vmatprep.mubr.bf16.mxu0 %v1036_v35  ;;  %1404 = vmatprep.mubr.bf16.mxu1 %v1038_v46  ;;  %v1984_v40 = vpop.eup %1983  ;;  %v888_v31 = vmul.f32 0.5, %v782_v11 }
 0x24f   : > { %1995 = verf.f32 %v923_v63  ;;  %v926_v32 = vmul.f32 0.70710677, %v2574_v43  ;;  %v2586_v21 = vadd.f32 %v2526_v44, %v2453_v53  ;;  %1340 = vmatmul.mubr.bf16.vlgmr.msra.gmra.mrb[16].mxu0 %v1035_v8  ;;  %1405 = vmatmul.mubr.bf16.vlgmr.msra.gmra.mrb[16].mxu1 %v1037_v29  ;;  %v981_v22 = vadd.f32 1.0, %v1982_v47 }
 0x250   : > { %1997 = verf.f32 %v925_v39  ;;  %v863_v23 = vadd.f32 %v2528_v45, %v2455_v54  ;;  %v2598_v52 = vadd.f32 %v2531_v18, %v2457_v55  ;;  %v1010_v53 = vmul.f32 %v978_v49, %v2518_v36 }
 0x251   : > { %v1986_v57 = vpop.eup %1985  ;;  %v890_v44 = vmul.f32 0.5, %v855_v33  ;;  %1999 = verf.f32 %v924_v26  ;;  %v927_v4 = vmul.f32 0.70710677, %v2586_v21  ;;  %v1011_v16 = vmul.f32 %v979_v59, %v2538_v61 }
 0x252   : > { %v1988_v13 = vpop.eup %1987  ;;  %v980_v17 = vadd.f32 1.0, %v1984_v40  ;;  %2001 = verf.f32 %v926_v32  ;;  %v929_v8 = vmul.f32 0.70710677, %v863_v23  ;;  %v928_v54 = vmul.f32 0.70710677, %v2598_v52 }
 0x253   : > { %v1990_v29 = vpop.eup %1989  ;;  %v983_v3 = vadd.f32 1.0, %v1988_v13  ;;  %2003 = verf.f32 %v927_v4  ;;  %v865_v55 = vadd.f32 %v2533_v51, %v2459_v56  ;;  %v1013_v36 = vmul.f32 %v981_v22, %v2540_v5 }
 0x254   : > { %v985_v45 = vadd.f32 1.0, %v1990_v29  ;;  %2005 = verf.f32 %v929_v8  ;;  %v1040_v18 = vpack.c.bf16 %v1008_v37, %v2556_v14  ;;  %v982_v34 = vadd.f32 1.0, %v1986_v57 }
 0x255   : > { %v1992_v60 = vpop.eup %1991  ;;  %v1015_v61 = vmul.f32 %v983_v3, %v887_v28  ;;  %2007 = verf.f32 %v928_v54  ;;  %v930_v7 = vmul.f32 0.70710677, %v865_v55  ;;  %v1042_v11 = vpack.c.bf16 %v1010_v53, %v2559_v25 }
 0x256   : > { %v1994_v9 = vpop.eup %1993  ;;  %v1017_v1 = vmul.f32 %v985_v45, %v889_v38  ;;  %v984_v50 = vadd.f32 1.0, %v1992_v60  ;;  %1347 = vmatprep.mubr.bf16.mxu0 %v1040_v18  ;;  %v1039_v33 = vpack.c.bf16 %v1007_v48, %v2544_v10  ;;  %v1041_v51 = vpack.c.bf16 %v1009_v27, %v2549_v12  ;;  %v2623_v18 = vld [vmem:[%s2716_s6] ss:$0 sm:$0xff] }
 0x257   : > { %v986_v56 = vadd.f32 1.0, %v1994_v9  ;;  %2009 = verf.f32 %v930_v7  ;;  %v1043_v5 = vpack.c.bf16 %v1015_v61, %v1011_v16  ;;  %v1012_v14 = vmul.f32 %v980_v17, %v2546_v19  ;;  %1412 = vmatprep.mubr.bf16.mxu1 %v1042_v11 }
 0x258   : > { %v1016_v15 = vmul.f32 %v984_v50, %v888_v31  ;;  %1348 = vmatmul.mubr.bf16.gmra.mrb[20].mxu0 %v1039_v33  ;;  %v1045_v42 = vpack.c.bf16 %v1017_v1, %v1013_v36  ;;  %v1014_v2 = vmul.f32 %v982_v34, %v2564_v62  ;;  %1413 = vmatmul.mubr.bf16.gmra.mrb[20].mxu1 %v1041_v51  ;;  %v891_v35 = vmul.f32 0.5, %v2562_v58  ;;  %v1479_v1 = vld [vmem:[%s2194_s19] sm:$0xff]  ;;  %v1480_v33 = vld [vmem:[%s2194_s19 + $0x8] sm:$0xff] }
 0x259   : > { %v1996_v41 = vpop.eup %1995  ;;  %v1018_v20 = vmul.f32 %v986_v56, %v890_v44  ;;  %v893_v47 = vmul.f32 0.5, %v2568_v0  ;;  %v895_v62 = vmul.f32 0.5, %v2586_v21  ;;  %v892_v39 = vmul.f32 0.5, %v2571_v24 }
 0x25a   : > { %v1998_v28 = vpop.eup %1997  ;;  %v1044_v25 = vpack.c.bf16 %v1016_v15, %v1012_v14  ;;  %v987_v63 = vadd.f32 1.0, %v1996_v41  ;;  %v897_v27 = vmul.f32 0.5, %v863_v23  ;;  %v896_v59 = vmul.f32 0.5, %v2598_v52 }
 0x25b   : > { %v2000_v6 = vpop.eup %1999  ;;  %v1046_v10 = vpack.c.bf16 %v1018_v20, %v1014_v2  ;;  %v989_v19 = vadd.f32 1.0, %v1998_v28  ;;  %v894_v0 = vmul.f32 0.5, %v2574_v43  ;;  %v898_v53 = vmul.f32 0.5, %v865_v55 }
 0x25c   : > { %v2002_v30 = vpop.eup %2001  ;;  %1355 = vmatprep.mubr.bf16.mxu0 %v1044_v25  ;;  %v988_v48 = vadd.f32 1.0, %v2000_v6  ;;  %v1019_v26 = vmul.f32 %v987_v63, %v891_v35  ;;  %v1481_v35 = vld [vmem:[%s2194_s19 + $0x10] sm:$0xff] }
 0x25d   : > { %v2004_v12 = vpop.eup %2003  ;;  %1420 = vmatprep.mubr.bf16.mxu1 %v1046_v10  ;;  %v990_v40 = vadd.f32 1.0, %v2002_v30  ;;  %v1021_v22 = vmul.f32 %v989_v19, %v893_v47  ;;  %v1482_v47 = vld [vmem:[%s2194_s19 + $0x18] sm:$0xff] }
 0x25e   : > { %v2006_v46 = vpop.eup %2005  ;;  %v991_v49 = vadd.f32 1.0, %v2004_v12  ;;  %v1020_v21 = vmul.f32 %v988_v48, %v892_v39 }
 0x25f   : > { %v2008_v38 = vpop.eup %2007  ;;  %v993_v37 = vadd.f32 1.0, %v2006_v46  ;;  %v1022_v13 = vmul.f32 %v990_v40, %v894_v0 }
 0x260   : > { %v1023_v31 = vmul.f32 %v991_v49, %v895_v62  ;;  %v992_v58 = vadd.f32 1.0, %v2008_v38  ;;  %1356 = vmatmul.mubr.bf16.gmra.mrb[24].mxu0 %v1043_v5  ;;  %1421 = vmatmul.mubr.bf16.gmra.mrb[24].mxu1 %v1045_v42 }
 0x261   : > { %v2010_v32 = vpop.eup %2009  ;;  %v1025_v57 = vmul.f32 %v993_v37, %v897_v27 }
 0x262   : > { %v1024_v44 = vmul.f32 %v992_v58, %v896_v59  ;;  %v994_v24 = vadd.f32 1.0, %v2010_v32  ;;  %v1047_v23 = vpack.c.bf16 %v1023_v31, %v1019_v26 }
 0x263   : > { %v1049_v4 = vpack.c.bf16 %v1025_v57, %v1021_v22 }
 0x264   : > { %v1026_v52 = vmul.f32 %v994_v24, %v898_v53  ;;  %v1048_v16 = vpack.c.bf16 %v1024_v44, %v1020_v21  ;;  %v1483_v53 = vld [vmem:[%s2194_s19 + $0x20] sm:$0xff]  ;;  %v1484_v24 = vld [vmem:[%s2194_s19 + $0x28] sm:$0xff] }
 0x266   : > { %1363 = vmatprep.mubr.bf16.mxu0 %v1048_v16  ;;  %v1050_v17 = vpack.c.bf16 %v1026_v52, %v1022_v13 }
 0x268   : > { %1428 = vmatprep.mubr.bf16.mxu1 %v1050_v17  ;;  %1364 = vmatmul.mubr.bf16.gmra.mrb[28].mxu0 %v1047_v23 }
 0x269   : > { %1429 = vmatmul.mubr.bf16.gmra.mrb[28].mxu1 %v1049_v4 }
 0x322   : > { %v1729_v8 = vpop.f32.mrb[16].mxu0  ;;  %v1769_v43 = vpop.f32.mrb[16].mxu1 }
 0x323   : > { %v1730_v29 = vpop.f32.mrb[17].mxu0  ;;  %v1770_v3 = vpop.f32.mrb[17].mxu1 }
 0x324   : > { %v1731_v54 = vadd.f32 %v1730_v29, %v1729_v8  ;;  %v1771_v55 = vadd.f32 %v1770_v3, %v1769_v43  ;;  %v1732_v36 = vpop.f32.mrb[18].mxu0  ;;  %v1772_v45 = vpop.f32.mrb[18].mxu1 }
 0x325   : > { %v1733_v60 = vpop.f32.mrb[19].mxu0  ;;  %v1773_v34 = vpop.f32.mrb[19].mxu1 }
 0x326   : > { %v1407_v61 = vadd.f32 %v1771_v55, %v1731_v54  ;;  %v1734_v7 = vadd.f32 %v1733_v60, %v1732_v36  ;;  %v1774_v9 = vadd.f32 %v1773_v34, %v1772_v45 }
 0x328   : > { %v1471_v50 = vadd.f32 %v2623_v18, %v1407_v61  ;;  %v1410_v11 = vadd.f32 %v1774_v9, %v1734_v7  ;;  %v1485_v61 = vld [vmem:[%s2194_s19 + $0x30] sm:$0xff] }
 0x32a   : > { %v1487_v56 = vadd.f32 %v1479_v1, %v1471_v50  ;;  %v1472_v51 = vadd.f32 %v2623_v18, %v1410_v11  ;;  %v1486_v1 = vld [vmem:[%s2194_s19 + $0x38] sm:$0xff]  ;;  %s2011_s19 = scalar_lea.vmem %s2658_s15, 1024 }
 0x32b   : > { %v1735_v5 = vpop.f32.mrb[20].mxu0  ;;  %v1775_v15 = vpop.f32.mrb[20].mxu1  ;;  %p2012_p12 = scmp.ne.s32.totalorder %s2658_s15, %s2011_s19  ;;  %p2019_p2 = scmp.lt.s32.totalorder %s2017_s23, %s2011_s19 }
 0x32c   : > { %1495 = vst [vmem:[%s2631_s10] sm:$0xff] %v1487_v56  ;;  %v1488_v14 = vadd.f32 %v1480_v33, %v1472_v51  ;;  %v1736_v42 = vpop.f32.mrb[21].mxu0  ;;  %v1776_v2 = vpop.f32.mrb[21].mxu1 }
 0x32d   : > { %v1737_v41 = vadd.f32 %v1736_v42, %v1735_v5  ;;  %v1738_v20 = vpop.f32.mrb[22].mxu0  ;;  %v1777_v28 = vadd.f32 %v1776_v2, %v1775_v15  ;;  %v1778_v25 = vpop.f32.mrb[22].mxu1  ;;  %p2013_p13 = pnand %p2012_p12, %p2175_p4  ;;  %p2020_p3 = por %p2019_p2, %p2018_p1 }
 0x32e   : > { %1496 = vst [vmem:[%s2631_s10 + $0x8] sm:$0xff] %v1488_v14  ;;  %v1739_v6 = vpop.f32.mrb[23].mxu0  ;;  %v1779_v30 = vpop.f32.mrb[23].mxu1 }
 0x32f   : > { %v1740_v10 = vadd.f32 %v1739_v6, %v1738_v20  ;;  %v1415_v63 = vadd.f32 %v1777_v28, %v1737_v41  ;;  %v1780_v12 = vadd.f32 %v1779_v30, %v1778_v25  ;;  %p2014_p0 = pneg %p2013_p13 }
 0x331   : > { %v1473_v19 = vadd.f32 %v2623_v18, %v1415_v63  ;;  %v1418_v46 = vadd.f32 %v1780_v12, %v1740_v10  ;;  %p2021_p5 = pnand %p2020_p3, %p2014_p0 }
 0x333   : > { %v1741_v48 = vpop.f32.mrb[24].mxu0  ;;  %v1489_v62 = vadd.f32 %v1481_v35, %v1473_v19  ;;  %v1474_v49 = vadd.f32 %v2623_v18, %v1418_v46  ;;  %v1781_v38 = vpop.f32.mrb[24].mxu1 }
 0x334   : > { %v1742_v39 = vpop.f32.mrb[25].mxu0  ;;  %v1782_v37 = vpop.f32.mrb[25].mxu1 }
 0x335   : > { %v1743_v27 = vadd.f32 %v1742_v39, %v1741_v48  ;;  %v1744_v59 = vpop.f32.mrb[26].mxu0  ;;  %1497 = vst [vmem:[%s2631_s10 + $0x10] sm:$0xff] %v1489_v62  ;;  %v1490_v26 = vadd.f32 %v1482_v47, %v1474_v49  ;;  %v1783_v40 = vadd.f32 %v1782_v37, %v1781_v38  ;;  %v1784_v31 = vpop.f32.mrb[26].mxu1 }
 0x336   : > { %v1745_v58 = vpop.f32.mrb[27].mxu0  ;;  %v1785_v22 = vpop.f32.mrb[27].mxu1 }
 0x337   : > { %v1746_v32 = vadd.f32 %v1745_v58, %v1744_v59  ;;  %1498 = vst [vmem:[%s2631_s10 + $0x18] sm:$0xff] %v1490_v26  ;;  %v1423_v0 = vadd.f32 %v1783_v40, %v1743_v27  ;;  %v1786_v57 = vadd.f32 %v1785_v22, %v1784_v31 }
 0x339   : > { %v1475_v21 = vadd.f32 %v2623_v18, %v1423_v0  ;;  %v1426_v44 = vadd.f32 %v1786_v57, %v1746_v32 }
 0x33b   : > { %v1747_v23 = vpop.f32.mrb[28].mxu0  ;;  %v1491_v4 = vadd.f32 %v1483_v53, %v1475_v21  ;;  %v1476_v13 = vadd.f32 %v2623_v18, %v1426_v44 }
 0x33c   : > { %v1787_v52 = vpop.f32.mrb[28].mxu1  ;;  %v1748_v16 = vpop.f32.mrb[29].mxu0 }
 0x33d   : > { %v1749_v17 = vadd.f32 %v1748_v16, %v1747_v23  ;;  %v1788_v8 = vpop.f32.mrb[29].mxu1  ;;  %v1750_v43 = vpop.f32.mrb[30].mxu0  ;;  %1499 = vst [vmem:[%s2631_s10 + $0x20] sm:$0xff] %v1491_v4  ;;  %v1492_v29 = vadd.f32 %v1484_v24, %v1476_v13 }
 0x33e   : > { %v1789_v3 = vadd.f32 %v1788_v8, %v1787_v52  ;;  %v1790_v54 = vpop.f32.mrb[30].mxu1  ;;  %v1751_v55 = vpop.f32.mrb[31].mxu0 }
 0x33f   : > { %v1752_v36 = vadd.f32 %v1751_v55, %v1750_v43  ;;  %v1791_v45 = vpop.f32.mrb[31].mxu1  ;;  %1500 = vst [vmem:[%s2631_s10 + $0x28] sm:$0xff] %v1492_v29 }
 0x340   : > { %v1431_v60 = vadd.f32 %v1789_v3, %v1749_v17  ;;  %v1792_v34 = vadd.f32 %v1791_v45, %v1790_v54 }
 0x342   : > { %v1477_v7 = vadd.f32 %v2623_v18, %v1431_v60  ;;  %v1434_v9 = vadd.f32 %v1792_v34, %v1752_v36 }
 0x344   : > { %v1493_v50 = vadd.f32 %v1485_v61, %v1477_v7  ;;  %v1478_v11 = vadd.f32 %v2623_v18, %v1434_v9 }
 0x346   : > { %1501 = vst [vmem:[%s2631_s10 + $0x30] sm:$0xff] %v1493_v50  ;;  %v1494_v33 = vadd.f32 %v1486_v1, %v1478_v11 }
 0x348   : > { %1502 = vst [vmem:[%s2631_s10 + $0x38] sm:$0xff] %v1494_v33 }
 0x349   : > { %2024 = shalt.err (!%p2021_p5)
}
 0x34a   : > { %s2025_s22 = scalar_lea.hbm %s2656_s18, 1024  ;;  %s2029_s10 = scalar_lea.hbm %s2717_s7, 8192 }
 0x34b   : > { %p2026_p6 = scmp.ne.s32.totalorder %s2656_s18, %s2025_s22  ;;  %p2030_p10 = scmp.lt.u32.totalorder %s2656_s18, %s2717_s7 }
 0x34c   : > { %p2031_p11 = scmp.lt.u32.totalorder %s2029_s10, %s2025_s22  ;;  %p2033_p13 = scmp.lt.u32.totalorder %s2025_s22, %s2656_s18 }
 0x34d   : > { %p2027_p7 = pnand %p2026_p6, %p2175_p4 }
 0x34e   : > { %p2032_p12 = por %p2031_p11, %p2030_p10 }
 0x34f   : > { %p2028_p9 = pneg %p2027_p7 }
 0x350   : > { %p2034_p0 = por %p2033_p13, %p2032_p12 }
 0x352   : > { %p2035_p1 = pnand %p2034_p0, %p2028_p9 }
 0x354   : > { %2038 = shalt.err (!%p2035_p1)
}
 0x355   : > { %s2093_s17 = smov 128   ;;  %s2094_s19 = smov 8  }
 0x356   : > { %1793 = dma.vmem_to_hbm [thread:$0]  (%p2175_p4), %s2658_s15, 1024, %s2656_s18, %s2664_s27, %s2093_s17, %s2093_s17, %s2094_s19  }
 0x357 PF: > { %p1799_p2 = scmp.ge.s32.totalorder %s2089_s29, 2  ;;  %s1532_s20 = sand.u32 1, %s2069_s24  }
 0x358   : > { %s1533_s21 = scalar_lea.sflag [#allocation5], %s1532_s20 }
 0x359   : > { %p1796_p3 = pnand %p1799_p2, %p2182_p8 }
 0x35b   : > { %2064 = dma.done.wait (!%p1796_p3), %s1533_s21, 1024  }
 0x35c   : > { %2066 = vsyncadd (!%p1796_p3), %s1533_s21, 4294966272  ;;  %s20_s29 = sadd.s32 1, %s2089_s29   ;;  %s2720_s24 = smov %s2073_s25 }
 0x35d   : > { %p17_p5 = scmp.ge.s32.totalorder %s20_s29, 10   ;;  %s2721_s25 = smov %s2077_s26 }
 0x35e   : > { %s2722_s26 = smov %s2188_s14  ;;  %s2723_s27 = smov %s2085_s28 }
 0x35f   : > { %s2724_s28 = smov %s2726_s9  ;;  %19 = sbr.rel (!%p17_p5) target bundleno = 4 (0x4), region = 100 }
 0x366   :  { %1538 = vsyncpa [#allocation5], 1 }
 0x367   :  { %1540 = vsyncpa [#allocation5 + $0x1], 1 }

</bundles_post_ra>
